<compile_context>
chip_gen: v6e
topology: v6e:2x2x1
jax: 0.10.0
libtpu: 0.0.40
codegen_flags: <defaults>
</compile_context>

<pallas_src>
import functools
import math

import jax
import jax.numpy as jnp
from jax.experimental import pallas as pl
from jax.experimental.pallas import tpu as pltpu


CPAD = 128                       # lane-dense channel padding for the conv stack
VMEM_LIMIT = 32 * 1024 * 1024    # explicit, sized for v7x (64 MiB physical)


def _round_up(n, m):
    return ((n + m - 1) // m) * m


def _largest_divisor(n, cap):
    for d in range(min(n, cap), 0, -1):
        if n % d == 0:
            return d
    return 1


def _tile(n, cap):
    """Largest 128-multiple divisor of n that is <= cap (or n itself)."""
    if n <= cap:
        return n
    for d in range(cap - cap % 128, 0, -128):
        if n % d == 0:
            return d
    return n


# ----------------------------------------------------------------------------
# Conv kernel: valid 5x5 conv, optional built-in zero padding, im2col matmul.
# ----------------------------------------------------------------------------
def _conv_kernel(x_ref, w_ref, b_ref, o_ref, *scratch, ksize, pad, th, relu):
    # x_ref: (H, W, C) f32      w_ref: (K*K*C, Cout) bf16
    # b_ref: (1, Cout) f32      o_ref: (th, Wo, Cout) f32
    t = pl.program_id(1)
    H, W, C = x_ref.shape
    _, wo, cout = o_ref.shape

    if pad > 0:
        xp_ref = scratch[0]      # (H+2p, W+2p, C) padded image, built once per b

        @pl.when(t == 0)
        def _():
            x = x_ref[...]
            zr = jnp.zeros((pad, W, C), x.dtype)
            zc = jnp.zeros((H + 2 * pad, pad, C), x.dtype)
            xp = jnp.concatenate([zr, x, zr], axis=0)
            xp = jnp.concatenate([zc, xp, zc], axis=1)
            xp_ref[...] = xp

        src = xp_ref
    else:
        src = x_ref

    # Rows needed for this output-row tile (tile + KH-1 halo).
    row0 = t * th
    rows = src[pl.ds(row0, th + ksize - 1)]            # (th+K-1, W(+2p), C) f32

    # im2col: one fat-K patch, one MXU matmul.
    taps = []
    for dy in range(ksize):
        for dx in range(ksize):
            taps.append(rows[dy:dy + th, dx:dx + wo, :])
    patch = jnp.concatenate(taps, axis=-1)             # (th, Wo, K*K*C)
    patch = patch.reshape(th * wo, ksize * ksize * C)

    y = jnp.dot(patch.astype(jnp.bfloat16), w_ref[...],
                preferred_element_type=jnp.float32)
    y = y + b_ref[...]
    if relu:
        y = jnp.maximum(y, 0.0)
    o_ref[...] = y.reshape(th, wo, cout)


def conv2d(x, w_mat, b_row, *, ksize, pad, relu):
    """x: (B, H, W, 128) f32, w_mat: (K*K*128, 128) bf16, b_row: (1, 128) f32."""
    B, H, W, C = x.shape
    Hp, Wp = H + 2 * pad, W + 2 * pad
    Ho, Wo = Hp - ksize + 1, Wp - ksize + 1
    Cout = w_mat.shape[1]
    th = _largest_divisor(Ho, 8)
    n_t = Ho // th

    scratch = []
    if pad > 0:
        scratch.append(pltpu.VMEM((Hp, Wp, C), jnp.float32))

    kern = functools.partial(_conv_kernel, ksize=ksize, pad=pad, th=th, relu=relu)
    cost = pl.CostEstimate(
        flops=int(2 * B * Ho * Wo * ksize * ksize * C * Cout),
        transcendentals=0,
        bytes_accessed=int(x.size * 4 + w_mat.size * 2 + B * Ho * Wo * Cout * 4))

    return pl.pallas_call(
        kern,
        out_shape=jax.ShapeDtypeStruct((B, Ho, Wo, Cout), jnp.float32),
        grid=(B, n_t),
        in_specs=[
            pl.BlockSpec((None, H, W, C), lambda b, t: (b, 0, 0, 0)),
            pl.BlockSpec((ksize * ksize * C, Cout), lambda b, t: (0, 0)),
            pl.BlockSpec((1, Cout), lambda b, t: (0, 0)),
        ],
        out_specs=pl.BlockSpec((None, th, Wo, Cout), lambda b, t: (b, t, 0, 0)),
        scratch_shapes=scratch,
        compiler_params=pltpu.CompilerParams(
            dimension_semantics=("parallel", "arbitrary" if pad > 0 else "parallel"),
            vmem_limit_bytes=VMEM_LIMIT),
        cost_estimate=cost,
    )(x, w_mat, b_row)


# ----------------------------------------------------------------------------
# Tiled linear: K-reduction grid + Out-tile grid, VMEM f32 accumulator.
# ----------------------------------------------------------------------------
def _linear_kernel(x_ref, w_ref, b_ref, o_ref, acc_ref, *, relu):
    k = pl.program_id(1)

    @pl.when(k == 0)
    def _():
        acc_ref[...] = jnp.zeros_like(acc_ref)

    acc_ref[...] += jnp.dot(x_ref[...].astype(jnp.bfloat16), w_ref[...],
                            preferred_element_type=jnp.float32)

    @pl.when(k == pl.num_programs(1) - 1)
    def _():
        y = acc_ref[...] + b_ref[...]
        if relu:
            y = jnp.maximum(y, 0.0)
        o_ref[...] = y


def linear(x, w_mat, b_row, *, relu):
    """x: (B, K) f32, w_mat: (K, N) bf16 (N multiple of 128), b_row: (1, N) f32."""
    B, K = x.shape
    _, N = w_mat.shape
    tk = _tile(K, 2048)          # ~2 MiB bf16 weight blocks, double-buffered
    tn = _tile(N, 512)
    grid = (N // tn, K // tk)

    kern = functools.partial(_linear_kernel, relu=relu)
    cost = pl.CostEstimate(
        flops=int(2 * B * K * N), transcendentals=0,
        bytes_accessed=int(x.size * 4 + w_mat.size * 2 + b_row.size * 4 + B * N * 4))

    # TODO(synk): B=2 fills only 2/8 sublanes of the MXU; nothing to pack at
    # this batch size.
    return pl.pallas_call(
        kern,
        out_shape=jax.ShapeDtypeStruct((B, N), jnp.float32),
        grid=grid,
        in_specs=[
            pl.BlockSpec((B, tk), lambda j, k: (0, k)),
            pl.BlockSpec((tk, tn), lambda j, k: (k, j)),
            pl.BlockSpec((1, tn), lambda j, k: (0, j)),
        ],
        out_specs=pl.BlockSpec((B, tn), lambda j, k: (0, j)),
        scratch_shapes=[pltpu.VMEM((B, tn), jnp.float32)],
        compiler_params=pltpu.CompilerParams(
            dimension_semantics=("parallel", "arbitrary"),
            vmem_limit_bytes=VMEM_LIMIT),
        cost_estimate=cost,
    )(x, w_mat, b_row)


# ----------------------------------------------------------------------------
# Fused latent tail: mu, logvar (packed weights) and z = mu + exp(logvar)*eps.
# ----------------------------------------------------------------------------
def _tail_kernel(h_ref, w_ref, b_ref, eps_ref, mu_ref, lv_ref, z_ref):
    y = jnp.dot(h_ref[...].astype(jnp.bfloat16), w_ref[...],
                preferred_element_type=jnp.float32) + b_ref[...]
    mu = y[:, :128]              # real mu in lanes 0:20
    lv = y[:, 128:]              # real logvar in lanes 0:20
    mu_ref[...] = mu
    lv_ref[...] = lv
    # Matches the reference exactly: std = exp(logvar); z = mu + std * eps.
    z_ref[...] = mu + jnp.exp(lv) * eps_ref[...]


def latent_tail(h, w_ml, b_ml, eps_pad):
    B, In = h.shape
    cost = pl.CostEstimate(
        flops=int(2 * B * In * 256), transcendentals=int(B * 128),
        bytes_accessed=int(h.size * 4 + w_ml.size * 2 + 3 * B * 128 * 4))
    spec = lambda shp: pl.BlockSpec(shp, lambda i: (0, 0))
    return pl.pallas_call(
        _tail_kernel,
        out_shape=(jax.ShapeDtypeStruct((B, 128), jnp.float32),
                   jax.ShapeDtypeStruct((B, 128), jnp.float32),
                   jax.ShapeDtypeStruct((B, 128), jnp.float32)),
        grid=(1,),
        in_specs=[spec((B, In)), spec((In, 256)), spec((1, 256)), spec((B, 128))],
        out_specs=(spec((B, 128)), spec((B, 128)), spec((B, 128))),
        compiler_params=pltpu.CompilerParams(
            dimension_semantics=("arbitrary",),
            vmem_limit_bytes=VMEM_LIMIT),
        cost_estimate=cost,
    )(h, w_ml, b_ml, eps_pad)


# ----------------------------------------------------------------------------
# Parameters (deterministic, PyTorch-default-style uniform init), packed for
# the kernels: channel dims padded to 128, weights bf16, fc weights permuted to
# the NHWC-flattened order.
# ----------------------------------------------------------------------------
def init_params(key, spatial):
    S = spatial - 4 * 4                    # four valid 5x5 convs
    feat_t = 64 * S * S
    feat_pad = _round_up(feat_t, 128)
    keys = iter(jax.random.split(key, 64))

    def u(shape, fan_in):
        bound = 1.0 / math.sqrt(fan_in)
        return jax.random.uniform(next(keys), shape, jnp.float32, -bound, bound)

    def pad2(a, rows, cols):
        return jnp.pad(a, ((0, rows - a.shape[0]), (0, cols - a.shape[1])))

    def pack_conv(w_hwio, b, cin, cout):
        kh, kw = w_hwio.shape[:2]
        w_full = jnp.zeros((kh, kw, CPAD, CPAD), jnp.float32)
        w_full = w_full.at[:, :, :cin, :cout].set(w_hwio)
        w_mat = w_full.reshape(kh * kw * CPAD, CPAD).astype(jnp.bfloat16)
        b_row = jnp.zeros((1, CPAD), jnp.float32).at[0, :cout].set(b)
        return w_mat, b_row

    params = {"S": S, "feat_t": feat_t, "feat_pad": feat_pad}

    # Encoder convs: PyTorch OIHW -> HWIO, embedded into 128x128 channels.
    enc_convs = []
    for cin, cout in [(3, 8), (8, 16), (16, 32), (32, 64)]:
        w = u((cout, cin, 5, 5), cin * 25)
        b = u((cout,), cin * 25)
        enc_convs.append(pack_conv(jnp.transpose(w, (2, 3, 1, 0)), b, cin, cout))
    params["enc_convs"] = enc_convs

    # Decoder ConvTranspose2d (in, out, K, K): stride-1 transposed conv ==
    # zero-pad by K-1 + correlate with the spatially flipped kernel.
    dec_convs = []
    for cin, cout in [(64, 32), (32, 16), (16, 8), (8, 3)]:
        w = u((cin, cout, 5, 5), cin * 25)
        b = u((cout,), cin * 25)
        w_hwio = jnp.transpose(w, (2, 3, 0, 1))[::-1, ::-1, :, :]
        dec_convs.append(pack_conv(w_hwio, b, cin, cout))
    params["dec_convs"] = dec_convs

    # enc_fc: Linear(64*S*S, 400).  Rows permuted (c,h,w) -> (h,w,c) so it
    # consumes the NHWC-flattened activation directly; cols padded 400 -> 512.
    w = u((400, feat_t), feat_t)
    b = u((400,), feat_t)
    w_io = w.T.reshape(64, S, S, 400).transpose(1, 2, 0, 3).reshape(feat_t, 400)
    params["enc_fc_w"] = pad2(w_io, feat_t, 512).astype(jnp.bfloat16)
    params["enc_fc_b"] = jnp.pad(b, (0, 112)).reshape(1, 512)

    # mu / logvar packed side by side: cols 0:128 = mu block, 128:256 = logvar.
    w_mu, b_mu = u((20, 400), 400), u((20,), 400)
    w_lv, b_lv = u((20, 400), 400), u((20,), 400)
    w_ml = jnp.zeros((512, 256), jnp.float32)
    w_ml = w_ml.at[:400, 0:20].set(w_mu.T).at[:400, 128:148].set(w_lv.T)
    b_ml = jnp.zeros((1, 256), jnp.float32)
    b_ml = b_ml.at[0, 0:20].set(b_mu).at[0, 128:148].set(b_lv)
    params["ml_w"] = w_ml.astype(jnp.bfloat16)
    params["ml_b"] = b_ml

    # dec_fc1: Linear(20, 400), padded to (128, 512).
    w = u((400, 20), 20)
    b = u((400,), 20)
    params["dec_fc1_w"] = pad2(w.T, 128, 512).astype(jnp.bfloat16)
    params["dec_fc1_b"] = jnp.pad(b, (0, 112)).reshape(1, 512)

    # dec_fc2: Linear(400, 64*S*S).  Columns permuted (c,h,w) -> (h,w,c) so the
    # output un-flattens straight to NHWC; rows padded 400 -> 512.
    w = u((feat_t, 400), 400)
    b = u((feat_t,), 400)
    w_io = w.T.reshape(400, 64, S, S).transpose(0, 2, 3, 1).reshape(400, feat_t)
    params["dec_fc2_w"] = pad2(w_io, 512, feat_pad).astype(jnp.bfloat16)
    b_perm = b.reshape(64, S, S).transpose(1, 2, 0).reshape(feat_t)
    params["dec_fc2_b"] = jnp.pad(b_perm, (0, feat_pad - feat_t)).reshape(1, feat_pad)
    return params


# ----------------------------------------------------------------------------
# Forward pass (FaceVAE.forward)
# ----------------------------------------------------------------------------
def face_vae_forward(params, x_nchw, eps_key):
    B = x_nchw.shape[0]
    S, feat_t = params["S"], params["feat_t"]

    # --- encode ---
    h = jnp.transpose(x_nchw, (0, 2, 3, 1))                     # NCHW -> NHWC
    h = jnp.pad(h, ((0, 0), (0, 0), (0, 0), (0, CPAD - h.shape[-1])))
    for w, b in params["enc_convs"]:
        h = conv2d(h, w, b, ksize=5, pad=0, relu=True)
    # Flatten in NHWC order (enc_fc_w rows were permuted to match).
    h = h[..., :64].reshape(B, feat_t)
    h = linear(h, params["enc_fc_w"], params["enc_fc_b"], relu=True)

    # --- fused mu / logvar / reparam (torch.rand_like -> uniform [0,1)) ---
    eps = jax.random.uniform(eps_key, (B, 20), dtype=jnp.float32)
    eps_pad = jnp.pad(eps, ((0, 0), (0, 108)))
    mu_p, logvar_p, z = latent_tail(h, params["ml_w"], params["ml_b"], eps_pad)

    # --- decode ---
    d = linear(z, params["dec_fc1_w"], params["dec_fc1_b"], relu=True)
    d = linear(d, params["dec_fc2_w"], params["dec_fc2_b"], relu=True)
    d = d[:, :feat_t].reshape(B, S, S, 64)                      # UnFlatten (NHWC)
    d = jnp.pad(d, ((0, 0), (0, 0), (0, 0), (0, CPAD - 64)))
    for i, (w, b) in enumerate(params["dec_convs"]):
        d = conv2d(d, w, b, ksize=5, pad=4, relu=(i < 3))       # last: no ReLU
    recon = jnp.transpose(d[..., :3], (0, 3, 1, 2))             # back to NCHW
    return recon, mu_p[:, :20], logvar_p[:, :20]


# ----------------------------------------------------------------------------
if __name__ == "__main__":
    # TODO(synk): module-level `std = np.load('std.npy')` is unused in forward
    # and is intentionally not reproduced (no file I/O).
    key = jax.random.PRNGKey(0)
    pkey, xkey, ekey = jax.random.split(key, 3)

    SPATIAL = 20                       # demo-scale stand-in for 100 (-> 84)
    params = init_params(pkey, SPATIAL)
    x = jax.random.normal(xkey, (2, 3, SPATIAL, SPATIAL), dtype=jnp.float32)

    recon, mu, logvar = face_vae_forward(params, x, ekey)
    jax.block_until_ready((recon, mu, logvar))

    assert recon.shape == x.shape, recon.shape
    assert mu.shape == (2, 20) and logvar.shape == (2, 20)
    print("KERNEL_OK")
</pallas_src>

<mosaic_0001>
module attributes {stable_mosaic.version = 11 : i64} {
  func.func @_conv_kernel(%arg0: i32, %arg1: i32, %arg2: memref<1x20x20x128xf32, #tpu.memory_space<vmem>>, %arg3: memref<3200x128xbf16, #tpu.memory_space<vmem>>, %arg4: memref<1x128xf32, #tpu.memory_space<vmem>>, %arg5: memref<1x8x16x128xf32, #tpu.memory_space<vmem>>) attributes {dimension_semantics = [#tpu.dimension_semantics<parallel>, #tpu.dimension_semantics<parallel>], iteration_bounds = array<i64: 2, 2>, scalar_prefetch = 0 : i64, scratch_operands = 0 : i64, tpu.core_type = #tpu.core_type<tc>, window_params = [{transform_indices = @transform_0, window_bounds = array<i64: 1, 20, 20, 128>}, {pipeline_mode = #tpu.pipeline_mode<synchronous>, transform_indices = @transform_1, window_bounds = array<i64: 3200, 128>}, {pipeline_mode = #tpu.pipeline_mode<synchronous>, transform_indices = @transform_2, window_bounds = array<i64: 1, 128>}, {transform_indices = @transform_3, window_bounds = array<i64: 1, 8, 16, 128>}]} {
    %c8_i32 = arith.constant 8 : i32
    %0 = arith.muli %arg1, %c8_i32 : i32
    %c0 = arith.constant 0 : index
    %1 = arith.index_cast %0 : i32 to index
    %c0_0 = arith.constant 0 : index
    %c0_1 = arith.constant 0 : index
    %2 = vector.load %arg2[%c0, %1, %c0_0, %c0_1] : memref<1x20x20x128xf32, #tpu.memory_space<vmem>>, vector<1x12x20x128xf32>
    %3 = vector.shape_cast %2 : vector<1x12x20x128xf32> to vector<12x20x128xf32>
    %4 = vector.extract_strided_slice %3 {offsets = [0, 0, 0], sizes = [8, 16, 128], strides = [1, 1, 1]} : vector<12x20x128xf32> to vector<8x16x128xf32>
    %5 = vector.extract_strided_slice %3 {offsets = [0, 1, 0], sizes = [8, 16, 128], strides = [1, 1, 1]} : vector<12x20x128xf32> to vector<8x16x128xf32>
    %6 = vector.extract_strided_slice %3 {offsets = [0, 2, 0], sizes = [8, 16, 128], strides = [1, 1, 1]} : vector<12x20x128xf32> to vector<8x16x128xf32>
    %7 = vector.extract_strided_slice %3 {offsets = [0, 3, 0], sizes = [8, 16, 128], strides = [1, 1, 1]} : vector<12x20x128xf32> to vector<8x16x128xf32>
    %8 = vector.extract_strided_slice %3 {offsets = [0, 4, 0], sizes = [8, 16, 128], strides = [1, 1, 1]} : vector<12x20x128xf32> to vector<8x16x128xf32>
    %9 = vector.extract_strided_slice %3 {offsets = [1, 0, 0], sizes = [8, 16, 128], strides = [1, 1, 1]} : vector<12x20x128xf32> to vector<8x16x128xf32>
    %10 = vector.extract_strided_slice %3 {offsets = [1, 1, 0], sizes = [8, 16, 128], strides = [1, 1, 1]} : vector<12x20x128xf32> to vector<8x16x128xf32>
    %11 = vector.extract_strided_slice %3 {offsets = [1, 2, 0], sizes = [8, 16, 128], strides = [1, 1, 1]} : vector<12x20x128xf32> to vector<8x16x128xf32>
    %12 = vector.extract_strided_slice %3 {offsets = [1, 3, 0], sizes = [8, 16, 128], strides = [1, 1, 1]} : vector<12x20x128xf32> to vector<8x16x128xf32>
    %13 = vector.extract_strided_slice %3 {offsets = [1, 4, 0], sizes = [8, 16, 128], strides = [1, 1, 1]} : vector<12x20x128xf32> to vector<8x16x128xf32>
    %14 = vector.extract_strided_slice %3 {offsets = [2, 0, 0], sizes = [8, 16, 128], strides = [1, 1, 1]} : vector<12x20x128xf32> to vector<8x16x128xf32>
    %15 = vector.extract_strided_slice %3 {offsets = [2, 1, 0], sizes = [8, 16, 128], strides = [1, 1, 1]} : vector<12x20x128xf32> to vector<8x16x128xf32>
    %16 = vector.extract_strided_slice %3 {offsets = [2, 2, 0], sizes = [8, 16, 128], strides = [1, 1, 1]} : vector<12x20x128xf32> to vector<8x16x128xf32>
    %17 = vector.extract_strided_slice %3 {offsets = [2, 3, 0], sizes = [8, 16, 128], strides = [1, 1, 1]} : vector<12x20x128xf32> to vector<8x16x128xf32>
    %18 = vector.extract_strided_slice %3 {offsets = [2, 4, 0], sizes = [8, 16, 128], strides = [1, 1, 1]} : vector<12x20x128xf32> to vector<8x16x128xf32>
    %19 = vector.extract_strided_slice %3 {offsets = [3, 0, 0], sizes = [8, 16, 128], strides = [1, 1, 1]} : vector<12x20x128xf32> to vector<8x16x128xf32>
    %20 = vector.extract_strided_slice %3 {offsets = [3, 1, 0], sizes = [8, 16, 128], strides = [1, 1, 1]} : vector<12x20x128xf32> to vector<8x16x128xf32>
    %21 = vector.extract_strided_slice %3 {offsets = [3, 2, 0], sizes = [8, 16, 128], strides = [1, 1, 1]} : vector<12x20x128xf32> to vector<8x16x128xf32>
    %22 = vector.extract_strided_slice %3 {offsets = [3, 3, 0], sizes = [8, 16, 128], strides = [1, 1, 1]} : vector<12x20x128xf32> to vector<8x16x128xf32>
    %23 = vector.extract_strided_slice %3 {offsets = [3, 4, 0], sizes = [8, 16, 128], strides = [1, 1, 1]} : vector<12x20x128xf32> to vector<8x16x128xf32>
    %24 = vector.extract_strided_slice %3 {offsets = [4, 0, 0], sizes = [8, 16, 128], strides = [1, 1, 1]} : vector<12x20x128xf32> to vector<8x16x128xf32>
    %25 = vector.extract_strided_slice %3 {offsets = [4, 1, 0], sizes = [8, 16, 128], strides = [1, 1, 1]} : vector<12x20x128xf32> to vector<8x16x128xf32>
    %26 = vector.extract_strided_slice %3 {offsets = [4, 2, 0], sizes = [8, 16, 128], strides = [1, 1, 1]} : vector<12x20x128xf32> to vector<8x16x128xf32>
    %27 = vector.extract_strided_slice %3 {offsets = [4, 3, 0], sizes = [8, 16, 128], strides = [1, 1, 1]} : vector<12x20x128xf32> to vector<8x16x128xf32>
    %28 = vector.extract_strided_slice %3 {offsets = [4, 4, 0], sizes = [8, 16, 128], strides = [1, 1, 1]} : vector<12x20x128xf32> to vector<8x16x128xf32>
    %29 = tpu.concatenate %4, %5, %6, %7, %8, %9, %10, %11, %12, %13, %14, %15, %16, %17, %18, %19 in 2 : vector<8x16x128xf32>, vector<8x16x128xf32>, vector<8x16x128xf32>, vector<8x16x128xf32>, vector<8x16x128xf32>, vector<8x16x128xf32>, vector<8x16x128xf32>, vector<8x16x128xf32>, vector<8x16x128xf32>, vector<8x16x128xf32>, vector<8x16x128xf32>, vector<8x16x128xf32>, vector<8x16x128xf32>, vector<8x16x128xf32>, vector<8x16x128xf32>, vector<8x16x128xf32> -> vector<8x16x2048xf32>
    %30 = tpu.concatenate %20, %21, %22, %23, %24, %25, %26, %27, %28 in 2 : vector<8x16x128xf32>, vector<8x16x128xf32>, vector<8x16x128xf32>, vector<8x16x128xf32>, vector<8x16x128xf32>, vector<8x16x128xf32>, vector<8x16x128xf32>, vector<8x16x128xf32>, vector<8x16x128xf32> -> vector<8x16x1152xf32>
    %31 = tpu.concatenate %29, %30 in 2 : vector<8x16x2048xf32>, vector<8x16x1152xf32> -> vector<8x16x3200xf32>
    %32 = vector.shape_cast %31 : vector<8x16x3200xf32> to vector<128x3200xf32>
    %33 = arith.truncf %32 : vector<128x3200xf32> to vector<128x3200xbf16>
    %c0_2 = arith.constant 0 : index
    %c0_3 = arith.constant 0 : index
    %34 = vector.load %arg3[%c0_2, %c0_3] : memref<3200x128xbf16, #tpu.memory_space<vmem>>, vector<3200x128xbf16>
    %cst = arith.constant dense<0.000000e+00> : vector<128x128xf32>
    %35 = tpu.matmul %33, %34, %cst {dimension_numbers = #tpu.dot_dimension_numbers<[1], [0], [0], [1], [0, 0, 1, 1], [], []>} : vector<128x3200xbf16>, vector<3200x128xbf16>, vector<128x128xf32> -> vector<128x128xf32>
    %c0_4 = arith.constant 0 : index
    %c0_5 = arith.constant 0 : index
    %36 = vector.load %arg4[%c0_4, %c0_5] : memref<1x128xf32, #tpu.memory_space<vmem>>, vector<1x128xf32>
    %37 = vector.broadcast %36 : vector<1x128xf32> to vector<128x128xf32>
    %38 = arith.addf %35, %37 : vector<128x128xf32>
    %cst_6 = arith.constant 0.000000e+00 : f32
    %39 = vector.broadcast %cst_6 : f32 to vector<128x128xf32>
    %40 = arith.maximumf %38, %39 : vector<128x128xf32>
    %41 = vector.shape_cast %40 : vector<128x128xf32> to vector<8x16x128xf32>
    %c0_7 = arith.constant 0 : index
    %c0_8 = arith.constant 0 : index
    %c0_9 = arith.constant 0 : index
    %c0_10 = arith.constant 0 : index
    %42 = vector.load %arg5[%c0_7, %c0_8, %c0_9, %c0_10] : memref<1x8x16x128xf32, #tpu.memory_space<vmem>>, vector<1x8x16x128xf32>
    %43 = vector.shape_cast %42 : vector<1x8x16x128xf32> to vector<8x16x128xf32>
    %44 = vector.shape_cast %41 : vector<8x16x128xf32> to vector<1x8x16x128xf32>
    tpu.vector_store %arg5[%c0_7, %c0_8, %c0_9, %c0_10], %44 {strides = array<i32>} : memref<1x8x16x128xf32, #tpu.memory_space<vmem>>, vector<1x8x16x128xf32>,
    return
  }
  func.func @transform_0(%arg0: i32, %arg1: i32) -> (i32, i32, i32, i32) {
    %c0_i32 = arith.constant 0 : i32
    %c0_i32_0 = arith.constant 0 : i32
    %c0_i32_1 = arith.constant 0 : i32
    %c0_i32_2 = arith.constant 0 : i32
    return %arg0, %c0_i32, %c0_i32_0, %c0_i32_1 : i32, i32, i32, i32
  }
  func.func @transform_1(%arg0: i32, %arg1: i32) -> (i32, i32) {
    %c0_i32 = arith.constant 0 : i32
    %c0_i32_0 = arith.constant 0 : i32
    %c0_i32_1 = arith.constant 0 : i32
    return %c0_i32, %c0_i32_0 : i32, i32
  }
  func.func @transform_2(%arg0: i32, %arg1: i32) -> (i32, i32) {
    %c0_i32 = arith.constant 0 : i32
    %c0_i32_0 = arith.constant 0 : i32
    %c0_i32_1 = arith.constant 0 : i32
    return %c0_i32, %c0_i32_0 : i32, i32
  }
  func.func @transform_3(%arg0: i32, %arg1: i32) -> (i32, i32, i32, i32) {
    %c0_i32 = arith.constant 0 : i32
    %c0_i32_0 = arith.constant 0 : i32
    %c0_i32_1 = arith.constant 0 : i32
    return %arg0, %arg1, %c0_i32, %c0_i32_0 : i32, i32, i32, i32
  }
}

</mosaic_0001>

<bundles_post_ra>
// kernel: tpu_custom_call.1
= control target key start
LH: loop header
LB: loop body
LE: loop exit
PB: predicated region body
PF: predicated region fallthrough
CT: control target
= control target key end

     0   :  { %8 = vsyncpa [#allocation3], 0  ;;  %s7518_s0 = inlined_call_operand.vmem [shape: f32[2,20,20,128], index: 0, kind: input, shape index: {}]   ;;  %s7519_s1 = inlined_call_operand.vmem [shape: bf16[3200,128], index: 1, kind: input, shape index: {}]   ;;  %s7520_s2 = inlined_call_operand.vmem [shape: f32[1,128], index: 2, kind: input, shape index: {}]   ;;  %s7521_s3 = inlined_call_operand.hbm [shape: f32[2,16,16,128], index: 3, kind: output, shape index: {}]  }
   0x1   :  { %10 = vsyncpa [#allocation3 + $0x1], 0  ;;  %s5386_s12 = smov 0   ;;  %s5388_s13 = smov 0  }
   0x2   :  { %s5390_s14 = smov 0   ;;  %s5392_s15 = smov 0  }
   0x3   :  { %s5394_s16 = smov 0   ;;  %s5396_s17 = smov 0  }
   0x4   :  { %s5398_s18 = smov 0   ;;  %s5400_s19 = smov 0  }
   0x5 LB: > { %s3931_s20 = sadd.s32 4294967295, %s5361_s19   ;;  %s3932_s21 = sadd.s32 4294967294, %s5361_s19   ;;  %s5361_s19 = sphi %s5400_s19, %s16_s19   ;;  %s5357_s18 = sphi %s5398_s18, %s7732_s18   ;;  %s5353_s17 = sphi %s5396_s17, %s7731_s17   ;;  %s5349_s16 = sphi %s5394_s16, %s7730_s16   ;;  %s5345_s15 = sphi %s5392_s15, %s7729_s15   ;;  %s5341_s14 = sphi %s5390_s14, %s7728_s14   ;;  %s5337_s13 = sphi %s5388_s13, %s7727_s13   ;;  %s5333_s12 = sphi %s5386_s12, %s7726_s12  }
   0x6   : > { %s25_s22 = sadd.s32 1, %s5353_s17  ;;  %s28_s23 = sadd.s32 1, %s5357_s18 }
   0x7   : > { %p26_p0 = scmp.ge.s32.totalorder %s25_s22, 2  ;;  %p115_p1 = scmp.ne.s32.totalorder %s5341_s14, %s5337_s13 }
   0x8   : > { %p116_p2 = scmp.eq.s32.totalorder %s3931_s20, 3  ;;  %p121_p5 = scmp.ne.s32.totalorder %s5337_s13, %s5333_s12 }
   0x9   : > { %s7734_s22 = smov (%p26_p0, %s25_s22), 0  ;;  %s7736_s23 = smov (!%p26_p0, %s28_s23), %s5357_s18 }
   0xa   : > { %s101_s24 = ssub.s32 %s5353_s17, %s7734_s22  ;;  %p5437_p3 = por %p116_p2, %p115_p1 }
   0xb   : > { %p30_p4 = scmp.ge.s32.totalorder %s7736_s23, 2  ;;  %p122_p6 = scmp.eq.s32.totalorder %s3932_s21, 3 }
   0xc   : > { %p3935_p7 = scmp.ge.s32.totalorder %s5361_s19, 1  ;;  %p154_p9 = scmp.lt.s32.totalorder %s5361_s19, 5 }
   0xd   : > { %s7738_s23 = smov (%p30_p4, %s7736_s23), 0  ;;  %p5446_p8 = por %p122_p6, %p121_p5 }
   0xe   : > { %s100_s27 = ssub.s32 %s5357_s18, %s7738_s23  ;;  %s105_s28 = sadd.s32 1, %s5341_s14 }
   0xf   : > { %s102_s29 = sor.u32 %s101_s24, %s100_s27  ;;  %p155_p10 = pnand %p3935_p7, %p154_p9 }
  0x10   : > { %p103_p11 = scmp.eq.s32.totalorder %s102_s29, 0 }
  0x11   : > { %158 = sbr.rel (%p155_p10) target bundleno = 667 (0x29b), region = 32 }
  0x12   : > { %s5455_s30 = scalar_select %p103_p11, %s5341_s14, %s105_s28  }
  0x16   : > { %v5055_v0 = vld [vmem:[%s7519_s1 + $0x78] sm:$0xff]   ;;  %v5059_v4 = vld [vmem:[%s7519_s1 + $0x70] sm:$0xff]   ;;  %v5063_v8 = vld [vmem:[%s7519_s1 + $0x68] sm:$0xff]   ;;  %p178_p12 = scmp.lt.s32.totalorder %s5349_s16, 1  ;;  %s3939_s29 = smul.u32 192, %s5345_s15  ;;  %vm248_vm0 = vcmask 1046528  }
  0x17   : > { %v5056_v1 = vld [vmem:[%s7519_s1 + $0xf8] sm:$0xff]   ;;  %4149 = vmatprep.subr.bf16.mxu0 %v5055_v0  ;;  %v5060_v5 = vld [vmem:[%s7519_s1 + $0xf0] sm:$0xff]   ;;  %v5064_v9 = vld [vmem:[%s7519_s1 + $0xe8] sm:$0xff]   ;;  %vm362_vm1 = vcmask 1044480   ;;  %vm305_vm2 = vcmask 1045504   ;;  %vm419_vm3 = vcmask 1043456  }
  0x18   : > { %v5057_v2 = vld [vmem:[%s7519_s1 + $0x38] sm:$0xff]   ;;  %4213 = vmatprep.subr.bf16.mxu1 %v5056_v1  ;;  %v5061_v6 = vld [vmem:[%s7519_s1 + $0x30] sm:$0xff]   ;;  %v5065_v10 = vld [vmem:[%s7519_s1 + $0x28] sm:$0xff]   ;;  %s179_s24 = scalar_select %p178_p12, %s5349_s16, 1  ;;  %vm558_vm4 = vcmask 1040384  }
  0x19   : > { %v5058_v3 = vld [vmem:[%s7519_s1 + $0xb8] sm:$0xff]   ;;  %4150 = vmatpush3.bf16.msra.mxu0 %v5057_v2  ;;  %v5062_v7 = vld [vmem:[%s7519_s1 + $0xb0] sm:$0xff]   ;;  %v5066_v11 = vld [vmem:[%s7519_s1 + $0xa8] sm:$0xff]   ;;  %s4144_s8 = sshll.u32 %s5349_s16, 5  ;;  %s5363_s4 = smov [#allocation2]  }
  0x1a   : > { %4214 = vmatpush3.bf16.msra.mxu1 %v5058_v3  ;;  %4151 = vmatprep.subr.bf16.mxu0 %v5059_v4  ;;  %v5067_v12 = vld [vmem:[%s7519_s1 + $0x60] sm:$0xff]   ;;  %v5071_v16 = vld [vmem:[%s7519_s1 + $0x58] sm:$0xff]   ;;  %v5075_v20 = vld [vmem:[%s7519_s1 + $0x50] sm:$0xff]   ;;  %s4981_s9 = smul.u32 480, %s179_s24  ;;  %s5273_s5 = sshll.u32 %s5363_s4, 4  ;;  %s5274_s5 = int_to_ptr.vmem [resolvable:$false] %s5273_s5 }
  0x1b   : > { %4215 = vmatprep.subr.bf16.mxu1 %v5060_v5  ;;  %v5068_v13 = vld [vmem:[%s7519_s1 + $0xe0] sm:$0xff]   ;;  %v5072_v17 = vld [vmem:[%s7519_s1 + $0xd8] sm:$0xff]   ;;  %v5076_v21 = vld [vmem:[%s7519_s1 + $0xd0] sm:$0xff]   ;;  %s5275_s24 = scalar_lea.vmem %s5274_s5, 4096 }
  0x1c   : > { %v5069_v14 = vld [vmem:[%s7519_s1 + $0x20] sm:$0xff]   ;;  %v5073_v18 = vld [vmem:[%s7519_s1 + $0x18] sm:$0xff]   ;;  %v5077_v22 = vld [vmem:[%s7519_s1 + $0x10] sm:$0xff]   ;;  %s182_s7 = scalar_lea.vmem %s7518_s0, %s4981_s9 }
  0x1d   : > { %4152 = vmatpush3.bf16.msra.mxu0 %v5061_v6  ;;  %v5070_v15 = vld [vmem:[%s7519_s1 + $0xa0] sm:$0xff]   ;;  %v5074_v19 = vld [vmem:[%s7519_s1 + $0x98] sm:$0xff]   ;;  %v5078_v23 = vld [vmem:[%s7519_s1 + $0x90] sm:$0xff]   ;;  %s5553_s28 = scalar_lea.vmem %s182_s7, %s3939_s29  ;;  %s4148_s7 = sshll.u32 %s5345_s15, 4 }
  0x1e   : > { %4216 = vmatpush3.bf16.msra.mxu1 %v5062_v7  ;;  %4153 = vmatprep.subr.bf16.mxu0 %v5063_v8  ;;  %v5079_v24 = vld [vmem:[%s7519_s1 + $0x48] sm:$0xff]   ;;  %v5083_v28 = vld [vmem:[%s7519_s1 + $0x40] sm:$0xff]   ;;  %v5568_v34 = vld [vmem:[%s5553_s28 + $0x10] sm:$0xf]  ;;  %s3850_s15 = sadd.s32 %s4148_s7, %s4144_s8 }
  0x1f   : > { %4217 = vmatprep.subr.bf16.mxu1 %v5064_v9  ;;  %v5080_v25 = vld [vmem:[%s7519_s1 + $0xc8] sm:$0xff]   ;;  %v5084_v29 = vld [vmem:[%s7519_s1 + $0xc0] sm:$0xff]   ;;  %v252_v37 = vrot.slane %v5568_v34, 1  ;;  %v366_v40 = vrot.slane %v5568_v34, 3  ;;  %v5087_v42 = vld [vmem:[%s7519_s1 + $0x178] sm:$0xff]   ;;  %v309_v50 = vrot.slane %v5568_v34, 2 }
  0x20   : > { %v5081_v26 = vld [vmem:[%s7519_s1 + $0x8] sm:$0xff]   ;;  %v5085_v30 = vld [vmem:[%s7519_s1] sm:$0xff]   ;;  %v5088_v51 = vld [vmem:[%s7519_s1 + $0x1f8] sm:$0xff]   ;;  %v423_v55 = vrot.slane %v5568_v34, 4  ;;  %s4145_s16 = sshll.u32 %s3850_s15, 7 }
  0x21   : > { %4154 = vmatpush3.bf16.msra.mxu0 %v5065_v10  ;;  %v5082_v27 = vld [vmem:[%s7519_s1 + $0x88] sm:$0xff]   ;;  %v5086_v31 = vld [vmem:[%s7519_s1 + $0x80] sm:$0xff]   ;;  %v5089_v54 = vld [vmem:[%s7519_s1 + $0x138] sm:$0xff]   ;;  %s7458_s21 = scalar_lea.hbm %s7521_s3, %s4145_s16 }
  0x22   : > { %4218 = vmatpush3.bf16.msra.mxu1 %v5066_v11  ;;  %4155 = vmatprep.subr.bf16.mxu0 %v5067_v12  ;;  %v5562_v32 = vld [vmem:[%s5553_s28] sm:$0xff]  ;;  %v5565_v33 = vld [vmem:[%s5553_s28 + $0x8] sm:$0xff]  ;;  %v5090_v57 = vld [vmem:[%s7519_s1 + $0x1b8] sm:$0xff]  }
  0x23   : > { %4219 = vmatprep.subr.bf16.mxu1 %v5068_v13  ;;  %v249_v35 = vrot.slane %v5562_v32, 1  ;;  %v250_v36 = vrot.slane %v5565_v33, 1  ;;  %v363_v38 = vrot.slane %v5562_v32, 3  ;;  %v364_v39 = vrot.slane %v5565_v33, 3  ;;  %v5601_v58 = vld [vmem:[%s5553_s28 + $0x18] sm:$0xff]  ;;  %v5604_v59 = vld [vmem:[%s5553_s28 + $0x20] sm:$0xff] }
  0x24   : > { %v848_v41 = vpack.c.bf16 %v5565_v33, %v5562_v32  ;;  %v306_v45 = vrot.slane %v5562_v32, 2  ;;  %v307_v46 = vrot.slane %v5565_v33, 2  ;;  %v420_v60 = vrot.slane %v5562_v32, 4  ;;  %v5609_v63 = vld [vmem:[%s5553_s28 + $0x28] sm:$0xf]  ;;  %v5091_v3 = vld [vmem:[%s7519_s1 + $0x170] sm:$0xff]  }
  0x25   : > { %4156 = vmatpush3.bf16.msra.mxu0 %v5069_v14  ;;  %v251_v43 = vsel %vm248_vm0, %v249_v35, %v250_v36  ;;  %v253_v44 = vsel %vm248_vm0, %v250_v36, %v252_v37  ;;  %v365_v48 = vsel %vm362_vm1, %v363_v38, %v364_v39  ;;  %v367_v49 = vsel %vm362_vm1, %v364_v39, %v366_v40  ;;  %v5092_v8 = vld [vmem:[%s7519_s1 + $0x1f0] sm:$0xff]   ;;  %v5095_v37 = vld [vmem:[%s7519_s1 + $0x168] sm:$0xff]  }
  0x26   : > { %4220 = vmatpush3.bf16.msra.mxu1 %v5070_v15  ;;  %4157 = vmatprep.subr.bf16.mxu0 %v5071_v16  ;;  %v849_v47 = vpack.c.bf16 %v253_v44, %v251_v43  ;;  %v851_v52 = vpack.c.bf16 %v367_v49, %v365_v48  ;;  %v308_v53 = vsel %vm305_vm2, %v306_v45, %v307_v46  ;;  %v421_v61 = vrot.slane %v5565_v33, 4  ;;  %v5093_v13 = vld [vmem:[%s7519_s1 + $0x130] sm:$0xff]   ;;  %v5096_v44 = vld [vmem:[%s7519_s1 + $0x1e8] sm:$0xff]  }
  0x27   : > { %4221 = vmatprep.subr.bf16.mxu1 %v5072_v17  ;;  %v310_v56 = vsel %vm305_vm2, %v307_v46, %v309_v50  ;;  %v254_v0 = vrot.slane %v5601_v58, 1  ;;  %v255_v1 = vrot.slane %v5604_v59, 1  ;;  %v368_v2 = vrot.slane %v5601_v58, 3  ;;  %v5097_v49 = vld [vmem:[%s7519_s1 + $0x128] sm:$0xff]  }
  0x28   : > { %2575 = vmatprep.mubr.bf16.mxu0 %v849_v47  ;;  %2672 = vmatprep.mubr.bf16.mxu1 %v851_v52  ;;  %v850_v62 = vpack.c.bf16 %v310_v56, %v308_v53  ;;  %v257_v4 = vrot.slane %v5609_v63, 1  ;;  %v369_v5 = vrot.slane %v5604_v59, 3  ;;  %v371_v6 = vrot.slane %v5609_v63, 3  ;;  %v5098_v52 = vld [vmem:[%s7519_s1 + $0x1a8] sm:$0xff]   ;;  %v5714_v56 = vld [vmem:[%s5553_s28 + $0x50] sm:$0xff] }
  0x29   : > { %4158 = vmatpush3.bf16.msra.mxu0 %v5073_v18  ;;  %v5622_v7 = vpack.c.bf16 %v5604_v59, %v5601_v58  ;;  %v256_v9 = vsel %vm248_vm0, %v254_v0, %v255_v1  ;;  %v311_v10 = vrot.slane %v5601_v58, 2  ;;  %v312_v11 = vrot.slane %v5604_v59, 2  ;;  %v5704_v53 = vld [vmem:[%s5553_s28 + $0x48] sm:$0xff] }
  0x2a   : > { %4222 = vmatpush3.bf16.msra.mxu1 %v5074_v19  ;;  %4159 = vmatprep.subr.bf16.mxu0 %v5075_v20  ;;  %v314_v12 = vrot.slane %v5609_v63, 2  ;;  %v258_v14 = vsel %vm248_vm0, %v255_v1, %v257_v4  ;;  %v370_v15 = vsel %vm362_vm1, %v368_v2, %v369_v5  ;;  %v372_v16 = vsel %vm362_vm1, %v369_v5, %v371_v6  ;;  %v5099_v4 = vld [vmem:[%s7519_s1 + $0x160] sm:$0xff]  }
  0x2b   : > { %4223 = vmatprep.subr.bf16.mxu1 %v5076_v21  ;;  %v5638_v17 = vsel %vm419_vm3, %v420_v60, %v421_v61  ;;  %v5640_v18 = vpack.c.bf16 %v258_v14, %v256_v9  ;;  %v5642_v19 = vpack.c.bf16 %v372_v16, %v370_v15  ;;  %v313_v20 = vsel %vm305_vm2, %v311_v10, %v312_v11  ;;  %v5100_v5 = vld [vmem:[%s7519_s1 + $0x1e0] sm:$0xff]  }
  0x2c   : > { %v315_v21 = vsel %vm305_vm2, %v312_v11, %v314_v12  ;;  %v321_v60 = vrot.slane %v5704_v53, 2  ;;  %v322_v2 = vrot.slane %v5714_v56, 2  ;;  %v5101_v14 = vld [vmem:[%s7519_s1 + $0x120] sm:$0xff]  }
  0x2d   : > { %4160 = vmatpush3.bf16.msra.mxu0 %v5077_v22  ;;  %v5646_v22 = vpack.c.bf16 %v315_v21, %v313_v20  ;;  %v5102_v15 = vld [vmem:[%s7519_s1 + $0x1a0] sm:$0xff]  }
  0x2e   : > { %4224 = vmatpush3.bf16.msra.mxu1 %v5078_v23  ;;  %4161 = vmatprep.subr.bf16.mxu0 %v5079_v24  ;;  %v5094_v23 = vld [vmem:[%s7519_s1 + $0x1b0] sm:$0xff]   ;;  %v323_v16 = vsel %vm305_vm2, %v321_v60, %v322_v2  ;;  %v5106_v60 = vld [vmem:[%s7519_s1 + $0x198] sm:$0xff]  }
  0x2f   : > { %4225 = vmatprep.subr.bf16.mxu1 %v5080_v25  ;;  %v5652_v24 = vld [vmem:[%s5553_s28 + $0x30] sm:$0xff]  ;;  %v5655_v25 = vld [vmem:[%s5553_s28 + $0x38] sm:$0xff] }
  0x30   : > { %v373_v32 = vrot.slane %v5652_v24, 3  ;;  %v374_v33 = vrot.slane %v5655_v25, 3  ;;  %v316_v36 = vrot.slane %v5652_v24, 2  ;;  %v317_v40 = vrot.slane %v5655_v25, 2 }
  0x31   : > { %4162 = vmatpush3.bf16.msra.mxu0 %v5081_v26  ;;  %v5658_v26 = vsel %vm419_vm3, %v421_v61, %v423_v55  ;;  %v5711_v55 = vpack.c.bf16 %v5655_v25, %v5652_v24  ;;  %v265_v61 = vrot.slane %v5714_v56, 1 }
  0x32   : > { %4226 = vmatpush3.bf16.msra.mxu1 %v5082_v27  ;;  %4163 = vmatprep.subr.bf16.mxu0 %v5083_v28  ;;  %v425_v27 = vrot.slane %v5601_v58, 4  ;;  %v426_v28 = vrot.slane %v5604_v59, 4  ;;  %v375_v39 = vsel %vm362_vm1, %v373_v32, %v374_v33  ;;  %v318_v50 = vsel %vm305_vm2, %v316_v36, %v317_v40  ;;  %v5781_v32 = vld [vmem:[%s5553_s28 + $0x70] sm:$0xf] }
  0x33   : > { %4227 = vmatprep.subr.bf16.mxu1 %v5084_v29  ;;  %v5665_v29 = vld [vmem:[%s5553_s28 + $0x40] sm:$0xf]  ;;  %v264_v58 = vrot.slane %v5704_v53, 1  ;;  %v378_v59 = vrot.slane %v5704_v53, 3 }
  0x34   : > { %v262_v34 = vrot.slane %v5665_v29, 1  ;;  %v376_v35 = vrot.slane %v5665_v29, 3  ;;  %v427_v46 = vsel %vm419_vm3, %v425_v27, %v426_v28 }
  0x35   : > { %4164 = vmatpush3.bf16.msra.mxu0 %v5085_v30  ;;  %v259_v30 = vrot.slane %v5652_v24, 1 }
  0x36   : > { %4228 = vmatpush3.bf16.msra.mxu1 %v5086_v31  ;;  %4277 = vmatprep.subr.bf16.mxu0 %v5087_v42  ;;  %v260_v31 = vrot.slane %v5655_v25, 1  ;;  %v377_v43 = vsel %vm362_vm1, %v374_v33, %v376_v35  ;;  %v7523_v35 = vrot.slane %v5781_v32, 1 }
  0x37   : > { %4341 = vmatprep.subr.bf16.mxu1 %v5088_v51  ;;  %v5693_v48 = vpack.c.bf16 %v377_v43, %v375_v39 }
  0x38   : > { %2576 = vmatmul.mubr.bf16.vlgmr.msra.gmra.mxu0 %v848_v41  ;;  %v261_v38 = vsel %vm248_vm0, %v259_v30, %v260_v31  ;;  %v319_v41 = vrot.slane %v5665_v29, 2  ;;  %v263_v42 = vsel %vm248_vm0, %v260_v31, %v262_v34  ;;  %v5778_v31 = vld [vmem:[%s5553_s28 + $0x68] sm:$0xff] }
  0x39   : > { %4278 = vmatpush3.bf16.msra.mxu0 %v5089_v54  ;;  %2673 = vmatmul.mubr.bf16.vlgmr.msra.gmra.mxu1 %v850_v62  ;;  %v5691_v47 = vpack.c.bf16 %v263_v42, %v261_v38  ;;  %v428_v54 = vrot.slane %v5609_v63, 4  ;;  %v379_v63 = vrot.slane %v5714_v56, 3  ;;  %v270_v34 = vrot.slane %v5778_v31, 1  ;;  %v5103_v42 = vld [vmem:[%s7519_s1 + $0x158] sm:$0xff]  }
  0x3a   : > { %4279 = vmatprep.subr.bf16.mxu0 %v5091_v3  ;;  %4342 = vmatpush3.bf16.msra.mxu1 %v5090_v57  ;;  %v320_v51 = vsel %vm305_vm2, %v317_v40, %v319_v41  ;;  %v5717_v57 = vld [vmem:[%s5553_s28 + $0x58] sm:$0xf]  ;;  %v5791_v38 = vpack.c.bf16 %v5714_v56, %v5704_v53  ;;  %v7526_v41 = vrot.slane %v5781_v32, 3 }
  0x3b   : > { %4343 = vmatprep.subr.bf16.mxu1 %v5092_v8  ;;  %2583 = vmatprep.mubr.bf16.mxu0 %v5640_v18  ;;  %v7524_v62 = vrot.slane %v5717_v57, 1  ;;  %v7527_v0 = vrot.slane %v5717_v57, 3  ;;  %v5726_v1 = vpack.c.bf16 %v320_v51, %v318_v50  ;;  %v324_v3 = vrot.slane %v5717_v57, 2  ;;  %v5104_v50 = vld [vmem:[%s7519_s1 + $0x1d8] sm:$0xff]  }
  0x3c   : > { %2680 = vmatprep.mubr.bf16.mxu1 %v5642_v19  ;;  %v429_v6 = vsel %vm419_vm3, %v426_v28, %v428_v54  ;;  %v5738_v8 = vsel %vm248_vm0, %v264_v58, %v265_v61  ;;  %v5746_v10 = vsel %vm362_vm1, %v378_v59, %v379_v63  ;;  %v602_v28 = vrot.slane %v323_v16, 1  ;;  %v5105_v59 = vld [vmem:[%s7519_s1 + $0x118] sm:$0xff]  }
  0x3d   : > { %4280 = vmatpush3.bf16.msra.mxu0 %v5093_v13  ;;  %7583 = vst [vmem:[#allocation5_spill] sm:$0xff] %v5738_v8  ;;  %v5743_v9 = vsel %vm248_vm0, %v265_v61, %v7524_v62  ;;  %v5751_v11 = vsel %vm362_vm1, %v379_v63, %v7527_v0  ;;  %v325_v20 = vsel %vm305_vm2, %v322_v2, %v324_v3  ;;  %v622_v21 = vrot.slane %v324_v3, 1  ;;  %v5844_v3 = vld [vmem:[%s5553_s28 + $0x78] sm:$0xff]  ;;  %v5111_v62 = vld [vmem:[%s7519_s1 + $0x148] sm:$0xff]  }
  0x3e   : > { %4344 = vmatpush3.bf16.msra.mxu1 %v5094_v23  ;;  %4281 = vmatprep.subr.bf16.mxu0 %v5095_v37  ;;  %7584 = vst [vmem:[#allocation6_spill] sm:$0xff] %v5743_v9  ;;  %v5756_v12 = vpack.c.bf16 %v5743_v9, %v5738_v8  ;;  %v5760_v13 = vpack.c.bf16 %v5751_v11, %v5746_v10  ;;  %v5771_v23 = vld [vmem:[%s5553_s28 + $0x60] sm:$0xff]  ;;  %v603_v30 = vrot.slane %v325_v20, 1  ;;  %v384_v37 = vrot.slane %v5778_v31, 3  ;;  %v5112_v0 = vld [vmem:[%s7519_s1 + $0x1c8] sm:$0xff]  }
  0x3f   : > { %4345 = vmatprep.subr.bf16.mxu1 %v5096_v44  ;;  %v5773_v27 = vpack.c.bf16 %v429_v6, %v427_v46  ;;  %v269_v33 = vrot.slane %v5771_v23, 1  ;;  %v383_v36 = vrot.slane %v5771_v23, 3  ;;  %v5811_v46 = vsel %vm248_vm0, %v270_v34, %v7523_v35 }
  0x40   : > { %2584 = vmatmul.mubr.bf16.gmra.mxu0 %v5622_v7  ;;  %7585 = vst [vmem:[#allocation7_spill] sm:$0xff] %v5756_v12  ;;  %7586 = vst [vmem:[#allocation8_spill] sm:$0xff] %v5760_v13  ;;  %v5794_v39 = vsel %vm248_vm0, %v602_v28, %v603_v30  ;;  %v5797_v40 = vsel %vm248_vm0, %v603_v30, %v622_v21  ;;  %v5819_v51 = vpack.c.bf16 %v325_v20, %v323_v16  ;;  %v5107_v21 = vld [vmem:[%s7519_s1 + $0x150] sm:$0xff]  }
  0x41   : > { %2681 = vmatmul.mubr.bf16.gmra.mxu1 %v5646_v22  ;;  %2591 = vmatprep.mubr.bf16.mxu0 %v5691_v47  ;;  %7587 = vst [vmem:[#allocation9_spill] sm:$0xff] %v5794_v39  ;;  %7588 = vst [vmem:[#allocation10_spill] sm:$0xff] %v5797_v40  ;;  %v5806_v44 = vsel %vm248_vm0, %v269_v33, %v270_v34  ;;  %v5828_v54 = vsel %vm362_vm1, %v384_v37, %v7526_v41  ;;  %v326_v58 = vrot.slane %v5771_v23, 2 }
  0x42   : > { %2688 = vmatprep.mubr.bf16.mxu1 %v5693_v48  ;;  %4282 = vmatpush3.bf16.msra.mxu0 %v5097_v49  ;;  %7589 = vst [vmem:[#allocation11_spill] sm:$0xff] %v5806_v44  ;;  %7590 = vst [vmem:[#allocation12_spill] sm:$0xff] %v5811_v46  ;;  %v5814_v49 = vsel %vm362_vm1, %v383_v36, %v384_v37  ;;  %v327_v63 = vrot.slane %v5778_v31, 2  ;;  %v7528_v2 = vrot.slane %v5781_v32, 2  ;;  %v274_v6 = vrot.slane %v5844_v3, 1  ;;  %v5108_v36 = vld [vmem:[%s7519_s1 + $0x1d0] sm:$0xff]  }
  0x43   : > { %4346 = vmatpush3.bf16.msra.mxu1 %v5098_v52  ;;  %4283 = vmatprep.subr.bf16.mxu0 %v5099_v4  ;;  %v5823_v52 = vpack.c.bf16 %v5811_v46, %v5806_v44  ;;  %v5839_v61 = vpack.c.bf16 %v5828_v54, %v5814_v49  ;;  %v5848_v4 = vld [vmem:[%s5553_s28 + $0x80] sm:$0xff]  ;;  %v388_v30 = vrot.slane %v5844_v3, 3  ;;  %v5881_v37 = vpack.c.bf16 %v5778_v31, %v5771_v23 }
  0x44   : > { %4347 = vmatprep.subr.bf16.mxu1 %v5100_v5  ;;  %v5851_v5 = vld [vmem:[%s5553_s28 + $0x88] sm:$0xf]  ;;  %v5863_v16 = vsel %vm305_vm2, %v327_v63, %v7528_v2  ;;  %v389_v33 = vrot.slane %v5848_v4, 3 }
  0x45   : > { %7591 = vst [vmem:[#allocation13_spill] sm:$0xff] %v5823_v52  ;;  %7592 = vst [vmem:[#allocation14_spill] sm:$0xff] %v5839_v61  ;;  %v7522_v20 = vrot.slane %v5851_v5, 1  ;;  %v7525_v34 = vrot.slane %v5851_v5, 3  ;;  %v7601_v45 = vrot.slane %v5851_v5, 2 }
  0x46   : > { %4284 = vmatpush3.bf16.msra.mxu0 %v5101_v14  ;;  %v275_v14 = vrot.slane %v5848_v4, 1 }
  0x47   : > { %4348 = vmatpush3.bf16.msra.mxu1 %v5102_v15  ;;  %4285 = vmatprep.subr.bf16.mxu0 %v5103_v42  ;;  %v5858_v15 = vsel %vm305_vm2, %v326_v58, %v327_v63  ;;  %v5893_v58 = vsel %vm362_vm1, %v388_v30, %v389_v33  ;;  %v5915_v30 = vld [vmem:[%s5553_s28 + $0x98] sm:$0xff] }
  0x48   : > { %2592 = vmatmul.mubr.bf16.gmra.mxu0 %v5711_v55  ;;  %4349 = vmatprep.subr.bf16.mxu1 %v5104_v50  ;;  %v5871_v28 = vsel %vm248_vm0, %v274_v6, %v275_v14  ;;  %v5886_v42 = vsel %vm248_vm0, %v275_v14, %v7522_v20  ;;  %v5905_v63 = vpack.c.bf16 %v5863_v16, %v5858_v15  ;;  %v331_v6 = vrot.slane %v5844_v3, 2  ;;  %v5110_v14 = vld [vmem:[%s7519_s1 + $0x190] sm:$0xff]   ;;  %v5924_v20 = vld [vmem:[%s5553_s28 + $0xa0] sm:$0xf] }
  0x49   : > { %2689 = vmatmul.mubr.bf16.gmra.mxu1 %v5726_v1  ;;  %2599 = vmatprep.mubr.bf16.mxu0 %v5756_v12  ;;  %7593 = vst [vmem:[#allocation15_spill] sm:$0xff] %v5871_v28  ;;  %7594 = vst [vmem:[#allocation16_spill] sm:$0xff] %v5886_v42  ;;  %v5890_v50 = vpack.c.bf16 %v5886_v42, %v5871_v28  ;;  %v7531_v41 = vrot.slane %v5924_v20, 1  ;;  %v394_v2 = vrot.slane %v5915_v30, 3  ;;  %v5985_v42 = vld [vmem:[%s5553_s28 + $0xb0] sm:$0xff] }
  0x4a   : > { %2696 = vmatprep.mubr.bf16.mxu1 %v5760_v13  ;;  %4286 = vmatpush3.bf16.msra.mxu0 %v5105_v59  ;;  %v5898_v59 = vsel %vm362_vm1, %v389_v33, %v7525_v34  ;;  %7597 = vst [vmem:[#allocation19_spill] sm:$0xff] %v5924_v20  ;;  %v280_v34 = vrot.slane %v5915_v30, 1  ;;  %v5988_v28 = vld [vmem:[%s5553_s28 + $0xb8] sm:$0xf]  ;;  %v399_v8 = vrot.slane %v5985_v42, 3 }
  0x4b   : > { %4350 = vmatpush3.bf16.msra.mxu1 %v5106_v60  ;;  %4287 = vmatprep.subr.bf16.mxu0 %v5107_v21  ;;  %7595 = vst [vmem:[#allocation17_spill] sm:$0xff] %v5890_v50  ;;  %v5109_v60 = vld [vmem:[%s7519_s1 + $0x110] sm:$0xff]   ;;  %v5919_v33 = vpack.c.bf16 %v5898_v59, %v5893_v58  ;;  %v7548_v44 = vrot.slane %v5988_v28, 1 }
  0x4c   : > { %4351 = vmatprep.subr.bf16.mxu1 %v5108_v36  ;;  %v5912_v21 = vld [vmem:[%s5553_s28 + $0x90] sm:$0xff]  ;;  %v332_v36 = vrot.slane %v5848_v4, 2  ;;  %v5950_v39 = vsel %vm248_vm0, %v280_v34, %v7531_v41 }
  0x4d   : > { %7596 = vst [vmem:[#allocation18_spill] sm:$0xff] %v5919_v33  ;;  %v279_v35 = vrot.slane %v5912_v21, 1  ;;  %7599 = vst [vmem:[#allocation21_spill] sm:$0xff] %v5950_v39 }
  0x4e   : > { %4288 = vmatpush3.bf16.msra.mxu0 %v5109_v60  ;;  %v393_v60 = vrot.slane %v5912_v21, 3  ;;  %v5959_v40 = vsel %vm305_vm2, %v332_v36, %v7601_v45 }
  0x4f   : > { %4352 = vmatpush3.bf16.msra.mxu1 %v5110_v14  ;;  %4289 = vmatprep.subr.bf16.mxu0 %v5111_v62  ;;  %v5113_v14 = vld [vmem:[%s7519_s1 + $0x108] sm:$0xff]   ;;  %v5945_v43 = vsel %vm248_vm0, %v279_v35, %v280_v34  ;;  %v5954_v62 = vsel %vm305_vm2, %v331_v6, %v332_v36  ;;  %7602 = vst [vmem:[#allocation23_spill] sm:$0xff] %v5959_v40  ;;  %v7604_v6 = vrot.slane %v5924_v20, 3  ;;  %v336_v36 = vrot.slane %v5912_v21, 2 }
  0x50   : > { %2600 = vmatmul.mubr.bf16.gmra.mxu0 %v5791_v38  ;;  %7598 = vst [vmem:[#allocation20_spill] sm:$0xff] %v5945_v43  ;;  %4353 = vmatprep.subr.bf16.mxu1 %v5112_v0  ;;  %7600 = vst [vmem:[#allocation22_spill] sm:$0xff] %v5954_v62  ;;  %v5114_v35 = vld [vmem:[%s7519_s1 + $0x188] sm:$0xff]   ;;  %v5966_v34 = vpack.c.bf16 %v5848_v4, %v5844_v3  ;;  %v5969_v0 = vsel %vm362_vm1, %v393_v60, %v394_v2 }
  0x51   : > { %2607 = vmatprep.mubr.bf16.mxu0 %v5823_v52  ;;  %2697 = vmatmul.mubr.bf16.gmra.mxu1 %v5819_v51  ;;  %7603 = vst [vmem:[#allocation24_spill] sm:$0xff] %v5969_v0  ;;  %v5974_v41 = vsel %vm362_vm1, %v394_v2, %v7604_v6  ;;  %v5978_v45 = vpack.c.bf16 %v5950_v39, %v5945_v43  ;;  %v337_v2 = vrot.slane %v5915_v30, 2  ;;  %v285_v39 = vrot.slane %v5985_v42, 1 }
  0x52   : > { %2704 = vmatprep.mubr.bf16.mxu1 %v5839_v61  ;;  %4290 = vmatpush3.bf16.msra.mxu0 %v5113_v14  ;;  %7605 = vst [vmem:[#allocation25_spill] sm:$0xff] %v5974_v41  ;;  %v5982_v14 = vld [vmem:[%s5553_s28 + $0xa8] sm:$0xff]  ;;  %v5992_v60 = vpack.c.bf16 %v5959_v40, %v5954_v62  ;;  %v6002_v43 = vpack.c.bf16 %v5974_v41, %v5969_v0  ;;  %v5116_v61 = vld [vmem:[%s7519_s1 + $0x1c0] sm:$0xff]  }
  0x53   : > { %7606 = vst [vmem:[#allocation26_spill] sm:$0xff] %v5978_v45  ;;  %4354 = vmatpush3.bf16.msra.mxu1 %v5114_v35  ;;  %v284_v6 = vrot.slane %v5982_v14, 1  ;;  %v5115_v35 = vld [vmem:[%s7519_s1 + $0x140] sm:$0xff]   ;;  %v398_v9 = vrot.slane %v5982_v14, 3  ;;  %v6021_v13 = vsel %vm248_vm0, %v285_v39, %v7548_v44  ;;  %v6031_v41 = vsel %vm305_vm2, %v336_v36, %v337_v2 }
  0x54   : > { %7607 = vst [vmem:[#allocation27_spill] sm:$0xff] %v6002_v43  ;;  %4291 = vmatprep.subr.bf16.mxu0 %v5115_v35  ;;  %7609 = vst [vmem:[#allocation29_spill] sm:$0xff] %v6021_v13  ;;  %v5117_v35 = vld [vmem:[%s7519_s1 + $0x100] sm:$0xff]   ;;  %4355 = vmatprep.subr.bf16.mxu1 %v5116_v61  ;;  %v430_v44 = vrot.slane %v5652_v24, 4  ;;  %v6044_v40 = vpack.c.bf16 %v5915_v30, %v5912_v21  ;;  %v7611_v36 = vrot.slane %v5988_v28, 3  ;;  %v341_v61 = vrot.slane %v5982_v14, 2 }
  0x55   : > { %v6016_v46 = vsel %vm248_vm0, %v284_v6, %v285_v39  ;;  %v7610_v6 = vrot.slane %v5924_v20, 2  ;;  %v5119_v39 = vld [vmem:[%s7519_s1 + $0x278] sm:$0xff]  }
  0x56   : > { %7608 = vst [vmem:[#allocation28_spill] sm:$0xff] %v6016_v46  ;;  %v6052_v62 = vsel %vm362_vm1, %v399_v8, %v7611_v36  ;;  %4292 = vmatpush3.bf16.msra.mxu0 %v5117_v35  ;;  %v5120_v24 = vld [vmem:[%s7519_s1 + $0x2f8] sm:$0xff]   ;;  %v433_v35 = vrot.slane %v5665_v29, 4 }
  0x57   : > { %v6036_v0 = vsel %vm305_vm2, %v337_v2, %v7610_v6  ;;  %7612 = vst [vmem:[#allocation30_spill] sm:$0xff] %v6052_v62  ;;  %v6057_v2 = vpack.c.bf16 %v6021_v13, %v6016_v46  ;;  %4405 = vmatprep.subr.bf16.mxu0 %v5119_v39  ;;  %v7558_v39 = vrot.slane %v5988_v28, 2  ;;  %v435_v13 = vrot.slane %v5704_v53, 4 }
  0x58   : > { %2608 = vmatmul.mubr.bf16.gmra.mxu0 %v5881_v37  ;;  %v6065_v6 = vpack.c.bf16 %v6036_v0, %v6031_v41  ;;  %v436_v46 = vrot.slane %v5714_v56, 4 }
  0x59   : > { %2615 = vmatprep.mubr.bf16.mxu0 %v5890_v50  ;;  %2705 = vmatmul.mubr.bf16.gmra.mxu1 %v5905_v63 }
  0x5a   : > { %2712 = vmatprep.mubr.bf16.mxu1 %v5919_v33  ;;  %v5118_v33 = vld [vmem:[%s7519_s1 + $0x180] sm:$0xff]  }
  0x5b   : > { %4356 = vmatpush3.bf16.msra.mxu1 %v5118_v33 }
  0x5c   : > { %4469 = vmatprep.subr.bf16.mxu1 %v5120_v24  ;;  %v437_v24 = vsel %vm419_vm3, %v435_v13, %v436_v46 }
  0x60   : > { %2616 = vmatmul.mubr.bf16.gmra.mxu0 %v5966_v34 }
  0x61   : > { %2623 = vmatprep.mubr.bf16.mxu0 %v5978_v45  ;;  %2713 = vmatmul.mubr.bf16.gmra.mxu1 %v5992_v60 }
  0x62   : > { %2720 = vmatprep.mubr.bf16.mxu1 %v6002_v43  ;;  %v6047_v43 = vsel %vm362_vm1, %v398_v9, %v399_v8  ;;  %v431_v9 = vrot.slane %v5655_v25, 4  ;;  %v342_v8 = vrot.slane %v5985_v42, 2 }
  0x63   : > { %v6071_v33 = vpack.c.bf16 %v6052_v62, %v6047_v43  ;;  %v438_v62 = vrot.slane %v5717_v57, 4 }
  0x64   : > { %v432_v36 = vsel %vm419_vm3, %v430_v44, %v431_v9  ;;  %v434_v25 = vsel %vm419_vm3, %v431_v9, %v433_v35  ;;  %v6087_v53 = vsel %vm305_vm2, %v341_v61, %v342_v8  ;;  %v6092_v44 = vsel %vm305_vm2, %v342_v8, %v7558_v39  ;;  %v5122_v61 = vld [vmem:[%s7519_s1 + $0x2b8] sm:$0xff]  }
  0x65   : > { %v6080_v29 = vpack.c.bf16 %v434_v25, %v432_v36  ;;  %v439_v56 = vsel %vm419_vm3, %v436_v46, %v438_v62  ;;  %v6097_v9 = vpack.c.bf16 %v5985_v42, %v5982_v14  ;;  %v6103_v13 = vpack.c.bf16 %v6092_v44, %v6087_v53  ;;  %v5121_v46 = vld [vmem:[%s7519_s1 + $0x238] sm:$0xff]   ;;  %v5123_v62 = vld [vmem:[%s7519_s1 + $0x270] sm:$0xff]   ;;  %v5127_v36 = vld [vmem:[%s7519_s1 + $0x268] sm:$0xff]  }
  0x66   : > { %v6099_v35 = vpack.c.bf16 %v439_v56, %v437_v24  ;;  %v7613_v8 = vpack.c.bf16 %v5658_v26, %v5638_v17  ;;  %v5126_v17 = vld [vmem:[%s7519_s1 + $0x2b0] sm:$0xff]   ;;  %v5128_v26 = vld [vmem:[%s7519_s1 + $0x2e8] sm:$0xff]   ;;  %v5131_v25 = vld [vmem:[%s7519_s1 + $0x260] sm:$0xff]  }
  0x67   : > { %v5130_v24 = vld [vmem:[%s7519_s1 + $0x2a8] sm:$0xff]   ;;  %v5132_v56 = vld [vmem:[%s7519_s1 + $0x2e0] sm:$0xff]  }
  0x68   : > { %2624 = vmatmul.mubr.bf16.gmra.mxu0 %v6044_v40 }
  0x69   : > { %2631 = vmatprep.mubr.bf16.mxu0 %v6057_v2  ;;  %2721 = vmatmul.mubr.bf16.gmra.mxu1 %v6065_v6 }
  0x6a   : > { %2728 = vmatprep.mubr.bf16.mxu1 %v6071_v33 }
  0x70   : > { %2632 = vmatmul.mubr.bf16.gmra.mxu0 %v6097_v9 }
  0x71   : > { %2769 = vmatprep.mubr.bf16.mxu0 %v5622_v7  ;;  %2729 = vmatmul.mubr.bf16.gmra.mxu1 %v6103_v13  ;;  %v5124_v7 = vld [vmem:[%s7519_s1 + $0x2f0] sm:$0xff]  }
  0x72   : > { %2866 = vmatprep.mubr.bf16.mxu1 %v5646_v22  ;;  %v5125_v22 = vld [vmem:[%s7519_s1 + $0x230] sm:$0xff]  }
  0x78   : > { %2770 = vmatmul.mubr.bf16.vlgmr.msra.gmra.mxu0 %v7613_v8  ;;  %v5136_v8 = vld [vmem:[%s7519_s1 + $0x2d8] sm:$0xff]  }
  0x79   : > { %4406 = vmatpush3.bf16.msra.mxu0 %v5121_v46  ;;  %2777 = vmatprep.mubr.bf16.mxu0 %v5711_v55  ;;  %v5133_v46 = vld [vmem:[%s7519_s1 + $0x220] sm:$0xff]  }
  0x7a   : > { %2867 = vmatmul.mubr.bf16.vlgmr.msra.gmra.mxu1 %v5640_v18  ;;  %4407 = vmatprep.subr.bf16.mxu0 %v5123_v62  ;;  %v5129_v18 = vld [vmem:[%s7519_s1 + $0x228] sm:$0xff]   ;;  %v5134_v62 = vld [vmem:[%s7519_s1 + $0x2a0] sm:$0xff]  }
  0x7b   : > { %4470 = vmatpush3.bf16.msra.mxu1 %v5122_v61  ;;  %2874 = vmatprep.mubr.bf16.mxu1 %v5726_v1  ;;  %v5135_v61 = vld [vmem:[%s7519_s1 + $0x258] sm:$0xff]  }
  0x7c   : > { %4471 = vmatprep.subr.bf16.mxu1 %v5124_v7  ;;  %v5137_v7 = vld [vmem:[%s7519_s1 + $0x218] sm:$0xff]  }
  0x7d   : > { %4408 = vmatpush3.bf16.msra.mxu0 %v5125_v22  ;;  %v5139_v22 = vld [vmem:[%s7519_s1 + $0x250] sm:$0xff]  }
  0x7e   : > { %4409 = vmatprep.subr.bf16.mxu0 %v5127_v36  ;;  %v5138_v36 = vld [vmem:[%s7519_s1 + $0x298] sm:$0xff]  }
  0x7f   : > { %4472 = vmatpush3.bf16.msra.mxu1 %v5126_v17  ;;  %v5140_v17 = vld [vmem:[%s7519_s1 + $0x2d0] sm:$0xff]  }
  0x80   : > { %2778 = vmatmul.mubr.bf16.gmra.mxu0 %v5773_v27  ;;  %4473 = vmatprep.subr.bf16.mxu1 %v5128_v26  ;;  %v5141_v26 = vld [vmem:[%s7519_s1 + $0x210] sm:$0xff]  }
  0x81   : > { %2785 = vmatprep.mubr.bf16.mxu0 %v5791_v38  ;;  %4410 = vmatpush3.bf16.msra.mxu0 %v5129_v18  ;;  %v5143_v18 = vld [vmem:[%s7519_s1 + $0x248] sm:$0xff]  }
  0x82   : > { %2875 = vmatmul.mubr.bf16.gmra.mxu1 %v5691_v47  ;;  %4411 = vmatprep.subr.bf16.mxu0 %v5131_v25  ;;  %v440_v25 = vrot.slane %v5771_v23, 4  ;;  %v5147_v23 = vld [vmem:[%s7519_s1 + $0x240] sm:$0xff]  }
  0x83   : > { %2882 = vmatprep.mubr.bf16.mxu1 %v5819_v51  ;;  %4474 = vmatpush3.bf16.msra.mxu1 %v5130_v24  ;;  %v5142_v24 = vld [vmem:[%s7519_s1 + $0x290] sm:$0xff]  }
  0x84   : > { %4475 = vmatprep.subr.bf16.mxu1 %v5132_v56  ;;  %v441_v56 = vrot.slane %v5778_v31, 4  ;;  %v5146_v31 = vld [vmem:[%s7519_s1 + $0x288] sm:$0xff]  }
  0x85   : > { %4412 = vmatpush3.bf16.msra.mxu0 %v5133_v46  ;;  %v5144_v46 = vld [vmem:[%s7519_s1 + $0x2c8] sm:$0xff]  }
  0x86   : > { %4413 = vmatprep.subr.bf16.mxu0 %v5135_v61  ;;  %v5145_v61 = vld [vmem:[%s7519_s1 + $0x208] sm:$0xff]  }
  0x87   : > { %4476 = vmatpush3.bf16.msra.mxu1 %v5134_v62  ;;  %v443_v62 = vrot.slane %v5781_v32, 4 }
  0x88   : > { %2786 = vmatmul.mubr.bf16.gmra.mxu0 %v6080_v29  ;;  %4477 = vmatprep.subr.bf16.mxu1 %v5136_v8  ;;  %v5148_v8 = vld [vmem:[%s7519_s1 + $0x2c0] sm:$0xff]  }
  0x89   : > { %2793 = vmatprep.mubr.bf16.mxu0 %v5881_v37  ;;  %4414 = vmatpush3.bf16.msra.mxu0 %v5137_v7  ;;  %v442_v7 = vsel %vm419_vm3, %v440_v25, %v441_v56  ;;  %v445_v25 = vrot.slane %v5844_v3, 4 }
  0x8a   : > { %2883 = vmatmul.mubr.bf16.gmra.mxu1 %v5756_v12  ;;  %4415 = vmatprep.subr.bf16.mxu0 %v5139_v22  ;;  %v444_v22 = vsel %vm419_vm3, %v441_v56, %v443_v62  ;;  %v446_v56 = vrot.slane %v5848_v4, 4  ;;  %v450_v4 = vrot.slane %v5912_v21, 4 }
  0x8b   : > { %2890 = vmatprep.mubr.bf16.mxu1 %v5905_v63  ;;  %4478 = vmatpush3.bf16.msra.mxu1 %v5138_v36  ;;  %v5149_v36 = vld [vmem:[%s7519_s1 + $0x200] sm:$0xff]  }
  0x8c   : > { %4479 = vmatprep.subr.bf16.mxu1 %v5140_v17  ;;  %v5151_v17 = vld [vmem:[%s7519_s1 + $0x378] sm:$0xff]   ;;  %v447_v3 = vsel %vm419_vm3, %v445_v25, %v446_v56 }
  0x8d   : > { %4416 = vmatpush3.bf16.msra.mxu0 %v5141_v26  ;;  %v5150_v26 = vld [vmem:[%s7519_s1 + $0x280] sm:$0xff]  }
  0x8e   : > { %4417 = vmatprep.subr.bf16.mxu0 %v5143_v18  ;;  %v6225_v18 = vpack.c.bf16 %v444_v22, %v442_v7  ;;  %v6248_v7 = vld [vmem:[%s5553_s28 + $0xc8] sm:$0xff]  ;;  %v6251_v22 = vld [vmem:[%s5553_s28 + $0xd0] sm:$0xf] }
  0x8f   : > { %4480 = vmatpush3.bf16.msra.mxu1 %v5142_v24  ;;  %v5152_v24 = vld [vmem:[%s7519_s1 + $0x3f8] sm:$0xff]   ;;  %v487_v21 = vrot.slane %v6248_v7, 2 }
  0x90   : > { %2794 = vmatmul.mubr.bf16.gmra.mxu0 %v6099_v35  ;;  %4481 = vmatprep.subr.bf16.mxu1 %v5144_v46  ;;  %v448_v46 = vrot.slane %v5851_v5, 4 }
  0x91   : > { %2801 = vmatprep.mubr.bf16.mxu0 %v5966_v34  ;;  %4418 = vmatpush3.bf16.msra.mxu0 %v5145_v61  ;;  %v451_v61 = vrot.slane %v5915_v30, 4 }
  0x92   : > { %2891 = vmatmul.mubr.bf16.gmra.mxu1 %v5823_v52  ;;  %4419 = vmatprep.subr.bf16.mxu0 %v5147_v23  ;;  %v449_v62 = vsel %vm419_vm3, %v446_v56, %v448_v46  ;;  %v6242_v23 = vld [vmem:[%s5553_s28 + $0xc0] sm:$0xff]  ;;  %v455_v46 = vrot.slane %v5982_v14, 4 }
  0x93   : > { %2898 = vmatprep.mubr.bf16.mxu1 %v5992_v60  ;;  %4482 = vmatpush3.bf16.msra.mxu1 %v5146_v31  ;;  %v6244_v31 = vpack.c.bf16 %v449_v62, %v447_v3  ;;  %v452_v30 = vsel %vm419_vm3, %v450_v4, %v451_v61  ;;  %v6275_v3 = vpack.c.bf16 %v6248_v7, %v6242_v23  ;;  %v456_v62 = vrot.slane %v5985_v42, 4 }
  0x94   : > { %4483 = vmatprep.subr.bf16.mxu1 %v5148_v8  ;;  %v453_v8 = vrot.slane %v5924_v20, 4  ;;  %v458_v4 = vrot.slane %v5988_v28, 4 }
  0x95   : > { %4420 = vmatpush3.bf16.msra.mxu0 %v5149_v36  ;;  %v486_v36 = vrot.slane %v6242_v23, 2  ;;  %v457_v14 = vsel %vm419_vm3, %v455_v46, %v456_v62  ;;  %v605_v46 = vrot.slane %v5746_v10, 1  ;;  %v5154_v10 = vld [vmem:[%s7519_s1 + $0x3b8] sm:$0xff]  }
  0x96   : > { %4533 = vmatprep.subr.bf16.mxu0 %v5151_v17  ;;  %v7557_v17 = vrot.slane %v6251_v22, 2  ;;  %v459_v42 = vsel %vm419_vm3, %v456_v62, %v458_v4  ;;  %v606_v62 = vrot.slane %v5751_v11, 1  ;;  %v5153_v4 = vld [vmem:[%s7519_s1 + $0x338] sm:$0xff]   ;;  %v618_v11 = vrot.slane %v5828_v54, 1 }
  0x97   : > { %4484 = vmatpush3.bf16.msra.mxu1 %v5150_v26  ;;  %v454_v26 = vsel %vm419_vm3, %v451_v61, %v453_v8  ;;  %v479_v61 = vrot.slane %v6242_v23, 1  ;;  %v615_v54 = vrot.slane %v5863_v16, 1  ;;  %v5161_v16 = vld [vmem:[%s7519_s1 + $0x328] sm:$0xff]  }
  0x98   : > { %2802 = vmatmul.mubr.bf16.gmra.mxu0 %v6225_v18  ;;  %4597 = vmatprep.subr.bf16.mxu1 %v5152_v24  ;;  %v6262_v25 = vpack.c.bf16 %v454_v26, %v452_v30  ;;  %v6265_v24 = vsel %vm305_vm2, %v486_v36, %v487_v21  ;;  %v6270_v56 = vsel %vm305_vm2, %v487_v21, %v7557_v17  ;;  %v480_v36 = vrot.slane %v6248_v7, 1 }
  0x99   : > { %2809 = vmatprep.mubr.bf16.mxu0 %v6044_v40  ;;  %v6282_v8 = vpack.c.bf16 %v6270_v56, %v6265_v24  ;;  %v7559_v21 = vrot.slane %v6251_v22, 1  ;;  %v6300_v17 = vpack.c.bf16 %v459_v42, %v457_v14  ;;  %v7616_v14 = vrot.slane %v5781_v32, 2 }
  0x9a   : > { %2899 = vmatmul.mubr.bf16.gmra.mxu1 %v5890_v50  ;;  %v6293_v30 = vsel %vm248_vm0, %v479_v61, %v480_v36  ;;  %v5155_v61 = vld [vmem:[%s7519_s1 + $0x370] sm:$0xff]  }
  0x9b   : > { %2906 = vmatprep.mubr.bf16.mxu1 %v6065_v6  ;;  %7614 = vst [vmem:[#allocation31_spill] sm:$0xff] %v6293_v30  ;;  %v6298_v26 = vsel %vm248_vm0, %v480_v36, %v7559_v21  ;;  %v6319_v36 = vsel %vm248_vm0, %v605_v46, %v606_v62  ;;  %v630_v42 = vrot.slane %v7616_v14, 1  ;;  %v614_v46 = vrot.slane %v5858_v15, 1  ;;  %v5160_v15 = vld [vmem:[%s7519_s1 + $0x3e8] sm:$0xff]  }
  0x9c   : > { %7615 = vst [vmem:[#allocation32_spill] sm:$0xff] %v6298_v26  ;;  %v6304_v39 = vpack.c.bf16 %v6298_v26, %v6293_v30  ;;  %v643_v21 = vrot.slane %v5893_v58, 1  ;;  %v7618_v58 = vrot.slane %v5781_v32, 3 }
  0x9d   : > { %v631_v26 = vsel %vm248_vm0, %v615_v54, %v630_v42  ;;  %v5165_v42 = vld [vmem:[%s7519_s1 + $0x320] sm:$0xff]  }
  0xa0   : > { %2810 = vmatmul.mubr.bf16.gmra.mxu0 %v6244_v31 }
  0xa1   : > { %2817 = vmatprep.mubr.bf16.mxu0 %v6097_v9 }
  0xa2   : > { %2907 = vmatmul.mubr.bf16.gmra.mxu1 %v5978_v45 }
  0xa3   : > { %2914 = vmatprep.mubr.bf16.mxu1 %v6103_v13 }
  0xa8   : > { %2818 = vmatmul.mubr.bf16.gmra.mxu0 %v6262_v25 }
  0xa9   : > { %2825 = vmatprep.mubr.bf16.mxu0 %v6275_v3 }
  0xaa   : > { %2915 = vmatmul.mubr.bf16.gmra.mxu1 %v6057_v2 }
  0xab   : > { %2922 = vmatprep.mubr.bf16.mxu1 %v6282_v8 }
  0xb0   : > { %2826 = vmatmul.mubr.bf16.gmra.mxu0 %v6300_v17 }
  0xb1   : > { %2963 = vmatprep.mubr.bf16.mxu0 %v5773_v27  ;;  %v617_v27 = vrot.slane %v5814_v49, 1  ;;  %v5157_v49 = vld [vmem:[%s7519_s1 + $0x330] sm:$0xff]  }
  0xb2   : > { %2923 = vmatmul.mubr.bf16.gmra.mxu1 %v6304_v39 }
  0xb3   : > { %3060 = vmatprep.mubr.bf16.mxu1 %v5691_v47  ;;  %v5156_v47 = vld [vmem:[%s7519_s1 + $0x3f0] sm:$0xff]  }
  0xb8   : > { %2964 = vmatmul.mubr.bf16.vlgmr.msra.gmra.mxu0 %v5642_v19  ;;  %v5159_v19 = vld [vmem:[%s7519_s1 + $0x368] sm:$0xff]  }
  0xb9   : > { %4534 = vmatpush3.bf16.msra.mxu0 %v5153_v4  ;;  %2971 = vmatprep.mubr.bf16.mxu0 %v6080_v29  ;;  %v5158_v4 = vld [vmem:[%s7519_s1 + $0x3b0] sm:$0xff]  }
  0xba   : > { %3061 = vmatmul.mubr.bf16.vlgmr.msra.gmra.mxu1 %v5711_v55  ;;  %4535 = vmatprep.subr.bf16.mxu0 %v5155_v61  ;;  %v7617_v55 = vrot.slane %v5717_v57, 3 }
  0xbb   : > { %4598 = vmatpush3.bf16.msra.mxu1 %v5154_v10  ;;  %3068 = vmatprep.mubr.bf16.mxu1 %v5756_v12  ;;  %v5163_v10 = vld [vmem:[%s7519_s1 + $0x360] sm:$0xff]  }
  0xbc   : > { %4599 = vmatprep.subr.bf16.mxu1 %v5156_v47  ;;  %v624_v61 = vrot.slane %v7617_v55, 1  ;;  %v619_v47 = vsel %vm248_vm0, %v617_v27, %v618_v11  ;;  %v632_v27 = vrot.slane %v7618_v58, 1  ;;  %v7622_v58 = vrot.slane %v5851_v5, 2  ;;  %v7623_v55 = vld [vmem:[#allocation24_spill] sm:$0xff] }
  0xbd   : > { %4536 = vmatpush3.bf16.msra.mxu0 %v5157_v49  ;;  %v5162_v49 = vld [vmem:[%s7519_s1 + $0x3a8] sm:$0xff]   ;;  %v663_v30 = vrot.slane %v7623_v55, 1  ;;  %v5169_v55 = vld [vmem:[%s7519_s1 + $0x318] sm:$0xff]  }
  0xbe   : > { %4537 = vmatprep.subr.bf16.mxu0 %v5159_v19  ;;  %v6358_v14 = vsel %vm248_vm0, %v606_v62, %v624_v61  ;;  %v616_v19 = vsel %vm248_vm0, %v614_v46, %v615_v54  ;;  %v5164_v62 = vld [vmem:[%s7519_s1 + $0x3e0] sm:$0xff]   ;;  %v644_v61 = vrot.slane %v5898_v59, 1  ;;  %v7620_v46 = vld [vmem:[#allocation22_spill] sm:$0xff] }
  0xbf   : > { %4600 = vmatpush3.bf16.msra.mxu1 %v5158_v4  ;;  %v6375_v4 = vpack.c.bf16 %v631_v26, %v616_v19  ;;  %v640_v54 = vrot.slane %v7620_v46, 1  ;;  %v633_v26 = vsel %vm248_vm0, %v618_v11, %v632_v27  ;;  %v7621_v19 = vld [vmem:[#allocation23_spill] sm:$0xff]  ;;  %v660_v11 = vrot.slane %v6031_v41, 1  ;;  %v5168_v27 = vld [vmem:[%s7519_s1 + $0x3d8] sm:$0xff]  }
  0xc0   : > { %2972 = vmatmul.mubr.bf16.gmra.mxu0 %v5693_v48  ;;  %4601 = vmatprep.subr.bf16.mxu1 %v5160_v15  ;;  %v5167_v15 = vld [vmem:[%s7519_s1 + $0x358] sm:$0xff]   ;;  %v641_v59 = vrot.slane %v7621_v19, 1  ;;  %v6396_v46 = vpack.c.bf16 %v633_v26, %v619_v47  ;;  %v5171_v47 = vld [vmem:[%s7519_s1 + $0x350] sm:$0xff]   ;;  %v645_v41 = vsel %vm248_vm0, %v643_v21, %v644_v61 }
  0xc1   : > { %7619 = vst [vmem:[#allocation33_spill] sm:$0xff] %v6375_v4  ;;  %2979 = vmatprep.mubr.bf16.mxu0 %v6099_v35  ;;  %4538 = vmatpush3.bf16.msra.mxu0 %v5161_v16  ;;  %v650_v16 = vrot.slane %v7622_v58, 1  ;;  %v7625_v4 = vld [vmem:[#allocation25_spill] sm:$0xff]  ;;  %v5172_v21 = vld [vmem:[%s7519_s1 + $0x3d0] sm:$0xff]   ;;  %v680_v58 = vrot.slane %v6087_v53, 1 }
  0xc2   : > { %3069 = vmatmul.mubr.bf16.gmra.mxu1 %v5791_v38  ;;  %4539 = vmatprep.subr.bf16.mxu0 %v5163_v10  ;;  %v5166_v10 = vld [vmem:[%s7519_s1 + $0x3a0] sm:$0xff]   ;;  %7624 = vst [vmem:[#allocation22_spill] sm:$0xff] %v6396_v46  ;;  %v664_v12 = vrot.slane %v7625_v4, 1  ;;  %v5170_v4 = vld [vmem:[%s7519_s1 + $0x398] sm:$0xff]   ;;  %v642_v26 = vsel %vm248_vm0, %v640_v54, %v641_v59  ;;  %v7629_v54 = vrot.slane %v5851_v5, 3  ;;  %v7641_v46 = vld [vmem:[#allocation18_spill] sm:$0xff] }
  0xc3   : > { %3076 = vmatprep.mubr.bf16.mxu1 %v5823_v52  ;;  %4602 = vmatpush3.bf16.msra.mxu1 %v5162_v49  ;;  %v7626_v49 = vrot.slane %v5924_v20, 2  ;;  %v5179_v53 = vld [vmem:[%s7519_s1 + $0x340] sm:$0xff]  }
  0xc4   : > { %4603 = vmatprep.subr.bf16.mxu1 %v5164_v62  ;;  %v661_v62 = vrot.slane %v6036_v0, 1  ;;  %v5173_v0 = vld [vmem:[%s7519_s1 + $0x310] sm:$0xff]  }
  0xc5   : > { %4540 = vmatpush3.bf16.msra.mxu0 %v5165_v42  ;;  %v670_v19 = vrot.slane %v7626_v49, 1  ;;  %v651_v42 = vsel %vm248_vm0, %v641_v59, %v650_v16  ;;  %v652_v59 = vrot.slane %v7629_v54, 1  ;;  %v7630_v16 = vld [vmem:[#allocation30_spill] sm:$0xff] }
  0xc6   : > { %4541 = vmatprep.subr.bf16.mxu0 %v5167_v15  ;;  %v7627_v15 = vld [vmem:[#allocation8_spill] sm:$0xff]  ;;  %v6423_v49 = vpack.c.bf16 %v651_v42, %v642_v26  ;;  %v7631_v26 = vrot.slane %v5988_v28, 2 }
  0xc7   : > { %4604 = vmatpush3.bf16.msra.mxu1 %v5166_v10  ;;  %v653_v54 = vsel %vm248_vm0, %v644_v61, %v652_v59  ;;  %v665_v61 = vsel %vm248_vm0, %v663_v30, %v664_v12  ;;  %v662_v59 = vsel %vm248_vm0, %v660_v11, %v661_v62  ;;  %v5180_v30 = vld [vmem:[%s7519_s1 + $0x3c0] sm:$0xff]   ;;  %v6475_v11 = vld [vmem:[%s5553_s28 + $0xd8] sm:$0xff] }
  0xc8   : > { %2980 = vmatmul.mubr.bf16.gmra.mxu0 %v7627_v15  ;;  %4605 = vmatprep.subr.bf16.mxu1 %v5168_v27  ;;  %7628 = vst [vmem:[#allocation23_spill] sm:$0xff] %v6423_v49  ;;  %v5175_v27 = vld [vmem:[%s7519_s1 + $0x348] sm:$0xff]   ;;  %v690_v42 = vrot.slane %v7631_v26, 1  ;;  %v6447_v10 = vpack.c.bf16 %v653_v54, %v645_v41  ;;  %v493_v26 = vrot.slane %v6242_v23, 3  ;;  %v494_v49 = vrot.slane %v6248_v7, 3 }
  0xc9   : > { %2987 = vmatprep.mubr.bf16.mxu0 %v6225_v18  ;;  %4542 = vmatpush3.bf16.msra.mxu0 %v5169_v55  ;;  %v5174_v55 = vld [vmem:[%s7519_s1 + $0x390] sm:$0xff]   ;;  %v5178_v41 = vld [vmem:[%s7519_s1 + $0x388] sm:$0xff]  }
  0xca   : > { %3077 = vmatmul.mubr.bf16.gmra.mxu1 %v5881_v37  ;;  %4543 = vmatprep.subr.bf16.mxu0 %v5171_v47  ;;  %v5176_v47 = vld [vmem:[%s7519_s1 + $0x3c8] sm:$0xff]   ;;  %7632 = vst [vmem:[#allocation24_spill] sm:$0xff] %v6447_v10  ;;  %v681_v10 = vrot.slane %v6092_v44, 1  ;;  %v5183_v44 = vld [vmem:[%s7519_s1 + $0x478] sm:$0xff]  }
  0xcb   : > { %3084 = vmatprep.mubr.bf16.mxu1 %v5890_v50  ;;  %4606 = vmatpush3.bf16.msra.mxu1 %v5170_v4  ;;  %v5177_v4 = vld [vmem:[%s7519_s1 + $0x308] sm:$0xff]   ;;  %v496_v50 = vrot.slane %v6251_v22, 3 }
  0xcc   : > { %4607 = vmatprep.subr.bf16.mxu1 %v5172_v21  ;;  %v7633_v21 = vrot.slane %v5924_v20, 3  ;;  %v7634_v54 = vld [vmem:[#allocation14_spill] sm:$0xff]  ;;  %v682_v20 = vsel %vm248_vm0, %v680_v58, %v681_v10  ;;  %v500_v58 = vrot.slane %v6242_v23, 4 }
  0xcd   : > { %4544 = vmatpush3.bf16.msra.mxu0 %v5173_v0 }
  0xce   : > { %4545 = vmatprep.subr.bf16.mxu0 %v5175_v27  ;;  %v672_v0 = vrot.slane %v7633_v21, 1  ;;  %v671_v27 = vsel %vm248_vm0, %v661_v62, %v670_v19  ;;  %v6478_v21 = vld [vmem:[%s5553_s28 + $0xe0] sm:$0xff] }
  0xcf   : > { %4608 = vmatpush3.bf16.msra.mxu1 %v5174_v55  ;;  %v6470_v55 = vpack.c.bf16 %v671_v27, %v662_v59  ;;  %v5181_v19 = vld [vmem:[%s7519_s1 + $0x300] sm:$0xff]   ;;  %v6488_v59 = vld [vmem:[%s5553_s28 + $0xe8] sm:$0xf]  ;;  %v700_v27 = vrot.slane %v6265_v24, 1 }
  0xd0   : > { %2988 = vmatmul.mubr.bf16.gmra.mxu0 %v7634_v54  ;;  %4609 = vmatprep.subr.bf16.mxu1 %v5176_v47  ;;  %v673_v62 = vsel %vm248_vm0, %v664_v12, %v672_v0  ;;  %v7636_v47 = vrot.slane %v6251_v22, 2  ;;  %v5182_v12 = vld [vmem:[%s7519_s1 + $0x380] sm:$0xff]   ;;  %v701_v0 = vrot.slane %v6270_v56, 1  ;;  %v7639_v56 = vrot.slane %v6047_v43, 1 }
  0xd1   : > { %7635 = vst [vmem:[#allocation25_spill] sm:$0xff] %v6470_v55  ;;  %2995 = vmatprep.mubr.bf16.mxu0 %v6244_v31  ;;  %4546 = vmatpush3.bf16.msra.mxu0 %v5177_v4  ;;  %v6493_v4 = vpack.c.bf16 %v673_v62, %v665_v61  ;;  %v5184_v61 = vld [vmem:[%s7519_s1 + $0x4f8] sm:$0xff]   ;;  %v511_v55 = vrot.slane %v6478_v21, 1 }
  0xd2   : > { %v710_v52 = vrot.slane %v7636_v47, 1  ;;  %3085 = vmatmul.mubr.bf16.gmra.mxu1 %v5966_v34  ;;  %4547 = vmatprep.subr.bf16.mxu0 %v5179_v53  ;;  %v495_v47 = vsel %vm362_vm1, %v493_v26, %v494_v49  ;;  %v497_v53 = vsel %vm362_vm1, %v494_v49, %v496_v50  ;;  %v513_v49 = vrot.slane %v6488_v59, 1 }
  0xd3   : > { %7637 = vst [vmem:[#allocation8_spill] sm:$0xff] %v6493_v4  ;;  %3092 = vmatprep.mubr.bf16.mxu1 %v5978_v45  ;;  %4610 = vmatpush3.bf16.msra.mxu1 %v5178_v41  ;;  %v703_v62 = vrot.slane %v495_v47, 1  ;;  %v704_v24 = vrot.slane %v497_v53, 1  ;;  %v510_v41 = vrot.slane %v6475_v11, 1  ;;  %v7638_v45 = vrot.slane %v7630_v16, 1 }
  0xd4   : > { %4611 = vmatprep.subr.bf16.mxu1 %v5180_v30  ;;  %v7640_v30 = vrot.slane %v5988_v28, 3  ;;  %v711_v23 = vsel %vm248_vm0, %v701_v0, %v710_v52 }
  0xd5   : > { %4548 = vmatpush3.bf16.msra.mxu0 %v5181_v19  ;;  %v685_v26 = vsel %vm248_vm0, %v7639_v56, %v7638_v45  ;;  %v691_v19 = vsel %vm248_vm0, %v681_v10, %v690_v42  ;;  %v7642_v43 = vmov %v7638_v45  ;;  %v501_v10 = vrot.slane %v6248_v7, 4  ;;  %v7645_v7 = vld [vmem:[#allocation27_spill] sm:$0xff] }
  0xd6   : > { %4661 = vmatprep.subr.bf16.mxu0 %v5183_v44  ;;  %v692_v4 = vrot.slane %v7640_v30, 1  ;;  %v6519_v44 = vpack.c.bf16 %v691_v19, %v682_v20  ;;  %v512_v42 = vsel %vm248_vm0, %v510_v41, %v511_v55  ;;  %v514_v20 = vsel %vm248_vm0, %v511_v55, %v513_v49 }
  0xd7   : > { %4612 = vmatpush3.bf16.msra.mxu1 %v5182_v12  ;;  %v717_v56 = vrot.slane %v512_v42, 1  ;;  %v718_v16 = vrot.slane %v514_v20, 1  ;;  %v712_v30 = vrot.slane %v496_v50, 1  ;;  %v502_v50 = vsel %vm419_vm3, %v500_v58, %v501_v10 }
  0xd8   : > { %2996 = vmatmul.mubr.bf16.gmra.mxu0 %v7641_v46  ;;  %4725 = vmatprep.subr.bf16.mxu1 %v5184_v61  ;;  %v693_v45 = vsel %vm248_vm0, %v7642_v43, %v692_v4  ;;  %v503_v61 = vrot.slane %v6251_v22, 4  ;;  %v705_v4 = vsel %vm248_vm0, %v703_v62, %v704_v24  ;;  %v702_v43 = vsel %vm248_vm0, %v700_v27, %v701_v0 }
  0xd9   : > { %3003 = vmatprep.mubr.bf16.mxu0 %v6262_v25  ;;  %v6526_v12 = vpack.c.bf16 %v693_v45, %v685_v26  ;;  %v713_v26 = vsel %vm248_vm0, %v704_v24, %v712_v30  ;;  %v6541_v41 = vpack.c.bf16 %v711_v23, %v702_v43  ;;  %v728_v62 = vrot.slane %v513_v49, 1  ;;  %v5193_v23 = vld [vmem:[%s7519_s1 + $0x428] sm:$0xff]  }
  0xda   : > { %3093 = vmatmul.mubr.bf16.gmra.mxu1 %v6044_v40  ;;  %v6536_v19 = vpack.c.bf16 %v713_v26, %v705_v4  ;;  %v504_v55 = vsel %vm419_vm3, %v501_v10, %v503_v61  ;;  %v719_v27 = vsel %vm248_vm0, %v717_v56, %v718_v16  ;;  %v6552_v0 = vpack.c.bf16 %v514_v20, %v512_v42  ;;  %v5185_v10 = vld [vmem:[%s7519_s1 + $0x438] sm:$0xff]   ;;  %v6591_v61 = vld [vmem:[%s7520_s2] ss:$0 sm:$0xff]  ;;  %v5191_v56 = vld [vmem:[%s7519_s1 + $0x468] sm:$0xff]  }
  0xdb   : > { %7643 = vst [vmem:[#allocation30_spill] sm:$0xff] %v6526_v12  ;;  %3100 = vmatprep.mubr.bf16.mxu1 %v6057_v2  ;;  %v6548_v24 = vpack.c.bf16 %v504_v55, %v502_v50  ;;  %v729_v52 = vsel %vm248_vm0, %v718_v16, %v728_v62  ;;  %v6560_v58 = vpack.c.bf16 %v497_v53, %v495_v47  ;;  %v5187_v47 = vld [vmem:[%s7519_s1 + $0x470] sm:$0xff]   ;;  %v5186_v53 = vld [vmem:[%s7519_s1 + $0x4b8] sm:$0xff]   ;;  %v5192_v4 = vld [vmem:[%s7519_s1 + $0x4e8] sm:$0xff]  }
  0xdc   : > { %7644 = vst [vmem:[#allocation14_spill] sm:$0xff] %v6536_v19  ;;  %v6554_v45 = vpack.c.bf16 %v729_v52, %v719_v27  ;;  %v6564_v49 = vpack.c.bf16 %v6478_v21, %v6475_v11  ;;  %v5190_v16 = vld [vmem:[%s7519_s1 + $0x4b0] sm:$0xff]   ;;  %v5195_v55 = vld [vmem:[%s7519_s1 + $0x460] sm:$0xff]   ;;  %v5194_v52 = vld [vmem:[%s7519_s1 + $0x4a8] sm:$0xff]  }
  0xe0   : > { %3004 = vmatmul.mubr.bf16.gmra.mxu0 %v7645_v7 }
  0xe1   : > { %3011 = vmatprep.mubr.bf16.mxu0 %v6300_v17 }
  0xe2   : > { %3101 = vmatmul.mubr.bf16.gmra.mxu1 %v6097_v9 }
  0xe3   : > { %3108 = vmatprep.mubr.bf16.mxu1 %v6304_v39 }
  0xe8   : > { %3012 = vmatmul.mubr.bf16.gmra.mxu0 %v6071_v33 }
  0xe9   : > { %3019 = vmatprep.mubr.bf16.mxu0 %v6548_v24 }
  0xea   : > { %3109 = vmatmul.mubr.bf16.gmra.mxu1 %v6275_v3 }
  0xeb   : > { %3116 = vmatprep.mubr.bf16.mxu1 %v6552_v0 }
  0xf0   : > { %3020 = vmatmul.mubr.bf16.gmra.mxu0 %v6560_v58 }
  0xf1   : > { %3157 = vmatprep.mubr.bf16.mxu0 %v5693_v48  ;;  %v5188_v48 = vld [vmem:[%s7519_s1 + $0x4f0] sm:$0xff]  }
  0xf2   : > { %3117 = vmatmul.mubr.bf16.gmra.mxu1 %v6564_v49 }
  0xf3   : > { %3254 = vmatprep.mubr.bf16.mxu1 %v5791_v38  ;;  %v5189_v38 = vld [vmem:[%s7519_s1 + $0x430] sm:$0xff]  }
  0xf8   : > { %v4165_v42 = vpop.f32.mrf.mxu0  ;;  %3158 = vmatmul.mubr.bf16.vlgmr.msra.gmra.mxu0 %v5726_v1 }
  0xf9   : > { %4662 = vmatpush3.bf16.msra.mxu0 %v5185_v10  ;;  %3165 = vmatprep.mubr.bf16.mxu0 %v7627_v15  ;;  %v4229_v20 = vpop.f32.mrf.mxu1 }
  0xfa   : > { %3255 = vmatmul.mubr.bf16.vlgmr.msra.gmra.mxu1 %v6080_v29  ;;  %v4166_v1 = vpop.f32.mrf.mxu0  ;;  %4663 = vmatprep.subr.bf16.mxu0 %v5187_v47 }
  0xfb   : > { %4726 = vmatpush3.bf16.msra.mxu1 %v5186_v53  ;;  %v4167_v15 = vadd.f32 %v4166_v1, %v4165_v42  ;;  %3262 = vmatprep.mubr.bf16.mxu1 %v5881_v37  ;;  %v4230_v29 = vpop.f32.mrf.mxu1  ;;  %v5196_v53 = vld [vmem:[%s7519_s1 + $0x4e0] sm:$0xff]  }
  0xfc   : > { %v4168_v30 = vpop.f32.mrf.mxu0  ;;  %4727 = vmatprep.subr.bf16.mxu1 %v5188_v48  ;;  %v4231_v43 = vadd.f32 %v4230_v29, %v4229_v20 }
  0xfd   : > { %v2578_v26 = vadd.f32 %v4167_v15, %v6591_v61  ;;  %4664 = vmatpush3.bf16.msra.mxu0 %v5189_v38  ;;  %v4232_v37 = vpop.f32.mrf.mxu1  ;;  %v5197_v38 = vld [vmem:[%s7519_s1 + $0x420] sm:$0xff]  }
  0xfe   : > { %v4169_v50 = vpop.f32.mrf.mxu0  ;;  %4665 = vmatprep.subr.bf16.mxu0 %v5191_v56 }
  0xff   : > { %v6610_v62 = vadd.f32 %v4231_v43, %v2578_v26  ;;  %v4170_v27 = vadd.f32 %v4169_v50, %v4168_v30  ;;  %4728 = vmatpush3.bf16.msra.mxu1 %v5190_v16  ;;  %v4233_v10 = vpop.f32.mrf.mxu1 }
 0x100   : > { %v4171_v47 = vpop.f32.mrf.mxu0  ;;  %3166 = vmatmul.mubr.bf16.gmra.mxu0 %v5819_v51  ;;  %4729 = vmatprep.subr.bf16.mxu1 %v5192_v4  ;;  %v4234_v48 = vadd.f32 %v4233_v10, %v4232_v37  ;;  %v5199_v51 = vld [vmem:[%s7519_s1 + $0x458] sm:$0xff]   ;;  %v5204_v10 = vld [vmem:[%s7519_s1 + $0x4d0] sm:$0xff]  }
 0x101   : > { %v2581_v42 = vadd.f32 %v4170_v27, %v6591_v61  ;;  %3173 = vmatprep.mubr.bf16.mxu0 %v7634_v54  ;;  %4666 = vmatpush3.bf16.msra.mxu0 %v5193_v23  ;;  %v4235_v20 = vpop.f32.mrf.mxu1  ;;  %v5198_v54 = vld [vmem:[%s7519_s1 + $0x4a0] sm:$0xff]   ;;  %v5203_v23 = vld [vmem:[%s7519_s1 + $0x450] sm:$0xff]  }
 0x102   : > { %3263 = vmatmul.mubr.bf16.gmra.mxu1 %v6099_v35  ;;  %v4172_v1 = vpop.f32.mrf.mxu0  ;;  %4667 = vmatprep.subr.bf16.mxu0 %v5195_v55  ;;  %v5200_v35 = vld [vmem:[%s7519_s1 + $0x4d8] sm:$0xff]  }
 0x103   : > { %v6628_v56 = vadd.f32 %v4234_v48, %v2581_v42  ;;  %v4173_v15 = vadd.f32 %v4172_v1, %v4171_v47  ;;  %3270 = vmatprep.mubr.bf16.mxu1 %v5966_v34  ;;  %4730 = vmatpush3.bf16.msra.mxu1 %v5194_v52  ;;  %v4236_v16 = vpop.f32.mrf.mxu1  ;;  %v5201_v34 = vld [vmem:[%s7519_s1 + $0x418] sm:$0xff]   ;;  %v5205_v42 = vld [vmem:[%s7519_s1 + $0x410] sm:$0xff]  }
 0x104   : > { %v4174_v29 = vpop.f32.mrf.mxu0  ;;  %4731 = vmatprep.subr.bf16.mxu1 %v5196_v53  ;;  %v4237_v4 = vadd.f32 %v4236_v16, %v4235_v20  ;;  %v5202_v55 = vld [vmem:[%s7519_s1 + $0x498] sm:$0xff]  }
 0x105   : > { %v2586_v30 = vadd.f32 %v4173_v15, %v6591_v61  ;;  %4668 = vmatpush3.bf16.msra.mxu0 %v5197_v38  ;;  %v4238_v26 = vpop.f32.mrf.mxu1 }
 0x106   : > { %v4175_v43 = vpop.f32.mrf.mxu0  ;;  %4669 = vmatprep.subr.bf16.mxu0 %v5199_v51 }
 0x107   : > { %v6644_v37 = vadd.f32 %v4237_v4, %v2586_v30  ;;  %v4176_v50 = vadd.f32 %v4175_v43, %v4174_v29  ;;  %4732 = vmatpush3.bf16.msra.mxu1 %v5198_v54  ;;  %v4239_v27 = vpop.f32.mrf.mxu1  ;;  %v5211_v30 = vld [vmem:[%s7519_s1 + $0x440] sm:$0xff]  }
 0x108   : > { %v4177_v52 = vpop.f32.mrf.mxu0  ;;  %3174 = vmatmul.mubr.bf16.gmra.mxu0 %v5905_v63  ;;  %4733 = vmatprep.subr.bf16.mxu1 %v5200_v35  ;;  %v4240_v53 = vadd.f32 %v4239_v27, %v4238_v26  ;;  %v5207_v63 = vld [vmem:[%s7519_s1 + $0x448] sm:$0xff]  }
 0x109   : > { %v2589_v47 = vadd.f32 %v4176_v50, %v6591_v61  ;;  %3181 = vmatprep.mubr.bf16.mxu0 %v7641_v46  ;;  %4670 = vmatpush3.bf16.msra.mxu0 %v5201_v34  ;;  %v4241_v48 = vpop.f32.mrf.mxu1  ;;  %v5206_v46 = vld [vmem:[%s7519_s1 + $0x490] sm:$0xff]   ;;  %v5210_v26 = vld [vmem:[%s7519_s1 + $0x488] sm:$0xff]   ;;  %v5212_v50 = vld [vmem:[%s7519_s1 + $0x4c0] sm:$0xff]  }
 0x10a   : > { %3271 = vmatmul.mubr.bf16.gmra.mxu1 %v6225_v18  ;;  %v4178_v38 = vpop.f32.mrf.mxu0  ;;  %4671 = vmatprep.subr.bf16.mxu0 %v5203_v23  ;;  %v5208_v18 = vld [vmem:[%s7519_s1 + $0x4c8] sm:$0xff]  }
 0x10b   : > { %v6662_v20 = vadd.f32 %v4240_v53, %v2589_v47  ;;  %v4179_v1 = vadd.f32 %v4178_v38, %v4177_v52  ;;  %3278 = vmatprep.mubr.bf16.mxu1 %v6044_v40  ;;  %4734 = vmatpush3.bf16.msra.mxu1 %v5202_v55  ;;  %v4242_v51 = vpop.f32.mrf.mxu1  ;;  %v5209_v40 = vld [vmem:[%s7519_s1 + $0x408] sm:$0xff]   ;;  %v5213_v52 = vld [vmem:[%s7519_s1 + $0x400] sm:$0xff]  }
 0x10c   : > { %v4180_v15 = vpop.f32.mrf.mxu0  ;;  %4735 = vmatprep.subr.bf16.mxu1 %v5204_v10  ;;  %v4243_v16 = vadd.f32 %v4242_v51, %v4241_v48 }
 0x10d   : > { %v2594_v54 = vadd.f32 %v4179_v1, %v6591_v61  ;;  %4672 = vmatpush3.bf16.msra.mxu0 %v5205_v42  ;;  %v4244_v29 = vpop.f32.mrf.mxu1 }
 0x10e   : > { %v4181_v35 = vpop.f32.mrf.mxu0  ;;  %4673 = vmatprep.subr.bf16.mxu0 %v5207_v63 }
 0x10f   : > { %v6678_v4 = vadd.f32 %v4243_v16, %v2594_v54  ;;  %v4182_v34 = vadd.f32 %v4181_v35, %v4180_v15  ;;  %4736 = vmatpush3.bf16.msra.mxu1 %v5206_v46  ;;  %v4245_v43 = vpop.f32.mrf.mxu1 }
 0x110   : > { %v4183_v23 = vpop.f32.mrf.mxu0  ;;  %3182 = vmatmul.mubr.bf16.gmra.mxu0 %v5992_v60  ;;  %4737 = vmatprep.subr.bf16.mxu1 %v5208_v18  ;;  %v4246_v27 = vadd.f32 %v4245_v43, %v4244_v29  ;;  %v5215_v60 = vld [vmem:[%s7519_s1 + $0x578] sm:$0xff]  }
 0x111   : > { %v2597_v55 = vadd.f32 %v4182_v34, %v6591_v61  ;;  %3189 = vmatprep.mubr.bf16.mxu0 %v7645_v7  ;;  %4674 = vmatpush3.bf16.msra.mxu0 %v5209_v40  ;;  %v4247_v10 = vpop.f32.mrf.mxu1  ;;  %v5214_v7 = vld [vmem:[%s7519_s1 + $0x480] sm:$0xff]  }
 0x112   : > { %3279 = vmatmul.mubr.bf16.gmra.mxu1 %v6244_v31  ;;  %v4184_v47 = vpop.f32.mrf.mxu0  ;;  %4675 = vmatprep.subr.bf16.mxu0 %v5211_v30  ;;  %v5216_v31 = vld [vmem:[%s7519_s1 + $0x5f8] sm:$0xff]  }
 0x113   : > { %v6696_v53 = vadd.f32 %v4246_v27, %v2597_v55  ;;  %v4185_v42 = vadd.f32 %v4184_v47, %v4183_v23  ;;  %3286 = vmatprep.mubr.bf16.mxu1 %v6097_v9  ;;  %4738 = vmatpush3.bf16.msra.mxu1 %v5210_v26  ;;  %v4248_v48 = vpop.f32.mrf.mxu1  ;;  %v524_v23 = vrot.slane %v6475_v11, 3  ;;  %v525_v55 = vrot.slane %v6478_v21, 3 }
 0x114   : > { %v4186_v38 = vpop.f32.mrf.mxu0  ;;  %4739 = vmatprep.subr.bf16.mxu1 %v5212_v50  ;;  %v4249_v1 = vadd.f32 %v4248_v48, %v4247_v10 }
 0x115   : > { %v2602_v63 = vadd.f32 %v4185_v42, %v6591_v61  ;;  %4676 = vmatpush3.bf16.msra.mxu0 %v5213_v52  ;;  %v4250_v46 = vpop.f32.mrf.mxu1 }
 0x116   : > { %v4187_v51 = vpop.f32.mrf.mxu0  ;;  %4789 = vmatprep.subr.bf16.mxu0 %v5215_v60 }
 0x117   : > { %v6706_v9 = vadd.f32 %v4249_v1, %v2602_v63  ;;  %v4188_v15 = vadd.f32 %v4187_v51, %v4186_v38  ;;  %4740 = vmatpush3.bf16.msra.mxu1 %v5214_v7  ;;  %v4251_v18 = vpop.f32.mrf.mxu1  ;;  %v6725_v7 = vsel %vm362_vm1, %v524_v23, %v525_v55  ;;  %v6739_v51 = vld [vmem:[%s5553_s28 + $0xf0] sm:$0xff]  ;;  %v7647_v23 = vld [vmem:[#allocation6_spill] sm:$0xff] }
 0x118   : > { %v4189_v54 = vpop.f32.mrf.mxu0  ;;  %3190 = vmatmul.mubr.bf16.gmra.mxu0 %v6065_v6  ;;  %4853 = vmatprep.subr.bf16.mxu1 %v5216_v31  ;;  %v4252_v40 = vadd.f32 %v4251_v18, %v4250_v46  ;;  %v517_v18 = vrot.slane %v6475_v11, 2 }
 0x119   : > { %v2605_v16 = vadd.f32 %v4188_v15, %v6591_v61  ;;  %3197 = vmatprep.mubr.bf16.mxu0 %v6071_v33  ;;  %v4253_v29 = vpop.f32.mrf.mxu1  ;;  %v7577_v33 = vrot.slane %v6488_v59, 3  ;;  %v6742_v15 = vld [vmem:[%s5553_s28 + $0xf8] sm:$0xff] }
 0x11a   : > { %3287 = vmatmul.mubr.bf16.gmra.mxu1 %v6262_v25  ;;  %v4190_v35 = vpop.f32.mrf.mxu0 }
 0x11b   : > { %v6712_v30 = vadd.f32 %v4252_v40, %v2605_v16  ;;  %v4191_v34 = vadd.f32 %v4190_v35, %v4189_v54  ;;  %3294 = vmatprep.mubr.bf16.mxu1 %v6275_v3  ;;  %v4254_v26 = vpop.f32.mrf.mxu1  ;;  %v6730_v48 = vsel %vm362_vm1, %v525_v55, %v7577_v33  ;;  %v518_v54 = vrot.slane %v6478_v21, 2 }
 0x11c   : > { %v4192_v43 = vpop.f32.mrf.mxu0  ;;  %v4255_v50 = vadd.f32 %v4254_v26, %v4253_v29  ;;  %v7576_v40 = vrot.slane %v6488_v59, 2  ;;  %v7646_v26 = vld [vmem:[#allocation5_spill] sm:$0xff] }
 0x11d   : > { %v2610_v6 = vadd.f32 %v4191_v34, %v6591_v61  ;;  %v4256_v27 = vpop.f32.mrf.mxu1  ;;  %v532_v34 = vrot.slane %v6478_v21, 4 }
 0x11e   : > { %v4193_v52 = vpop.f32.mrf.mxu0 }
 0x11f   : > { %v6719_v25 = vadd.f32 %v4255_v50, %v2610_v6  ;;  %v4194_v10 = vadd.f32 %v4193_v52, %v4192_v43  ;;  %v4257_v47 = vpop.f32.mrf.mxu1  ;;  %v599_v43 = vrot.slane %v7646_v26, 1  ;;  %v600_v6 = vrot.slane %v7647_v23, 1 }
 0x120   : > { %v4195_v60 = vpop.f32.mrf.mxu0  ;;  %3198 = vmatmul.mubr.bf16.gmra.mxu0 %v6103_v13  ;;  %v4258_v42 = vadd.f32 %v4257_v47, %v4256_v27  ;;  %v7648_v50 = vrot.slane %v5717_v57, 1  ;;  %v534_v47 = vrot.slane %v6488_v59, 4  ;;  %v6767_v57 = vsel %vm305_vm2, %v518_v54, %v7576_v40 }
 0x121   : > { %v2613_v3 = vadd.f32 %v4194_v10, %v6591_v61  ;;  %3205 = vmatprep.mubr.bf16.mxu0 %v6560_v58  ;;  %v4259_v38 = vpop.f32.mrf.mxu1  ;;  %v928_v58 = vpack.c.bf16 %v6730_v48, %v6725_v7  ;;  %v930_v10 = vpack.c.bf16 %v6742_v15, %v6739_v51 }
 0x122   : > { %3295 = vmatmul.mubr.bf16.gmra.mxu1 %v6300_v17  ;;  %v4196_v31 = vpop.f32.mrf.mxu0  ;;  %v620_v55 = vrot.slane %v7648_v50, 1 }
 0x123   : > { %v6733_v63 = vadd.f32 %v4258_v42, %v2613_v3  ;;  %v4197_v13 = vadd.f32 %v4196_v31, %v4195_v60  ;;  %3302 = vmatprep.mubr.bf16.mxu1 %v6564_v49  ;;  %v4260_v1 = vpop.f32.mrf.mxu1  ;;  %v531_v49 = vrot.slane %v6475_v11, 4  ;;  %v6762_v42 = vsel %vm305_vm2, %v517_v18, %v518_v54 }
 0x124   : > { %v4198_v46 = vpop.f32.mrf.mxu0  ;;  %v4261_v16 = vadd.f32 %v4260_v1, %v4259_v38  ;;  %v535_v18 = vsel %vm419_vm3, %v532_v34, %v534_v47  ;;  %v927_v54 = vpack.c.bf16 %v6767_v57, %v6762_v42 }
 0x125   : > { %v2618_v17 = vadd.f32 %v4197_v13, %v6591_v61  ;;  %v4262_v29 = vpop.f32.mrf.mxu1  ;;  %v601_v13 = vsel %vm248_vm0, %v599_v43, %v600_v6 }
 0x126   : > { %v4199_v35 = vpop.f32.mrf.mxu0 }
 0x127   : > { %v6754_v27 = vadd.f32 %v4261_v16, %v2618_v17  ;;  %v4200_v52 = vadd.f32 %v4199_v35, %v4198_v46  ;;  %v4263_v11 = vpop.f32.mrf.mxu1 }
 0x128   : > { %v4201_v60 = vpop.f32.mrf.mxu0  ;;  %3206 = vmatmul.mubr.bf16.gmra.mxu0 %v6282_v8  ;;  %v4264_v3 = vadd.f32 %v4263_v11, %v4262_v29  ;;  %v621_v8 = vsel %vm248_vm0, %v600_v6, %v620_v55  ;;  %v7649_v6 = vld [vmem:[#allocation11_spill] sm:$0xff]  ;;  %v7650_v55 = vld [vmem:[#allocation12_spill] sm:$0xff] }
 0x129   : > { %v2621_v21 = vadd.f32 %v4200_v52, %v6591_v61  ;;  %3213 = vmatprep.mubr.bf16.mxu0 %v928_v58  ;;  %v4265_v38 = vpop.f32.mrf.mxu1  ;;  %v533_v58 = vsel %vm419_vm3, %v531_v49, %v532_v34  ;;  %v865_v35 = vpack.c.bf16 %v621_v8, %v601_v13  ;;  %v611_v50 = vrot.slane %v7649_v6, 1 }
 0x12a   : > { %3303 = vmatmul.mubr.bf16.gmra.mxu1 %v6548_v24  ;;  %v4202_v31 = vpop.f32.mrf.mxu0  ;;  %v929_v23 = vpack.c.bf16 %v535_v18, %v533_v58  ;;  %v612_v52 = vrot.slane %v7650_v55, 1  ;;  %v7651_v49 = vrot.slane %v5781_v32, 1  ;;  %v7652_v58 = vpack.c.bf16 %v6358_v14, %v6319_v36  ;;  %v7654_v14 = vld [vmem:[#allocation16_spill] sm:$0xff] }
 0x12b   : > { %v6772_v1 = vadd.f32 %v4264_v3, %v2621_v21  ;;  %v4203_v46 = vadd.f32 %v4202_v31, %v4201_v60  ;;  %3310 = vmatprep.mubr.bf16.mxu1 %v930_v10  ;;  %v4266_v17 = vpop.f32.mrf.mxu1  ;;  %v638_v6 = vrot.slane %v7654_v14, 1 }
 0x12c   : > { %v4204_v16 = vpop.f32.mrf.mxu0  ;;  %v4267_v29 = vadd.f32 %v4266_v17, %v4265_v38  ;;  %v628_v10 = vrot.slane %v7651_v49, 1  ;;  %v613_v13 = vsel %vm248_vm0, %v611_v50, %v612_v52  ;;  %v7655_v50 = vrot.slane %v5851_v5, 1  ;;  %v5221_v5 = vld [vmem:[%s7519_s1 + $0x530] sm:$0xff]  }
 0x12d   : > { %v2626_v24 = vadd.f32 %v4203_v46, %v6591_v61  ;;  %v4268_v26 = vpop.f32.mrf.mxu1 }
 0x12e   : > { %v4205_v43 = vpop.f32.mrf.mxu0  ;;  %v629_v8 = vsel %vm248_vm0, %v612_v52, %v628_v10  ;;  %v648_v55 = vrot.slane %v7655_v50, 1  ;;  %v5218_v10 = vld [vmem:[%s7519_s1 + $0x5b8] sm:$0xff]   ;;  %v5225_v50 = vld [vmem:[%s7519_s1 + $0x528] sm:$0xff]  }
 0x12f   : > { %v6783_v34 = vadd.f32 %v4267_v29, %v2626_v24  ;;  %v4206_v47 = vadd.f32 %v4205_v43, %v4204_v16  ;;  %v4269_v11 = vpop.f32.mrf.mxu1  ;;  %v5217_v24 = vld [vmem:[%s7519_s1 + $0x538] sm:$0xff]   ;;  %v6797_v29 = vpack.c.bf16 %v629_v8, %v613_v13  ;;  %v5219_v43 = vld [vmem:[%s7519_s1 + $0x570] sm:$0xff]   ;;  %v7657_v13 = vld [vmem:[#allocation10_spill] sm:$0xff] }
 0x130   : > { %v4207_v60 = vpop.f32.mrf.mxu0  ;;  %3214 = vmatmul.mubr.bf16.gmra.mxu0 %v927_v54  ;;  %v4270_v3 = vadd.f32 %v4269_v11, %v4268_v26  ;;  %v7658_v8 = vld [vmem:[#allocation9_spill] sm:$0xff] }
 0x131   : > { %v2629_v21 = vadd.f32 %v4206_v47, %v6591_v61  ;;  %3351 = vmatprep.mubr.bf16.mxu0 %v865_v35  ;;  %v4271_v38 = vpop.f32.mrf.mxu1 }
 0x132   : > { %3311 = vmatmul.mubr.bf16.gmra.mxu1 %v929_v23  ;;  %v4208_v31 = vpop.f32.mrf.mxu0  ;;  %v7653_v23 = vld [vmem:[#allocation15_spill] sm:$0xff] }
 0x133   : > { %v6788_v46 = vadd.f32 %v4270_v3, %v2629_v21  ;;  %v4209_v32 = vadd.f32 %v4208_v31, %v4207_v60  ;;  %3448 = vmatprep.mubr.bf16.mxu1 %v7652_v58  ;;  %v4272_v18 = vpop.f32.mrf.mxu1  ;;  %v637_v36 = vrot.slane %v7653_v23, 1  ;;  %v7656_v60 = vld [vmem:[#allocation7_spill] sm:$0xff]  ;;  %v5224_v23 = vld [vmem:[%s7519_s1 + $0x5e8] sm:$0xff]  }
 0x134   : > { %v4210_v17 = vpop.f32.mrf.mxu0  ;;  %v4273_v54 = vadd.f32 %v4272_v18, %v4271_v38  ;;  %v5220_v21 = vld [vmem:[%s7519_s1 + $0x5f0] sm:$0xff]  }
 0x135   : > { %v2634_v16 = vadd.f32 %v4209_v32, %v6591_v61  ;;  %v4274_v35 = vpop.f32.mrf.mxu1  ;;  %v7659_v32 = vpack.c.bf16 %v7657_v13, %v7658_v8  ;;  %v639_v18 = vsel %vm248_vm0, %v637_v36, %v638_v6  ;;  %v5226_v13 = vld [vmem:[%s7519_s1 + $0x5a8] sm:$0xff]  }
 0x136   : > { %v4211_v26 = vpop.f32.mrf.mxu0 }
 0x137   : > { %v6806_v52 = vadd.f32 %v4273_v54, %v2634_v16  ;;  %v4212_v49 = vadd.f32 %v4211_v26, %v4210_v17  ;;  %v4275_v47 = vpop.f32.mrf.mxu1  ;;  %v649_v17 = vsel %vm248_vm0, %v638_v6, %v648_v55 }
 0x138   : > { %v4293_v11 = vpop.f32.mrf.mxu0  ;;  %3352 = vmatmul.mubr.bf16.vlgmr.msra.gmra.mxu0 %v7656_v60  ;;  %v4276_v38 = vadd.f32 %v4275_v47, %v4274_v35  ;;  %v5222_v35 = vld [vmem:[%s7519_s1 + $0x5b0] sm:$0xff]   ;;  %v6838_v6 = vpack.c.bf16 %v649_v17, %v639_v18  ;;  %v5228_v18 = vld [vmem:[%s7519_s1 + $0x5e0] sm:$0xff]  }
 0x139   : > { %v2637_v3 = vadd.f32 %v4212_v49, %v6591_v61  ;;  %4790 = vmatpush3.bf16.msra.mxu0 %v5217_v24  ;;  %3359 = vmatprep.mubr.bf16.mxu0 %v6797_v29  ;;  %v5223_v61 = vld [vmem:[%s7519_s1 + $0x568] sm:$0xff]  }
 0x13a   : > { %v4357_v31 = vpop.f32.mrf.mxu1  ;;  %3449 = vmatmul.mubr.bf16.vlgmr.msra.gmra.mxu1 %v7659_v32  ;;  %v4294_v58 = vpop.f32.mrf.mxu0  ;;  %4791 = vmatprep.subr.bf16.mxu0 %v5219_v43  ;;  %v7660_v24 = vld [vmem:[#allocation22_spill] sm:$0xff] }
 0x13b   : > { %v6828_v16 = vadd.f32 %v4276_v38, %v2637_v3  ;;  %4854 = vmatpush3.bf16.msra.mxu1 %v5218_v10  ;;  %v4295_v54 = vadd.f32 %v4294_v58, %v4293_v11  ;;  %3456 = vmatprep.mubr.bf16.mxu1 %v7660_v24  ;;  %v7661_v10 = vld [vmem:[#allocation20_spill] sm:$0xff]  ;;  %v7662_v11 = vld [vmem:[#allocation21_spill] sm:$0xff] }
 0x13c   : > { %v4358_v26 = vpop.f32.mrf.mxu1  ;;  %v4296_v43 = vpop.f32.mrf.mxu0  ;;  %4855 = vmatprep.subr.bf16.mxu1 %v5220_v21  ;;  %v657_v47 = vrot.slane %v7661_v10, 1  ;;  %v658_v60 = vrot.slane %v7662_v11, 1  ;;  %v7663_v21 = vld [vmem:[#allocation19_spill] sm:$0xff]  ;;  %v7665_v58 = vld [vmem:[#allocation13_spill] sm:$0xff] }
 0x13d   : > { %v2772_v36 = vadd.f32 %v4295_v54, %v6610_v62  ;;  %v4359_v14 = vadd.f32 %v4358_v26, %v4357_v31  ;;  %4792 = vmatpush3.bf16.msra.mxu0 %v5221_v5  ;;  %v7664_v3 = vrot.slane %v7663_v21, 1  ;;  %v5227_v62 = vld [vmem:[%s7519_s1 + $0x560] sm:$0xff]  }
 0x13e   : > { %v4360_v55 = vpop.f32.mrf.mxu1  ;;  %v4297_v49 = vpop.f32.mrf.mxu0  ;;  %4793 = vmatprep.subr.bf16.mxu0 %v5223_v61  ;;  %v5229_v54 = vld [vmem:[%s7519_s1 + $0x520] sm:$0xff]  }
 0x13f   : > { %v668_v38 = vrot.slane %v7664_v3, 1  ;;  %v6850_v5 = vadd.f32 %v4359_v14, %v2772_v36  ;;  %v4298_v31 = vadd.f32 %v4297_v49, %v4296_v43  ;;  %4856 = vmatpush3.bf16.msra.mxu1 %v5222_v35  ;;  %v7666_v26 = vld [vmem:[#allocation33_spill] sm:$0xff] }
 0x140   : > { %v4361_v8 = vpop.f32.mrf.mxu1  ;;  %v4299_v32 = vpop.f32.mrf.mxu0  ;;  %3360 = vmatmul.mubr.bf16.gmra.mxu0 %v7665_v58  ;;  %4857 = vmatprep.subr.bf16.mxu1 %v5224_v23  ;;  %v659_v23 = vsel %vm248_vm0, %v657_v47, %v658_v60  ;;  %v5230_v49 = vld [vmem:[%s7519_s1 + $0x5a0] sm:$0xff]   ;;  %v5232_v47 = vld [vmem:[%s7519_s1 + $0x5d8] sm:$0xff]  }
 0x141   : > { %v2775_v17 = vadd.f32 %v4298_v31, %v6628_v56  ;;  %v4362_v61 = vadd.f32 %v4361_v8, %v4360_v55  ;;  %3367 = vmatprep.mubr.bf16.mxu0 %v6838_v6  ;;  %4794 = vmatpush3.bf16.msra.mxu0 %v5225_v50  ;;  %v669_v36 = vsel %vm248_vm0, %v658_v60, %v668_v38  ;;  %v5231_v56 = vld [vmem:[%s7519_s1 + $0x558] sm:$0xff]  }
 0x142   : > { %v4363_v35 = vpop.f32.mrf.mxu1  ;;  %3457 = vmatmul.mubr.bf16.gmra.mxu1 %v7666_v26  ;;  %v4300_v43 = vpop.f32.mrf.mxu0  ;;  %4795 = vmatprep.subr.bf16.mxu0 %v5227_v62  ;;  %v7667_v55 = vld [vmem:[#allocation24_spill] sm:$0xff]  ;;  %v6880_v3 = vpack.c.bf16 %v669_v36, %v659_v23 }
 0x143   : > { %v6870_v14 = vadd.f32 %v4362_v61, %v2775_v17  ;;  %v4301_v50 = vadd.f32 %v4300_v43, %v4299_v32  ;;  %3464 = vmatprep.mubr.bf16.mxu1 %v7667_v55  ;;  %4858 = vmatpush3.bf16.msra.mxu1 %v5226_v13  ;;  %v5233_v38 = vld [vmem:[%s7519_s1 + $0x518] sm:$0xff]   ;;  %v7669_v32 = vld [vmem:[#allocation29_spill] sm:$0xff]  ;;  %v7670_v17 = vrot.slane %v5988_v28, 1  ;;  %v5236_v28 = vld [vmem:[%s7519_s1 + $0x5d0] sm:$0xff]  }
 0x144   : > { %v4364_v10 = vpop.f32.mrf.mxu1  ;;  %v4302_v11 = vpop.f32.mrf.mxu0  ;;  %4859 = vmatprep.subr.bf16.mxu1 %v5228_v18  ;;  %v7668_v13 = vld [vmem:[#allocation28_spill] sm:$0xff]  ;;  %v678_v18 = vrot.slane %v7669_v32, 1  ;;  %v5238_v32 = vld [vmem:[%s7519_s1 + $0x590] sm:$0xff]  }
 0x145   : > { %v2780_v60 = vadd.f32 %v4301_v50, %v6644_v37  ;;  %v4365_v21 = vadd.f32 %v4364_v10, %v4363_v35  ;;  %4796 = vmatpush3.bf16.msra.mxu0 %v5229_v54  ;;  %v677_v8 = vrot.slane %v7668_v13, 1  ;;  %v688_v61 = vrot.slane %v7670_v17, 1  ;;  %v5235_v37 = vld [vmem:[%s7519_s1 + $0x550] sm:$0xff]   ;;  %v5234_v43 = vld [vmem:[%s7519_s1 + $0x598] sm:$0xff]   ;;  %v7671_v50 = vld [vmem:[#allocation17_spill] sm:$0xff] }
 0x146   : > { %v4366_v62 = vpop.f32.mrf.mxu1  ;;  %v4303_v31 = vpop.f32.mrf.mxu0  ;;  %4797 = vmatprep.subr.bf16.mxu0 %v5231_v56  ;;  %v7673_v13 = vld [vmem:[#allocation8_spill] sm:$0xff] }
 0x147   : > { %v6892_v35 = vadd.f32 %v4365_v21, %v2780_v60  ;;  %v4304_v54 = vadd.f32 %v4303_v31, %v4302_v11  ;;  %4860 = vmatpush3.bf16.msra.mxu1 %v5230_v49  ;;  %v5237_v49 = vld [vmem:[%s7519_s1 + $0x510] sm:$0xff]   ;;  %v689_v31 = vsel %vm248_vm0, %v678_v18, %v688_v61 }
 0x148   : > { %v4367_v23 = vpop.f32.mrf.mxu1  ;;  %v4305_v36 = vpop.f32.mrf.mxu0  ;;  %3368 = vmatmul.mubr.bf16.gmra.mxu0 %v7671_v50  ;;  %4861 = vmatprep.subr.bf16.mxu1 %v5232_v47  ;;  %v7672_v60 = vld [vmem:[#allocation23_spill] sm:$0xff]  ;;  %v679_v47 = vsel %vm248_vm0, %v677_v8, %v678_v18  ;;  %v7675_v18 = vld [vmem:[#allocation32_spill] sm:$0xff] }
 0x149   : > { %v2783_v56 = vadd.f32 %v4304_v54, %v6662_v20  ;;  %v4368_v10 = vadd.f32 %v4367_v23, %v4366_v62  ;;  %3375 = vmatprep.mubr.bf16.mxu0 %v6880_v3  ;;  %4798 = vmatpush3.bf16.msra.mxu0 %v5233_v38  ;;  %v5239_v20 = vld [vmem:[%s7519_s1 + $0x548] sm:$0xff]   ;;  %v7674_v8 = vld [vmem:[#allocation31_spill] sm:$0xff]  ;;  %v698_v61 = vrot.slane %v7675_v18, 1 }
 0x14a   : > { %v4369_v11 = vpop.f32.mrf.mxu1  ;;  %3465 = vmatmul.mubr.bf16.gmra.mxu1 %v7672_v60  ;;  %v4306_v21 = vpop.f32.mrf.mxu0  ;;  %4799 = vmatprep.subr.bf16.mxu0 %v5235_v37  ;;  %v697_v23 = vrot.slane %v7674_v8, 1  ;;  %v5240_v37 = vld [vmem:[%s7519_s1 + $0x5c8] sm:$0xff]  }
 0x14b   : > { %v6912_v62 = vadd.f32 %v4368_v10, %v2783_v56  ;;  %v4307_v38 = vadd.f32 %v4306_v21, %v4305_v36  ;;  %3472 = vmatprep.mubr.bf16.mxu1 %v7673_v13  ;;  %4862 = vmatpush3.bf16.msra.mxu1 %v5234_v43  ;;  %v6924_v10 = vpack.c.bf16 %v689_v31, %v679_v47  ;;  %v7676_v43 = vrot.slane %v6251_v22, 1  ;;  %v5241_v8 = vld [vmem:[%s7519_s1 + $0x508] sm:$0xff]  }
 0x14c   : > { %v4370_v17 = vpop.f32.mrf.mxu1  ;;  %v4308_v54 = vpop.f32.mrf.mxu0  ;;  %4863 = vmatprep.subr.bf16.mxu1 %v5236_v28  ;;  %v5243_v28 = vld [vmem:[%s7519_s1 + $0x540] sm:$0xff]   ;;  %v5242_v22 = vld [vmem:[%s7519_s1 + $0x588] sm:$0xff]   ;;  %v699_v31 = vsel %vm248_vm0, %v697_v23, %v698_v61 }
 0x14d   : > { %v2788_v36 = vadd.f32 %v4307_v38, %v6678_v4  ;;  %v4371_v56 = vadd.f32 %v4370_v17, %v4369_v11  ;;  %v708_v21 = vrot.slane %v7676_v43, 1  ;;  %4800 = vmatpush3.bf16.msra.mxu0 %v5237_v49  ;;  %v7677_v47 = vld [vmem:[#allocation26_spill] sm:$0xff]  ;;  %v5246_v43 = vld [vmem:[%s7519_s1 + $0x580] sm:$0xff]  }
 0x14e   : > { %v4372_v40 = vpop.f32.mrf.mxu1  ;;  %v4309_v18 = vpop.f32.mrf.mxu0  ;;  %4801 = vmatprep.subr.bf16.mxu0 %v5239_v20  ;;  %v5244_v20 = vld [vmem:[%s7519_s1 + $0x5c0] sm:$0xff]  }
 0x14f   : > { %v6934_v33 = vadd.f32 %v4371_v56, %v2788_v36  ;;  %v4310_v4 = vadd.f32 %v4309_v18, %v4308_v54  ;;  %4864 = vmatpush3.bf16.msra.mxu1 %v5238_v32  ;;  %v709_v32 = vsel %vm248_vm0, %v698_v61, %v708_v21  ;;  %v5245_v54 = vld [vmem:[%s7519_s1 + $0x500] sm:$0xff]  }
 0x150   : > { %v4373_v49 = vpop.f32.mrf.mxu1  ;;  %v4311_v11 = vpop.f32.mrf.mxu0  ;;  %3376 = vmatmul.mubr.bf16.gmra.mxu0 %v7677_v47  ;;  %4865 = vmatprep.subr.bf16.mxu1 %v5240_v37  ;;  %v7678_v56 = vld [vmem:[#allocation25_spill] sm:$0xff]  ;;  %v6965_v18 = vpack.c.bf16 %v709_v32, %v699_v31  ;;  %v724_v31 = vrot.slane %v6730_v48, 1 }
 0x151   : > { %v2791_v38 = vadd.f32 %v4310_v4, %v6696_v53  ;;  %v4374_v17 = vadd.f32 %v4373_v49, %v4372_v40  ;;  %3383 = vmatprep.mubr.bf16.mxu0 %v6924_v10  ;;  %4802 = vmatpush3.bf16.msra.mxu0 %v5241_v8  ;;  %v6952_v37 = vld [vmem:[%s5553_s28 + $0x100] sm:$0xf]  ;;  %v6957_v53 = vld [vmem:[%s7519_s1 + $0x638] sm:$0xff]  }
 0x152   : > { %v4375_v36 = vpop.f32.mrf.mxu1  ;;  %3473 = vmatmul.mubr.bf16.gmra.mxu1 %v7678_v56  ;;  %v4312_v23 = vpop.f32.mrf.mxu0  ;;  %4803 = vmatprep.subr.bf16.mxu0 %v5243_v28  ;;  %7679 = vst [vmem:[#allocation18_spill] sm:$0xff] %v6965_v18  ;;  %v541_v28 = vrot.slane %v6739_v51, 1  ;;  %v554_v13 = vrot.slane %v6952_v37, 3 }
 0x153   : > { %v6959_v40 = vadd.f32 %v4374_v17, %v2791_v38  ;;  %v4313_v61 = vadd.f32 %v4312_v23, %v4311_v11  ;;  %3480 = vmatprep.mubr.bf16.mxu1 %v6526_v12  ;;  %4866 = vmatpush3.bf16.msra.mxu1 %v5242_v22  ;;  %v542_v38 = vrot.slane %v6742_v15, 1  ;;  %v544_v11 = vrot.slane %v6952_v37, 1 }
 0x154   : > { %v4376_v21 = vpop.f32.mrf.mxu1  ;;  %v4314_v8 = vpop.f32.mrf.mxu0  ;;  %4867 = vmatprep.subr.bf16.mxu1 %v5244_v20  ;;  %v723_v23 = vrot.slane %v6725_v7, 1 }
 0x155   : > { %v2796_v4 = vadd.f32 %v4313_v61, %v6706_v9  ;;  %v4377_v49 = vadd.f32 %v4376_v21, %v4375_v36  ;;  %4804 = vmatpush3.bf16.msra.mxu0 %v5245_v54  ;;  %v7681_v36 = vrot.slane %v6488_v59, 3  ;;  %v551_v54 = vrot.slane %v6739_v51, 3 }
 0x156   : > { %v4378_v22 = vpop.f32.mrf.mxu1  ;;  %v4315_v17 = vpop.f32.mrf.mxu0  ;;  %4933 = vmatprep.subr.bf16.mxu0 %v6957_v53  ;;  %v552_v21 = vrot.slane %v6742_v15, 3  ;;  %v748_v24 = vrot.slane %v544_v11, 1 }
 0x157   : > { %v6974_v32 = vadd.f32 %v4377_v49, %v2796_v4  ;;  %v4316_v12 = vadd.f32 %v4315_v17, %v4314_v8  ;;  %4868 = vmatpush3.bf16.msra.mxu1 %v5246_v43  ;;  %v732_v61 = vrot.slane %v7681_v36, 1  ;;  %v6986_v43 = vsel %vm248_vm0, %v541_v28, %v542_v38 }
 0x158   : > { %v4379_v20 = vpop.f32.mrf.mxu1  ;;  %v4317_v9 = vpop.f32.mrf.mxu0  ;;  %3384 = vmatmul.mubr.bf16.gmra.mxu0 %v6057_v2  ;;  %4965 = vmatprep.subr.bf16.mxu1 %v6957_v53  ;;  %v6989_v8 = vsel %vm248_vm0, %v542_v38, %v544_v11  ;;  %v720_v17 = vrot.slane %v6762_v42, 1  ;;  %v737_v38 = vrot.slane %v6986_v43, 1  ;;  %v553_v42 = vsel %vm362_vm1, %v551_v54, %v552_v21 }
 0x159   : > { %7680 = vst [vmem:[#allocation27_spill] sm:$0xff] %v6974_v32  ;;  %v2799_v7 = vadd.f32 %v4316_v12, %v6712_v30  ;;  %v4380_v48 = vadd.f32 %v4379_v20, %v4378_v22  ;;  %3391 = vmatprep.mubr.bf16.mxu0 %v6965_v18  ;;  %v725_v12 = vsel %vm248_vm0, %v723_v23, %v724_v31  ;;  %v738_v20 = vrot.slane %v6989_v8, 1 }
 0x15a   : > { %v4381_v4 = vpop.f32.mrf.mxu1  ;;  %3481 = vmatmul.mubr.bf16.gmra.mxu1 %v6519_v44  ;;  %v4318_v49 = vpop.f32.mrf.mxu0  ;;  %v733_v28 = vsel %vm248_vm0, %v724_v31, %v732_v61  ;;  %v547_v23 = vrot.slane %v6742_v15, 2  ;;  %v7683_v61 = vrot.slane %v6488_v59, 2 }
 0x15b   : > { %v6993_v36 = vadd.f32 %v4380_v48, %v2799_v7  ;;  %v4319_v55 = vadd.f32 %v4318_v49, %v4317_v9  ;;  %3488 = vmatprep.mubr.bf16.mxu1 %v6536_v19  ;;  %v555_v9 = vsel %vm362_vm1, %v552_v21, %v554_v13  ;;  %v546_v7 = vrot.slane %v6739_v51, 2 }
 0x15c   : > { %v4382_v30 = vpop.f32.mrf.mxu1  ;;  %v4320_v22 = vpop.f32.mrf.mxu0  ;;  %v721_v48 = vrot.slane %v6767_v57, 1  ;;  %v730_v19 = vrot.slane %v7683_v61, 1  ;;  %v743_v51 = vrot.slane %v553_v42, 1  ;;  %v744_v15 = vrot.slane %v555_v9, 1  ;;  %v5256_v61 = vld [vmem:[%s5553_s28 + $0x68] sm:$0xff] }
 0x15d   : > { %7682 = vst [vmem:[#allocation5_spill] sm:$0xff] %v6993_v36  ;;  %v2804_v18 = vadd.f32 %v4319_v55, %v6719_v25  ;;  %v4383_v32 = vadd.f32 %v4382_v30, %v4381_v4  ;;  %v7010_v25 = vpack.c.bf16 %v733_v28, %v725_v12  ;;  %v549_v55 = vrot.slane %v6952_v37, 2 }
 0x15e   : > { %v4384_v49 = vpop.f32.mrf.mxu1  ;;  %v4321_v31 = vpop.f32.mrf.mxu0  ;;  %v752_v4 = vrot.slane %v554_v13, 1  ;;  %v739_v59 = vsel %vm248_vm0, %v737_v38, %v738_v20  ;;  %v722_v12 = vsel %vm248_vm0, %v720_v17, %v721_v48  ;;  %v548_v28 = vsel %vm305_vm2, %v546_v7, %v547_v23 }
 0x15f   : > { %v7008_v36 = vadd.f32 %v4383_v32, %v2804_v18  ;;  %v4322_v11 = vadd.f32 %v4321_v31, %v4320_v22  ;;  %v749_v18 = vsel %vm248_vm0, %v738_v20, %v748_v24  ;;  %v731_v22 = vsel %vm248_vm0, %v721_v48, %v730_v19  ;;  %v5255_v48 = vld [vmem:[%s5553_s28 + $0x60] sm:$0xff] }
 0x160   : > { %v4385_v54 = vpop.f32.mrf.mxu1  ;;  %v4323_v21 = vpop.f32.mrf.mxu0  ;;  %3392 = vmatmul.mubr.bf16.gmra.mxu0 %v6304_v39  ;;  %v550_v38 = vsel %vm305_vm2, %v547_v23, %v549_v55  ;;  %v7026_v42 = vpack.c.bf16 %v749_v18, %v739_v59  ;;  %v745_v9 = vsel %vm248_vm0, %v743_v51, %v744_v15  ;;  %v753_v17 = vsel %vm248_vm0, %v744_v15, %v752_v4 }
 0x161   : > { %v2807_v57 = vadd.f32 %v4322_v11, %v6733_v63  ;;  %v4386_v30 = vadd.f32 %v4385_v54, %v4384_v49  ;;  %3399 = vmatprep.mubr.bf16.mxu0 %v6554_v45  ;;  %v559_v31 = vrot.slane %v5255_v48, 7  ;;  %v560_v11 = vrot.slane %v5256_v61, 7  ;;  %v5257_v61 = vld [vmem:[%s5553_s28 + $0x78] sm:$0xff] }
 0x162   : > { %v4387_v32 = vpop.f32.mrf.mxu1  ;;  %3489 = vmatmul.mubr.bf16.gmra.mxu1 %v6541_v41  ;;  %v4324_v37 = vpop.f32.mrf.mxu0  ;;  %v7033_v7 = vpack.c.bf16 %v731_v22, %v722_v12  ;;  %v740_v23 = vrot.slane %v548_v28, 1  ;;  %v7037_v51 = vpack.c.bf16 %v753_v17, %v745_v9  ;;  %v750_v15 = vrot.slane %v549_v55, 1 }
 0x163   : > { %v7021_v13 = vadd.f32 %v4386_v30, %v2807_v57  ;;  %v4325_v63 = vadd.f32 %v4324_v37, %v4323_v21  ;;  %3496 = vmatprep.mubr.bf16.mxu1 %v7010_v25  ;;  %v741_v57 = vrot.slane %v550_v38, 1  ;;  %v561_v37 = vsel %vm558_vm4, %v559_v31, %v560_v11 }
 0x164   : > { %v4388_v24 = vpop.f32.mrf.mxu1  ;;  %v4326_v20 = vpop.f32.mrf.mxu0  ;;  %v608_v9 = vrot.slane %v559_v31, 1  ;;  %v609_v17 = vrot.slane %v561_v37, 1 }
 0x165   : > { %v2812_v49 = vadd.f32 %v4325_v63, %v6754_v27  ;;  %v4389_v19 = vadd.f32 %v4388_v24, %v4387_v32  ;;  %v742_v28 = vsel %vm248_vm0, %v740_v23, %v741_v57 }
 0x166   : > { %v4390_v54 = vpop.f32.mrf.mxu1  ;;  %v4327_v21 = vpop.f32.mrf.mxu0 }
 0x167   : > { %v7035_v30 = vadd.f32 %v4389_v19, %v2812_v49  ;;  %v4328_v59 = vadd.f32 %v4327_v21, %v4326_v20  ;;  %v7051_v20 = vpack.c.bf16 %v6989_v8, %v6986_v43  ;;  %v626_v49 = vrot.slane %v560_v11, 1  ;;  %v5258_v21 = vld [vmem:[%s5553_s28 + $0x80] sm:$0xff] }
 0x168   : > { %v4391_v4 = vpop.f32.mrf.mxu1  ;;  %v4329_v27 = vpop.f32.mrf.mxu0  ;;  %3400 = vmatmul.mubr.bf16.gmra.mxu0 %v6552_v0  ;;  %v610_v8 = vsel %vm248_vm0, %v608_v9, %v609_v17 }
 0x169   : > { %v2815_v18 = vadd.f32 %v4328_v59, %v6772_v1  ;;  %v4392_v32 = vadd.f32 %v4391_v4, %v4390_v54  ;;  %3407 = vmatprep.mubr.bf16.mxu0 %v7026_v42  ;;  %v751_v1 = vsel %vm248_vm0, %v741_v57, %v750_v15  ;;  %v562_v54 = vrot.slane %v5257_v61, 7 }
 0x16a   : > { %v4393_v12 = vpop.f32.mrf.mxu1  ;;  %3497 = vmatmul.mubr.bf16.gmra.mxu1 %v7033_v7  ;;  %v4330_v22 = vpop.f32.mrf.mxu0  ;;  %v563_v59 = vrot.slane %v5258_v21, 7  ;;  %v627_v11 = vsel %vm248_vm0, %v609_v17, %v626_v49  ;;  %v5259_v49 = vld [vmem:[%s5553_s28 + $0x90] sm:$0xff] }
 0x16b   : > { %v7044_v63 = vadd.f32 %v4392_v32, %v2815_v18  ;;  %v4331_v55 = vadd.f32 %v4330_v22, %v4329_v27  ;;  %3504 = vmatprep.mubr.bf16.mxu1 %v7037_v51  ;;  %v7056_v27 = vpack.c.bf16 %v751_v1, %v742_v28  ;;  %v868_v1 = vpack.c.bf16 %v627_v11, %v610_v8 }
 0x16c   : > { %v4394_v38 = vpop.f32.mrf.mxu1  ;;  %v4332_v24 = vpop.f32.mrf.mxu0  ;;  %v564_v32 = vsel %vm558_vm4, %v562_v54, %v563_v59 }
 0x16d   : > { %v2820_v19 = vadd.f32 %v4331_v55, %v6783_v34  ;;  %v4395_v48 = vadd.f32 %v4394_v38, %v4393_v12  ;;  %v634_v38 = vrot.slane %v562_v54, 1 }
 0x16e   : > { %v4396_v4 = vpop.f32.mrf.mxu1  ;;  %v4333_v23 = vpop.f32.mrf.mxu0 }
 0x16f   : > { %v7058_v57 = vadd.f32 %v4395_v48, %v2820_v19  ;;  %v4334_v15 = vadd.f32 %v4333_v23, %v4332_v24  ;;  %v646_v24 = vrot.slane %v563_v59, 1  ;;  %v565_v19 = vrot.slane %v5259_v49, 7  ;;  %v5260_v48 = vld [vmem:[%s5553_s28 + $0x98] sm:$0xff]  ;;  %v5248_v23 = vld [vmem:[%s7519_s1 + $0x630] sm:$0xff]  }
 0x170   : > { %v4397_v18 = vpop.f32.mrf.mxu1  ;;  %v4335_v43 = vpop.f32.mrf.mxu0  ;;  %3408 = vmatmul.mubr.bf16.gmra.mxu0 %v7051_v20  ;;  %v566_v61 = vrot.slane %v5260_v48, 7 }
 0x171   : > { %v2823_v34 = vadd.f32 %v4334_v15, %v6788_v46  ;;  %v4398_v31 = vadd.f32 %v4397_v18, %v4396_v4  ;;  %3545 = vmatprep.mubr.bf16.mxu0 %v7665_v58  ;;  %v635_v58 = vrot.slane %v564_v32, 1  ;;  %v5249_v32 = vld [vmem:[%s7519_s1 + $0x628] sm:$0xff]  }
 0x172   : > { %v4399_v37 = vpop.f32.mrf.mxu1  ;;  %3505 = vmatmul.mubr.bf16.gmra.mxu1 %v7056_v27  ;;  %v4336_v12 = vpop.f32.mrf.mxu0 }
 0x173   : > { %v7067_v22 = vadd.f32 %v4398_v31, %v2823_v34  ;;  %v4337_v55 = vadd.f32 %v4336_v12, %v4335_v43  ;;  %3642 = vmatprep.mubr.bf16.mxu1 %v7666_v26  ;;  %v636_v59 = vsel %vm248_vm0, %v634_v38, %v635_v58  ;;  %v567_v34 = vsel %vm558_vm4, %v565_v19, %v566_v61 }
 0x174   : > { %v4400_v28 = vpop.f32.mrf.mxu1  ;;  %v4338_v46 = vpop.f32.mrf.mxu0 }
 0x175   : > { %v2828_v9 = vadd.f32 %v4337_v55, %v6806_v52  ;;  %v4401_v17 = vadd.f32 %v4400_v28, %v4399_v37  ;;  %v647_v52 = vsel %vm248_vm0, %v635_v58, %v646_v24  ;;  %v655_v28 = vrot.slane %v567_v34, 1  ;;  %v5261_v58 = vld [vmem:[%s5553_s28 + $0xa8] sm:$0xff] }
 0x176   : > { %v4402_v21 = vpop.f32.mrf.mxu1  ;;  %v4339_v4 = vpop.f32.mrf.mxu0  ;;  %v877_v55 = vpack.c.bf16 %v647_v52, %v636_v59  ;;  %v568_v24 = vrot.slane %v5261_v58, 7  ;;  %v5251_v52 = vld [vmem:[%s7519_s1 + $0x618] sm:$0xff]  }
 0x177   : > { %v7076_v26 = vadd.f32 %v4401_v17, %v2828_v9  ;;  %v4340_v15 = vadd.f32 %v4339_v4, %v4338_v46  ;;  %v666_v46 = vrot.slane %v566_v61, 1  ;;  %v5262_v9 = vld [vmem:[%s5553_s28 + $0xb0] sm:$0xff] }
 0x178   : > { %v4403_v18 = vpop.f32.mrf.mxu1  ;;  %v4421_v54 = vpop.f32.mrf.mxu0  ;;  %3546 = vmatmul.mubr.bf16.vlgmr.msra.gmra.mxu0 %v868_v1  ;;  %v569_v17 = vrot.slane %v5262_v9, 7 }
 0x179   : > { %v2831_v43 = vadd.f32 %v4340_v15, %v6828_v16  ;;  %v4404_v8 = vadd.f32 %v4403_v18, %v4402_v21  ;;  %4934 = vmatpush3.bf16.msra.mxu0 %v6957_v53  ;;  %3553 = vmatprep.mubr.bf16.mxu0 %v7671_v50  ;;  %v667_v4 = vsel %vm248_vm0, %v655_v28, %v666_v46 }
 0x17a   : > { %v4485_v31 = vpop.f32.mrf.mxu1  ;;  %3643 = vmatmul.mubr.bf16.vlgmr.msra.gmra.mxu1 %v6797_v29  ;;  %v4422_v11 = vpop.f32.mrf.mxu0  ;;  %4935 = vmatprep.subr.bf16.mxu0 %v5248_v23  ;;  %v654_v29 = vrot.slane %v565_v19, 1 }
 0x17b   : > { %v7088_v37 = vadd.f32 %v4404_v8, %v2831_v43  ;;  %4973 = vmatpush3.bf16.msra.mxu1 %v6957_v53  ;;  %v4423_v16 = vadd.f32 %v4422_v11, %v4421_v54  ;;  %3650 = vmatprep.mubr.bf16.mxu1 %v7672_v60  ;;  %v5250_v60 = vld [vmem:[%s7519_s1 + $0x620] sm:$0xff]   ;;  %v570_v54 = vsel %vm558_vm4, %v568_v24, %v569_v17 }
 0x17c   : > { %v4486_v50 = vpop.f32.mrf.mxu1  ;;  %v4424_v12 = vpop.f32.mrf.mxu0  ;;  %4966 = vmatprep.subr.bf16.mxu1 %v5248_v23  ;;  %v675_v11 = vrot.slane %v570_v54, 1 }
 0x17d   : > { %v2966_v1 = vadd.f32 %v4423_v16, %v6850_v5  ;;  %v4487_v38 = vadd.f32 %v4486_v50, %v4485_v31  ;;  %4936 = vmatpush3.bf16.msra.mxu0 %v5248_v23  ;;  %v656_v5 = vsel %vm248_vm0, %v654_v29, %v655_v28  ;;  %v674_v31 = vrot.slane %v568_v24, 1  ;;  %v5264_v29 = vld [vmem:[%s5553_s28 + $0xc8] sm:$0xff] }
 0x17e   : > { %v4488_v49 = vpop.f32.mrf.mxu1  ;;  %v4425_v53 = vpop.f32.mrf.mxu0  ;;  %4937 = vmatprep.subr.bf16.mxu0 %v5249_v32  ;;  %v886_v34 = vpack.c.bf16 %v667_v4, %v656_v5  ;;  %v572_v28 = vrot.slane %v5264_v29, 7 }
 0x17f   : > { %v7098_v48 = vadd.f32 %v4487_v38, %v2966_v1  ;;  %v4426_v19 = vadd.f32 %v4425_v53, %v4424_v12  ;;  %4974 = vmatpush3.bf16.msra.mxu1 %v5248_v23  ;;  %v5263_v12 = vld [vmem:[%s5553_s28 + $0xc0] sm:$0xff] }
 0x180   : > { %v4489_v61 = vpop.f32.mrf.mxu1  ;;  %v4427_v21 = vpop.f32.mrf.mxu0  ;;  %3554 = vmatmul.mubr.bf16.gmra.mxu0 %v877_v55  ;;  %4967 = vmatprep.subr.bf16.mxu1 %v5249_v32  ;;  %v571_v55 = vrot.slane %v5263_v12, 7  ;;  %v706_v54 = vrot.slane %v572_v28, 1 }
 0x181   : > { %v2969_v15 = vadd.f32 %v4426_v19, %v6870_v14  ;;  %v4490_v18 = vadd.f32 %v4489_v61, %v4488_v49  ;;  %3561 = vmatprep.mubr.bf16.mxu0 %v7677_v47  ;;  %4938 = vmatpush3.bf16.msra.mxu0 %v5249_v32  ;;  %v5253_v61 = vld [vmem:[%s7519_s1 + $0x608] sm:$0xff]  }
 0x182   : > { %v4491_v59 = vpop.f32.mrf.mxu1  ;;  %3651 = vmatmul.mubr.bf16.gmra.mxu1 %v6838_v6  ;;  %v4428_v23 = vpop.f32.mrf.mxu0  ;;  %4939 = vmatprep.subr.bf16.mxu0 %v5250_v60  ;;  %v686_v6 = vrot.slane %v569_v17, 1  ;;  %v573_v53 = vsel %vm558_vm4, %v571_v55, %v572_v28  ;;  %v694_v5 = vrot.slane %v571_v55, 1  ;;  %v5267_v28 = vld [vmem:[%s5553_s28 + $0xf0] sm:$0xff] }
 0x183   : > { %v7109_v43 = vadd.f32 %v4490_v18, %v2969_v15  ;;  %v4429_v14 = vadd.f32 %v4428_v23, %v4427_v21  ;;  %3658 = vmatprep.mubr.bf16.mxu1 %v7678_v56  ;;  %4975 = vmatpush3.bf16.msra.mxu1 %v5249_v32  ;;  %v5252_v56 = vld [vmem:[%s7519_s1 + $0x610] sm:$0xff]   ;;  %v695_v18 = vrot.slane %v573_v53, 1  ;;  %v5266_v23 = vld [vmem:[%s5553_s28 + $0xe0] sm:$0xff] }
 0x184   : > { %v4492_v47 = vpop.f32.mrf.mxu1  ;;  %v4430_v8 = vpop.f32.mrf.mxu0  ;;  %4968 = vmatprep.subr.bf16.mxu1 %v5250_v60  ;;  %v687_v9 = vsel %vm248_vm0, %v675_v11, %v686_v6 }
 0x185   : > { %v2974_v16 = vadd.f32 %v4429_v14, %v6892_v35  ;;  %v4493_v50 = vadd.f32 %v4492_v47, %v4491_v59  ;;  %4940 = vmatpush3.bf16.msra.mxu0 %v5250_v60  ;;  %v676_v35 = vsel %vm248_vm0, %v674_v31, %v675_v11  ;;  %v575_v14 = vrot.slane %v5266_v23, 7 }
 0x186   : > { %v4494_v46 = vpop.f32.mrf.mxu1  ;;  %v4431_v1 = vpop.f32.mrf.mxu0  ;;  %4941 = vmatprep.subr.bf16.mxu0 %v5251_v52 }
 0x187   : > { %v7118_v32 = vadd.f32 %v4493_v50, %v2974_v16  ;;  %v4432_v38 = vadd.f32 %v4431_v1, %v4430_v8  ;;  %4976 = vmatpush3.bf16.msra.mxu1 %v5250_v60  ;;  %v707_v50 = vsel %vm248_vm0, %v695_v18, %v706_v54  ;;  %v5268_v1 = vld [vmem:[%s5553_s28 + $0xf8] sm:$0xff]  ;;  %v726_v53 = vrot.slane %v575_v14, 1 }
 0x188   : > { %v4495_v58 = vpop.f32.mrf.mxu1  ;;  %v4433_v24 = vpop.f32.mrf.mxu0  ;;  %3562 = vmatmul.mubr.bf16.gmra.mxu0 %v886_v34  ;;  %4969 = vmatprep.subr.bf16.mxu1 %v5251_v52 }
 0x189   : > { %v2977_v17 = vadd.f32 %v4432_v38, %v6912_v62  ;;  %v4496_v49 = vadd.f32 %v4495_v58, %v4494_v46  ;;  %3569 = vmatprep.mubr.bf16.mxu0 %v6057_v2  ;;  %4942 = vmatpush3.bf16.msra.mxu0 %v5251_v52  ;;  %v895_v2 = vpack.c.bf16 %v687_v9, %v676_v35  ;;  %v577_v46 = vrot.slane %v5267_v28, 7 }
 0x18a   : > { %v4497_v19 = vpop.f32.mrf.mxu1  ;;  %3659 = vmatmul.mubr.bf16.gmra.mxu1 %v6880_v3  ;;  %v4434_v60 = vpop.f32.mrf.mxu0  ;;  %4943 = vmatprep.subr.bf16.mxu0 %v5252_v56  ;;  %v5265_v3 = vld [vmem:[%s5553_s28 + $0xd8] sm:$0xff]  ;;  %v578_v38 = vrot.slane %v5268_v1, 7 }
 0x18b   : > { %v7129_v21 = vadd.f32 %v4496_v49, %v2977_v17  ;;  %v4435_v62 = vadd.f32 %v4434_v60, %v4433_v24  ;;  %3666 = vmatprep.mubr.bf16.mxu1 %v6519_v44  ;;  %4977 = vmatpush3.bf16.msra.mxu1 %v5251_v52  ;;  %v574_v59 = vrot.slane %v5265_v3, 7  ;;  %v5254_v44 = vld [vmem:[%s7519_s1 + $0x600] sm:$0xff]  }
 0x18c   : > { %v4498_v4 = vpop.f32.mrf.mxu1  ;;  %v4436_v15 = vpop.f32.mrf.mxu0  ;;  %4970 = vmatprep.subr.bf16.mxu1 %v5252_v56 }
 0x18d   : > { %v2982_v47 = vadd.f32 %v4435_v62, %v6934_v33  ;;  %v4499_v8 = vadd.f32 %v4498_v4, %v4497_v19  ;;  %4944 = vmatpush3.bf16.msra.mxu0 %v5252_v56  ;;  %v696_v33 = vsel %vm248_vm0, %v694_v5, %v695_v18  ;;  %v576_v12 = vsel %vm558_vm4, %v574_v59, %v575_v14  ;;  %v7684_v19 = vld [vmem:[#allocation27_spill] sm:$0xff] }
 0x18e   : > { %v4500_v34 = vpop.f32.mrf.mxu1  ;;  %v4437_v31 = vpop.f32.mrf.mxu0  ;;  %4945 = vmatprep.subr.bf16.mxu0 %v5253_v61  ;;  %v904_v49 = vpack.c.bf16 %v707_v50, %v696_v33  ;;  %v579_v62 = vsel %vm558_vm4, %v577_v46, %v578_v38  ;;  %v7157_v4 = vld [vmem:[%s5553_s28 + $0x110] sm:$0xff]  ;;  %v734_v14 = vrot.slane %v577_v46, 1 }
 0x18f   : > { %v7138_v52 = vadd.f32 %v4499_v8, %v2982_v47  ;;  %v4438_v11 = vadd.f32 %v4437_v31, %v4436_v15  ;;  %4978 = vmatpush3.bf16.msra.mxu1 %v5252_v56  ;;  %v7160_v15 = vld [vmem:[%s5553_s28 + $0x118] sm:$0xf]  ;;  %v735_v47 = vrot.slane %v579_v62, 1 }
 0x190   : > { %v4501_v6 = vpop.f32.mrf.mxu1  ;;  %v4439_v16 = vpop.f32.mrf.mxu0  ;;  %3570 = vmatmul.mubr.bf16.gmra.mxu0 %v895_v2  ;;  %4971 = vmatprep.subr.bf16.mxu1 %v5253_v61  ;;  %v7154_v2 = vld [vmem:[%s5553_s28 + $0x108] sm:$0xff]  ;;  %s175_s28 = sand.u32 1, %s5337_s13  }
 0x191   : > { %v2985_v55 = vadd.f32 %v4438_v11, %v6959_v40  ;;  %v4502_v29 = vadd.f32 %v4501_v6, %v4500_v34  ;;  %3577 = vmatprep.mubr.bf16.mxu0 %v6304_v39  ;;  %4946 = vmatpush3.bf16.msra.mxu0 %v5253_v61  ;;  %v714_v40 = vrot.slane %v574_v59, 1  ;;  %v715_v39 = vrot.slane %v576_v12, 1  ;;  %v7685_v34 = vld [vmem:[#allocation5_spill] sm:$0xff]  ;;  %s3936_s29 = sshll.u32 %s175_s28, 7  ;;  %s7467_s27 = scalar_lea.sflag [#allocation3], %s175_s28 }
 0x192   : > { %v4503_v56 = vpop.f32.mrf.mxu1  ;;  %3667 = vmatmul.mubr.bf16.gmra.mxu1 %v6924_v10  ;;  %v4440_v58 = vpop.f32.mrf.mxu0  ;;  %4947 = vmatprep.subr.bf16.mxu0 %v5254_v44  ;;  %v589_v8 = vrot.slane %v7154_v2, 2  ;;  %v590_v6 = vrot.slane %v7157_v4, 2  ;;  %v746_v12 = vrot.slane %v578_v38, 1  ;;  %s7422_s6 = scalar_lea.vmem [#allocation2], %s3936_s29 }
 0x193   : > { %v7148_v24 = vadd.f32 %v4502_v29, %v2985_v55  ;;  %v4441_v35 = vadd.f32 %v4440_v58, %v4439_v16  ;;  %3674 = vmatprep.mubr.bf16.mxu1 %v6541_v41  ;;  %4979 = vmatpush3.bf16.msra.mxu1 %v5253_v61  ;;  %v716_v54 = vsel %vm248_vm0, %v714_v40, %v715_v39  ;;  %v592_v16 = vrot.slane %v7160_v15, 2  ;;  %s3853_s10 = sshll.u32 %s7422_s6, 4  ;;  %s7460_s10 = int_to_ptr.vmem [resolvable:$true] %s3853_s10 }
 0x194   : > { %v4504_v9 = vpop.f32.mrf.mxu1  ;;  %v4442_v17 = vpop.f32.mrf.mxu0  ;;  %4972 = vmatprep.subr.bf16.mxu1 %v5254_v44  ;;  %v727_v23 = vsel %vm248_vm0, %v715_v39, %v726_v53  ;;  %v747_v38 = vsel %vm248_vm0, %v735_v47, %v746_v12  ;;  %s5269_s9 = scalar_lea.vmem %s7460_s10, 2048  ;;  %p5276_p2 = scmp.lt.s32.totalorder %s7460_s10, %s5274_s5 }
 0x195   : > { %v2990_v10 = vadd.f32 %v4441_v35, %v7684_v19  ;;  %v4505_v60 = vadd.f32 %v4504_v9, %v4503_v56  ;;  %4948 = vmatpush3.bf16.msra.mxu0 %v5254_v44  ;;  %v913_v1 = vpack.c.bf16 %v727_v23, %v716_v54  ;;  %v736_v56 = vsel %vm248_vm0, %v734_v14, %v735_v47  ;;  %p5270_p13 = scmp.ne.s32.totalorder %s7460_s10, %s5269_s9  ;;  %p5277_p4 = scmp.lt.s32.totalorder %s5275_s24, %s5269_s9 }
 0x196   : > { %v4506_v5 = vpop.f32.mrf.mxu1  ;;  %v4443_v41 = vpop.f32.mrf.mxu0  ;;  %v591_v35 = vsel %vm305_vm2, %v589_v8, %v590_v6  ;;  %v593_v40 = vsel %vm305_vm2, %v590_v6, %v592_v16  ;;  %v922_v14 = vpack.c.bf16 %v747_v38, %v736_v56 }
 0x197   : > { %v7162_v61 = vadd.f32 %v4505_v60, %v2990_v10  ;;  %v4444_v18 = vadd.f32 %v4443_v41, %v4442_v17  ;;  %4980 = vmatpush3.bf16.msra.mxu1 %v5254_v44  ;;  %v7686_v44 = vld [vmem:[#allocation18_spill] sm:$0xff]  ;;  %v584_v17 = vrot.slane %v7154_v2, 1  ;;  %v587_v10 = vrot.slane %v7160_v15, 1  ;;  %p5271_p0 = pnand %p5270_p13, %p5437_p3  ;;  %p5278_p5 = por %p5277_p4, %p5276_p2 }
 0x198   : > { %v4507_v3 = vpop.f32.mrf.mxu1  ;;  %v4445_v59 = vpop.f32.mrf.mxu0  ;;  %3578 = vmatmul.mubr.bf16.gmra.mxu0 %v904_v49  ;;  %v581_v49 = vrot.slane %v7157_v4, 7  ;;  %v761_v41 = vrot.slane %v593_v40, 1 }
 0x199   : > { %v2993_v31 = vadd.f32 %v4444_v18, %v7685_v34  ;;  %v4508_v11 = vadd.f32 %v4507_v3, %v4506_v5  ;;  %3585 = vmatprep.mubr.bf16.mxu0 %v6552_v0  ;;  %v760_v5 = vrot.slane %v591_v35, 1  ;;  %v770_v18 = vrot.slane %v592_v16, 1  ;;  %p5272_p1 = pneg %p5271_p0 }
 0x19a   : > { %v4509_v33 = vpop.f32.mrf.mxu1  ;;  %3675 = vmatmul.mubr.bf16.gmra.mxu1 %v7686_v44  ;;  %v4446_v50 = vpop.f32.mrf.mxu0 }
 0x19b   : > { %v7172_v55 = vadd.f32 %v4508_v11, %v2993_v31  ;;  %v4447_v29 = vadd.f32 %v4446_v50, %v4445_v59  ;;  %3682 = vmatprep.mubr.bf16.mxu1 %v7033_v7  ;;  %v580_v7 = vrot.slane %v7154_v2, 7  ;;  %p5279_p6 = pnand %p5278_p5, %p5272_p1 }
 0x19c   : > { %v4510_v28 = vpop.f32.mrf.mxu1  ;;  %v4448_v46 = vpop.f32.mrf.mxu0 }
 0x19d   : > { %v2998_v0 = vadd.f32 %v4447_v29, %v7008_v36  ;;  %v4511_v58 = vadd.f32 %v4510_v28, %v4509_v33  ;;  %v585_v36 = vrot.slane %v7157_v4, 1  ;;  %v582_v47 = vsel %vm558_vm4, %v580_v7, %v581_v49 }
 0x19e   : > { %v4512_v39 = vpop.f32.mrf.mxu1  ;;  %v4449_v9 = vpop.f32.mrf.mxu0  ;;  %v754_v33 = vrot.slane %v580_v7, 1  ;;  %v755_v12 = vrot.slane %v582_v47, 1  ;;  %v766_v29 = vrot.slane %v581_v49, 1  ;;  %v595_v47 = vrot.slane %v7157_v4, 3 }
 0x19f   : > { %v7183_v53 = vadd.f32 %v4511_v58, %v2998_v0  ;;  %v4450_v19 = vadd.f32 %v4449_v9, %v4448_v46  ;;  %v586_v31 = vsel %vm248_vm0, %v584_v17, %v585_v36  ;;  %v588_v11 = vsel %vm248_vm0, %v585_v36, %v587_v10 }
 0x1a0   : > { %v4513_v60 = vpop.f32.mrf.mxu1  ;;  %v4451_v62 = vpop.f32.mrf.mxu0  ;;  %3586 = vmatmul.mubr.bf16.gmra.mxu0 %v913_v1  ;;  %v932_v16 = vpack.c.bf16 %v588_v11, %v586_v31  ;;  %v758_v1 = vrot.slane %v588_v11, 1  ;;  %v768_v58 = vrot.slane %v587_v10, 1  ;;  %v767_v17 = vsel %vm248_vm0, %v755_v12, %v766_v29 }
 0x1a1   : > { %v3001_v54 = vadd.f32 %v4450_v19, %v7021_v13  ;;  %v4514_v3 = vadd.f32 %v4513_v60, %v4512_v39  ;;  %3593 = vmatprep.mubr.bf16.mxu0 %v7051_v20  ;;  %v762_v20 = vsel %vm248_vm0, %v760_v5, %v761_v41 }
 0x1a2   : > { %v4515_v59 = vpop.f32.mrf.mxu1  ;;  %3683 = vmatmul.mubr.bf16.gmra.mxu1 %v6554_v45  ;;  %v4452_v23 = vpop.f32.mrf.mxu0  ;;  %v771_v45 = vsel %vm248_vm0, %v761_v41, %v770_v18  ;;  %v769_v60 = vsel %vm248_vm0, %v758_v1, %v768_v58 }
 0x1a3   : > { %v7191_v8 = vadd.f32 %v4514_v3, %v3001_v54  ;;  %v4453_v34 = vadd.f32 %v4452_v23, %v4451_v62  ;;  %3690 = vmatprep.mubr.bf16.mxu1 %v7056_v27  ;;  %v757_v27 = vrot.slane %v586_v31, 1  ;;  %v934_v35 = vpack.c.bf16 %v771_v45, %v762_v20 }
 0x1a4   : > { %v4516_v13 = vpop.f32.mrf.mxu1  ;;  %v4454_v6 = vpop.f32.mrf.mxu0  ;;  %v597_v31 = vrot.slane %v7160_v15, 3 }
 0x1a5   : > { %v3006_v44 = vadd.f32 %v4453_v34, %v7035_v30  ;;  %v4517_v50 = vadd.f32 %v4516_v13, %v4515_v59  ;;  %v756_v30 = vsel %vm248_vm0, %v754_v33, %v755_v12  ;;  %v759_v10 = vsel %vm248_vm0, %v757_v27, %v758_v1 }
 0x1a6   : > { %v4518_v28 = vpop.f32.mrf.mxu1  ;;  %v4455_v46 = vpop.f32.mrf.mxu0  ;;  %v931_v5 = vpack.c.bf16 %v767_v17, %v756_v30  ;;  %v933_v59 = vpack.c.bf16 %v769_v60, %v759_v10  ;;  %v598_v15 = vsel %vm362_vm1, %v595_v47, %v597_v31  ;;  %v772_v58 = vrot.slane %v597_v31, 1  ;;  %v7690_v30 = vld [vmem:[#allocation8_spill] sm:$0xff] }
 0x1a7   : > { %v7199_v56 = vadd.f32 %v4517_v50, %v3006_v44  ;;  %v4456_v0 = vadd.f32 %v4455_v46, %v4454_v6  ;;  %v7688_v44 = vld [vmem:[#allocation14_spill] sm:$0xff] }
 0x1a8   : > { %v4519_v40 = vpop.f32.mrf.mxu1  ;;  %v4457_v39 = vpop.f32.mrf.mxu0  ;;  %3594 = vmatmul.mubr.bf16.gmra.mxu0 %v922_v14  ;;  %v594_v14 = vrot.slane %v7154_v2, 3 }
 0x1a9   : > { %v3009_v9 = vadd.f32 %v4456_v0, %v7044_v63  ;;  %v4520_v38 = vadd.f32 %v4519_v40, %v4518_v28  ;;  %3601 = vmatprep.mubr.bf16.mxu0 %v932_v16  ;;  %v764_v0 = vrot.slane %v598_v15, 1 }
 0x1aa   : > { %v4521_v7 = vpop.f32.mrf.mxu1  ;;  %3691 = vmatmul.mubr.bf16.gmra.mxu1 %v7026_v42  ;;  %v4458_v49 = vpop.f32.mrf.mxu0  ;;  %v596_v2 = vsel %vm362_vm1, %v594_v14, %v595_v47 }
 0x1ab   : > { %v7205_v19 = vadd.f32 %v4520_v38, %v3009_v9  ;;  %v4459_v36 = vadd.f32 %v4458_v49, %v4457_v39  ;;  %3698 = vmatprep.mubr.bf16.mxu1 %v934_v35  ;;  %v763_v46 = vrot.slane %v596_v2, 1  ;;  %v7689_v39 = vld [vmem:[#allocation24_spill] sm:$0xff]  ;;  %v773_v10 = vsel %vm248_vm0, %v764_v0, %v772_v58 }
 0x1ac   : > { %v4522_v62 = vpop.f32.mrf.mxu1  ;;  %v4460_v63 = vpop.f32.mrf.mxu0 }
 0x1ad   : > { %v3014_v41 = vadd.f32 %v4459_v36, %v7058_v57  ;;  %v4523_v18 = vadd.f32 %v4522_v62, %v4521_v7  ;;  %v7687_v57 = vld [vmem:[#allocation22_spill] sm:$0xff]  ;;  %v765_v36 = vsel %vm248_vm0, %v763_v46, %v764_v0 }
 0x1ae   : > { %v4524_v54 = vpop.f32.mrf.mxu1  ;;  %v4461_v3 = vpop.f32.mrf.mxu0 }
 0x1af   : > { %v7210_v23 = vadd.f32 %v4523_v18, %v3014_v41  ;;  %v4462_v42 = vadd.f32 %v4461_v3, %v4460_v63  ;;  %v935_v18 = vpack.c.bf16 %v773_v10, %v765_v36 }
 0x1b0   : > { %v4525_v34 = vpop.f32.mrf.mxu1  ;;  %v4463_v11 = vpop.f32.mrf.mxu0  ;;  %3602 = vmatmul.mubr.bf16.gmra.mxu0 %v931_v5 }
 0x1b1   : > { %v3017_v13 = vadd.f32 %v4462_v42, %v7067_v22  ;;  %v4526_v6 = vadd.f32 %v4525_v34, %v4524_v54  ;;  %4949 = vmatprep.mubr.bf16.mxu0 %v7687_v57  ;;  %v7691_v42 = vld [vmem:[#allocation30_spill] sm:$0xff] }
 0x1b2   : > { %v4527_v16 = vpop.f32.mrf.mxu1  ;;  %3699 = vmatmul.mubr.bf16.gmra.mxu1 %v933_v59  ;;  %v4464_v20 = vpop.f32.mrf.mxu0 }
 0x1b3   : > { %v7217_v45 = vadd.f32 %v4526_v6, %v3017_v13  ;;  %v4465_v33 = vadd.f32 %v4464_v20, %v4463_v11  ;;  %4957 = vmatprep.mubr.bf16.mxu1 %v7688_v44 }
 0x1b4   : > { %v4528_v4 = vpop.f32.mrf.mxu1  ;;  %v4466_v50 = vpop.f32.mrf.mxu0 }
 0x1b5   : > { %v3022_v12 = vadd.f32 %v4465_v33, %v7076_v26  ;;  %v4529_v22 = vadd.f32 %v4528_v4, %v4527_v16 }
 0x1b6   : > { %v4530_v29 = vpop.f32.mrf.mxu1  ;;  %v4467_v28 = vpop.f32.mrf.mxu0 }
 0x1b7   : > { %v7223_v27 = vadd.f32 %v4529_v22, %v3022_v12  ;;  %v4468_v1 = vadd.f32 %v4467_v28, %v4466_v50 }
 0x1b8   : > { %v4531_v35 = vpop.f32.mrf.mxu1  ;;  %v4549_v40 = vpop.f32.mrf.mxu0  ;;  %4950 = vmatmul.mubr.bf16.vlgmr.msra.gmra.mxu0 %v7689_v39 }
 0x1b9   : > { %v3025_v9 = vadd.f32 %v4468_v1, %v7088_v37  ;;  %v4532_v38 = vadd.f32 %v4531_v35, %v4530_v29  ;;  %4953 = vmatprep.mubr.bf16.mxu0 %v7690_v30 }
 0x1ba   : > { %v4613_v17 = vpop.f32.mrf.mxu1  ;;  %4958 = vmatmul.mubr.bf16.vlgmr.msra.gmra.mxu1 %v7010_v25  ;;  %v4550_v26 = vpop.f32.mrf.mxu0 }
 0x1bb   : > { %v7229_v7 = vadd.f32 %v4532_v38, %v3025_v9  ;;  %v4551_v49 = vadd.f32 %v4550_v26, %v4549_v40  ;;  %4961 = vmatprep.mubr.bf16.mxu1 %v7037_v51 }
 0x1bc   : > { %v4614_v60 = vpop.f32.mrf.mxu1  ;;  %v4552_v62 = vpop.f32.mrf.mxu0 }
 0x1bd   : > { %v3160_v37 = vadd.f32 %v4551_v49, %v7098_v48  ;;  %v4615_v63 = vadd.f32 %v4614_v60, %v4613_v17 }
 0x1be   : > { %v4616_v5 = vpop.f32.mrf.mxu1  ;;  %v4553_v41 = vpop.f32.mrf.mxu0 }
 0x1bf   : > { %v7235_v54 = vadd.f32 %v4615_v63, %v3160_v37  ;;  %v4554_v25 = vadd.f32 %v4553_v41, %v4552_v62 }
 0x1c0   : > { %v4617_v3 = vpop.f32.mrf.mxu1  ;;  %v4555_v59 = vpop.f32.mrf.mxu0  ;;  %4954 = vmatmul.mubr.bf16.gmra.mxu0 %v7691_v42 }
 0x1c1   : > { %v3163_v51 = vadd.f32 %v4554_v25, %v7109_v43  ;;  %v4618_v14 = vadd.f32 %v4617_v3, %v4616_v5 }
 0x1c2   : > { %v4619_v47 = vpop.f32.mrf.mxu1  ;;  %4962 = vmatmul.mubr.bf16.gmra.mxu1 %v935_v18  ;;  %v4556_v34 = vpop.f32.mrf.mxu0 }
 0x1c3   : > { %v7239_v31 = vadd.f32 %v4618_v14, %v3163_v51  ;;  %v4557_v48 = vadd.f32 %v4556_v34, %v4555_v59 }
 0x1c4   : > { %v4620_v11 = vpop.f32.mrf.mxu1  ;;  %v4558_v13 = vpop.f32.mrf.mxu0 }
 0x1c5   : > { %v3168_v6 = vadd.f32 %v4557_v48, %v7118_v32  ;;  %v4621_v57 = vadd.f32 %v4620_v11, %v4619_v47 }
 0x1c6   : > { %v4622_v16 = vpop.f32.mrf.mxu1  ;;  %v4559_v20 = vpop.f32.mrf.mxu0 }
 0x1c7   : > { %v7242_v33 = vadd.f32 %v4621_v57, %v3168_v6  ;;  %v4560_v44 = vadd.f32 %v4559_v20, %v4558_v13 }
 0x1c8   : > { %v4623_v2 = vpop.f32.mrf.mxu1  ;;  %v4561_v4 = vpop.f32.mrf.mxu0 }
 0x1c9   : > { %v3171_v43 = vadd.f32 %v4560_v44, %v7129_v21  ;;  %v4624_v50 = vadd.f32 %v4623_v2, %v4622_v16 }
 0x1ca   : > { %v4625_v15 = vpop.f32.mrf.mxu1  ;;  %v4562_v12 = vpop.f32.mrf.mxu0 }
 0x1cb   : > { %v7245_v22 = vadd.f32 %v4624_v50, %v3171_v43  ;;  %v4563_v29 = vadd.f32 %v4562_v12, %v4561_v4 }
 0x1cc   : > { %v4626_v28 = vpop.f32.mrf.mxu1  ;;  %v4564_v46 = vpop.f32.mrf.mxu0 }
 0x1cd   : > { %v3176_v32 = vadd.f32 %v4563_v29, %v7138_v52  ;;  %v4627_v1 = vadd.f32 %v4626_v28, %v4625_v15 }
 0x1ce   : > { %v4628_v0 = vpop.f32.mrf.mxu1  ;;  %v4565_v58 = vpop.f32.mrf.mxu0 }
 0x1cf   : > { %v7248_v35 = vadd.f32 %v4627_v1, %v3176_v32  ;;  %v4566_v40 = vadd.f32 %v4565_v58, %v4564_v46 }
 0x1d0   : > { %v4629_v39 = vpop.f32.mrf.mxu1  ;;  %v4567_v9 = vpop.f32.mrf.mxu0 }
 0x1d1   : > { %v3179_v21 = vadd.f32 %v4566_v40, %v7148_v24  ;;  %v4630_v38 = vadd.f32 %v4629_v39, %v4628_v0 }
 0x1d2   : > { %v4631_v30 = vpop.f32.mrf.mxu1  ;;  %v4568_v17 = vpop.f32.mrf.mxu0 }
 0x1d3   : > { %v7251_v26 = vadd.f32 %v4630_v38, %v3179_v21  ;;  %v4569_v49 = vadd.f32 %v4568_v17, %v4567_v9 }
 0x1d4   : > { %v4632_v36 = vpop.f32.mrf.mxu1  ;;  %v4570_v10 = vpop.f32.mrf.mxu0 }
 0x1d5   : > { %v3184_v52 = vadd.f32 %v4569_v49, %v7162_v61  ;;  %v4633_v60 = vadd.f32 %v4632_v36, %v4631_v30 }
 0x1d6   : > { %v4634_v62 = vpop.f32.mrf.mxu1  ;;  %v4571_v37 = vpop.f32.mrf.mxu0 }
 0x1d7   : > { %v7254_v63 = vadd.f32 %v4633_v60, %v3184_v52  ;;  %v4572_v5 = vadd.f32 %v4571_v37, %v4570_v10 }
 0x1d8   : > { %v4635_v41 = vpop.f32.mrf.mxu1  ;;  %v4573_v18 = vpop.f32.mrf.mxu0 }
 0x1d9   : > { %v3187_v24 = vadd.f32 %v4572_v5, %v7172_v55  ;;  %v4636_v25 = vadd.f32 %v4635_v41, %v4634_v62 }
 0x1da   : > { %v4637_v3 = vpop.f32.mrf.mxu1  ;;  %v4574_v59 = vpop.f32.mrf.mxu0 }
 0x1db   : > { %v7257_v42 = vadd.f32 %v4636_v25, %v3187_v24  ;;  %v4575_v51 = vadd.f32 %v4574_v59, %v4573_v18 }
 0x1dc   : > { %v4638_v14 = vpop.f32.mrf.mxu1  ;;  %v4576_v47 = vpop.f32.mrf.mxu0 }
 0x1dd   : > { %v3192_v61 = vadd.f32 %v4575_v51, %v7183_v53  ;;  %v4639_v34 = vadd.f32 %v4638_v14, %v4637_v3 }
 0x1de   : > { %v4640_v48 = vpop.f32.mrf.mxu1  ;;  %v4577_v11 = vpop.f32.mrf.mxu0 }
 0x1df   : > { %v7260_v13 = vadd.f32 %v4639_v34, %v3192_v61  ;;  %v4578_v6 = vadd.f32 %v4577_v11, %v4576_v47 }
 0x1e0   : > { %v4641_v57 = vpop.f32.mrf.mxu1  ;;  %v4579_v16 = vpop.f32.mrf.mxu0 }
 0x1e1   : > { %v3195_v55 = vadd.f32 %v4578_v6, %v7191_v8  ;;  %v4642_v20 = vadd.f32 %v4641_v57, %v4640_v48 }
 0x1e2   : > { %v4643_v44 = vpop.f32.mrf.mxu1  ;;  %v4580_v2 = vpop.f32.mrf.mxu0 }
 0x1e3   : > { %v7263_v4 = vadd.f32 %v4642_v20, %v3195_v55  ;;  %v4581_v43 = vadd.f32 %v4580_v2, %v4579_v16 }
 0x1e4   : > { %v4644_v50 = vpop.f32.mrf.mxu1  ;;  %v4582_v15 = vpop.f32.mrf.mxu0 }
 0x1e5   : > { %v3200_v53 = vadd.f32 %v4581_v43, %v7199_v56  ;;  %v4645_v12 = vadd.f32 %v4644_v50, %v4643_v44 }
 0x1e6   : > { %v4646_v29 = vpop.f32.mrf.mxu1  ;;  %v4583_v28 = vpop.f32.mrf.mxu0 }
 0x1e7   : > { %v7266_v46 = vadd.f32 %v4645_v12, %v3200_v53  ;;  %v4584_v32 = vadd.f32 %v4583_v28, %v4582_v15 }
 0x1e8   : > { %v4647_v1 = vpop.f32.mrf.mxu1  ;;  %v4585_v0 = vpop.f32.mrf.mxu0 }
 0x1e9   : > { %v3203_v8 = vadd.f32 %v4584_v32, %v7205_v19  ;;  %v4648_v58 = vadd.f32 %v4647_v1, %v4646_v29 }
 0x1ea   : > { %v4649_v40 = vpop.f32.mrf.mxu1  ;;  %v4586_v39 = vpop.f32.mrf.mxu0 }
 0x1eb   : > { %v7269_v9 = vadd.f32 %v4648_v58, %v3203_v8  ;;  %v4587_v21 = vadd.f32 %v4586_v39, %v4585_v0 }
 0x1ec   : > { %v4650_v38 = vpop.f32.mrf.mxu1  ;;  %v4588_v30 = vpop.f32.mrf.mxu0 }
 0x1ed   : > { %v3208_v56 = vadd.f32 %v4587_v21, %v7210_v23  ;;  %v4651_v17 = vadd.f32 %v4650_v38, %v4649_v40 }
 0x1ee   : > { %v4652_v49 = vpop.f32.mrf.mxu1  ;;  %v4589_v36 = vpop.f32.mrf.mxu0 }
 0x1ef   : > { %v7272_v10 = vadd.f32 %v4651_v17, %v3208_v56  ;;  %v4590_v52 = vadd.f32 %v4589_v36, %v4588_v30 }
 0x1f0   : > { %v4653_v60 = vpop.f32.mrf.mxu1  ;;  %v4591_v62 = vpop.f32.mrf.mxu0 }
 0x1f1   : > { %v3211_v19 = vadd.f32 %v4590_v52, %v7217_v45  ;;  %v4654_v37 = vadd.f32 %v4653_v60, %v4652_v49 }
 0x1f2   : > { %v4655_v5 = vpop.f32.mrf.mxu1  ;;  %v4592_v41 = vpop.f32.mrf.mxu0 }
 0x1f3   : > { %v7275_v18 = vadd.f32 %v4654_v37, %v3211_v19  ;;  %v4593_v24 = vadd.f32 %v4592_v41, %v4591_v62 }
 0x1f4   : > { %v4656_v25 = vpop.f32.mrf.mxu1  ;;  %v4594_v3 = vpop.f32.mrf.mxu0 }
 0x1f5   : > { %v3216_v23 = vadd.f32 %v4593_v24, %v7223_v27  ;;  %v4657_v59 = vadd.f32 %v4656_v25, %v4655_v5 }
 0x1f6   : > { %v4658_v51 = vpop.f32.mrf.mxu1  ;;  %v4595_v14 = vpop.f32.mrf.mxu0 }
 0x1f7   : > { %v7278_v47 = vadd.f32 %v4657_v59, %v3216_v23  ;;  %v4596_v61 = vadd.f32 %v4595_v14, %v4594_v3 }
 0x1f8   : > { %v4659_v34 = vpop.f32.mrf.mxu1  ;;  %v4677_v48 = vpop.f32.mrf.mxu0 }
 0x1f9   : > { %v3219_v45 = vadd.f32 %v4596_v61, %v7229_v7  ;;  %v4660_v11 = vadd.f32 %v4659_v34, %v4658_v51 }
 0x1fa   : > { %v4741_v6 = vpop.f32.mrf.mxu1  ;;  %v4678_v57 = vpop.f32.mrf.mxu0 }
 0x1fb   : > { %v7281_v16 = vadd.f32 %v4660_v11, %v3219_v45  ;;  %v4679_v55 = vadd.f32 %v4678_v57, %v4677_v48 }
 0x1fc   : > { %v4742_v20 = vpop.f32.mrf.mxu1  ;;  %v4680_v44 = vpop.f32.mrf.mxu0 }
 0x1fd   : > { %v3354_v27 = vadd.f32 %v4679_v55, %v7235_v54  ;;  %v4743_v2 = vadd.f32 %v4742_v20, %v4741_v6 }
 0x1fe   : > { %v4744_v43 = vpop.f32.mrf.mxu1  ;;  %v4681_v50 = vpop.f32.mrf.mxu0 }
 0x1ff   : > { %v7284_v15 = vadd.f32 %v4743_v2, %v3354_v27  ;;  %v4682_v53 = vadd.f32 %v4681_v50, %v4680_v44 }
 0x200   : > { %v4745_v12 = vpop.f32.mrf.mxu1  ;;  %v4683_v29 = vpop.f32.mrf.mxu0 }
 0x201   : > { %v3357_v7 = vadd.f32 %v4682_v53, %v7239_v31  ;;  %v4746_v28 = vadd.f32 %v4745_v12, %v4744_v43 }
 0x202   : > { %v4747_v32 = vpop.f32.mrf.mxu1  ;;  %v4684_v1 = vpop.f32.mrf.mxu0 }
 0x203   : > { %v7287_v0 = vadd.f32 %v4746_v28, %v3357_v7  ;;  %v4685_v8 = vadd.f32 %v4684_v1, %v4683_v29 }
 0x204   : > { %v4748_v58 = vpop.f32.mrf.mxu1  ;;  %v4686_v40 = vpop.f32.mrf.mxu0 }
 0x205   : > { %v3362_v54 = vadd.f32 %v4685_v8, %v7242_v33  ;;  %v4749_v39 = vadd.f32 %v4748_v58, %v4747_v32 }
 0x206   : > { %v4750_v21 = vpop.f32.mrf.mxu1  ;;  %v4687_v38 = vpop.f32.mrf.mxu0 }
 0x207   : > { %v7290_v30 = vadd.f32 %v4749_v39, %v3362_v54  ;;  %v4688_v56 = vadd.f32 %v4687_v38, %v4686_v40 }
 0x208   : > { %v4751_v17 = vpop.f32.mrf.mxu1  ;;  %v4689_v49 = vpop.f32.mrf.mxu0 }
 0x209   : > { %v3365_v31 = vadd.f32 %v4688_v56, %v7245_v22  ;;  %v4752_v36 = vadd.f32 %v4751_v17, %v4750_v21 }
 0x20a   : > { %v4753_v52 = vpop.f32.mrf.mxu1  ;;  %v4690_v60 = vpop.f32.mrf.mxu0 }
 0x20b   : > { %v7293_v62 = vadd.f32 %v4752_v36, %v3365_v31  ;;  %v4691_v19 = vadd.f32 %v4690_v60, %v4689_v49 }
 0x20c   : > { %v4754_v37 = vpop.f32.mrf.mxu1  ;;  %v4692_v5 = vpop.f32.mrf.mxu0 }
 0x20d   : > { %v3370_v33 = vadd.f32 %v4691_v19, %v7248_v35  ;;  %v4755_v41 = vadd.f32 %v4754_v37, %v4753_v52 }
 0x20e   : > { %v4756_v24 = vpop.f32.mrf.mxu1  ;;  %v4693_v25 = vpop.f32.mrf.mxu0 }
 0x20f   : > { %v7296_v3 = vadd.f32 %v4755_v41, %v3370_v33  ;;  %v4694_v23 = vadd.f32 %v4693_v25, %v4692_v5 }
 0x210   : > { %v4757_v59 = vpop.f32.mrf.mxu1  ;;  %v4695_v51 = vpop.f32.mrf.mxu0 }
 0x211   : > { %v3373_v22 = vadd.f32 %v4694_v23, %v7251_v26  ;;  %v4758_v14 = vadd.f32 %v4757_v59, %v4756_v24 }
 0x212   : > { %v4759_v61 = vpop.f32.mrf.mxu1  ;;  %v4696_v34 = vpop.f32.mrf.mxu0 }
 0x213   : > { %v7299_v48 = vadd.f32 %v4758_v14, %v3373_v22  ;;  %v4697_v45 = vadd.f32 %v4696_v34, %v4695_v51 }
 0x214   : > { %v4760_v11 = vpop.f32.mrf.mxu1  ;;  %v4698_v6 = vpop.f32.mrf.mxu0 }
 0x215   : > { %v3378_v35 = vadd.f32 %v4697_v45, %v7254_v63  ;;  %v4761_v57 = vadd.f32 %v4760_v11, %v4759_v61 }
 0x216   : > { %v4762_v55 = vpop.f32.mrf.mxu1  ;;  %v4699_v20 = vpop.f32.mrf.mxu0 }
 0x217   : > { %v7302_v44 = vadd.f32 %v4761_v57, %v3378_v35  ;;  %v4700_v27 = vadd.f32 %v4699_v20, %v4698_v6 }
 0x218   : > { %v4763_v2 = vpop.f32.mrf.mxu1  ;;  %v4701_v43 = vpop.f32.mrf.mxu0 }
 0x219   : > { %v3381_v26 = vadd.f32 %v4700_v27, %v7257_v42  ;;  %v4764_v50 = vadd.f32 %v4763_v2, %v4762_v55 }
 0x21a   : > { %v4765_v53 = vpop.f32.mrf.mxu1  ;;  %v4702_v12 = vpop.f32.mrf.mxu0 }
 0x21b   : > { %v7305_v29 = vadd.f32 %v4764_v50, %v3381_v26  ;;  %v4703_v7 = vadd.f32 %v4702_v12, %v4701_v43 }
 0x21c   : > { %v4766_v28 = vpop.f32.mrf.mxu1  ;;  %v4704_v32 = vpop.f32.mrf.mxu0 }
 0x21d   : > { %7692 = vst [vmem:[#allocation6_spill] sm:$0xff] %v7305_v29  ;;  %v3386_v63 = vadd.f32 %v4703_v7, %v7260_v13  ;;  %v4767_v1 = vadd.f32 %v4766_v28, %v4765_v53 }
 0x21e   : > { %v4768_v8 = vpop.f32.mrf.mxu1  ;;  %v4705_v58 = vpop.f32.mrf.mxu0 }
 0x21f   : > { %v7308_v40 = vadd.f32 %v4767_v1, %v3386_v63  ;;  %v4706_v54 = vadd.f32 %v4705_v58, %v4704_v32 }
 0x220   : > { %v4769_v39 = vpop.f32.mrf.mxu1  ;;  %v4707_v21 = vpop.f32.mrf.mxu0 }
 0x221   : > { %v3389_v42 = vadd.f32 %v4706_v54, %v7263_v4  ;;  %v4770_v38 = vadd.f32 %v4769_v39, %v4768_v8 }
 0x222   : > { %v4771_v56 = vpop.f32.mrf.mxu1  ;;  %v4708_v17 = vpop.f32.mrf.mxu0 }
 0x223   : > { %v7311_v49 = vadd.f32 %v4770_v38, %v3389_v42  ;;  %v4709_v31 = vadd.f32 %v4708_v17, %v4707_v21 }
 0x224   : > { %v4772_v36 = vpop.f32.mrf.mxu1  ;;  %v4710_v52 = vpop.f32.mrf.mxu0 }
 0x225   : > { %7693 = vst [vmem:[#allocation11_spill] sm:$0xff] %v7311_v49  ;;  %v3394_v13 = vadd.f32 %v4709_v31, %v7266_v46  ;;  %v4773_v60 = vadd.f32 %v4772_v36, %v4771_v56 }
 0x226   : > { %v4774_v19 = vpop.f32.mrf.mxu1  ;;  %v4711_v37 = vpop.f32.mrf.mxu0 }
 0x227   : > { %v7314_v5 = vadd.f32 %v4773_v60, %v3394_v13  ;;  %v4712_v33 = vadd.f32 %v4711_v37, %v4710_v52 }
 0x228   : > { %v4775_v41 = vpop.f32.mrf.mxu1  ;;  %v4713_v24 = vpop.f32.mrf.mxu0 }
 0x229   : > { %v3397_v4 = vadd.f32 %v4712_v33, %v7269_v9  ;;  %v4776_v25 = vadd.f32 %v4775_v41, %v4774_v19 }
 0x22a   : > { %v4777_v23 = vpop.f32.mrf.mxu1  ;;  %v4714_v59 = vpop.f32.mrf.mxu0 }
 0x22b   : > { %v7317_v51 = vadd.f32 %v4776_v25, %v3397_v4  ;;  %v4715_v22 = vadd.f32 %v4714_v59, %v4713_v24 }
 0x22c   : > { %v4778_v14 = vpop.f32.mrf.mxu1  ;;  %v4716_v61 = vpop.f32.mrf.mxu0 }
 0x22d   : > { %7694 = vst [vmem:[#allocation12_spill] sm:$0xff] %v7317_v51  ;;  %v3402_v46 = vadd.f32 %v4715_v22, %v7272_v10  ;;  %v4779_v34 = vadd.f32 %v4778_v14, %v4777_v23 }
 0x22e   : > { %v4780_v45 = vpop.f32.mrf.mxu1  ;;  %v4717_v11 = vpop.f32.mrf.mxu0 }
 0x22f   : > { %v7320_v6 = vadd.f32 %v4779_v34, %v3402_v46  ;;  %v4718_v35 = vadd.f32 %v4717_v11, %v4716_v61 }
 0x230   : > { %v4781_v57 = vpop.f32.mrf.mxu1  ;;  %v4719_v55 = vpop.f32.mrf.mxu0 }
 0x231   : > { %7695 = vst [vmem:[#allocation15_spill] sm:$0xff] %v7320_v6  ;;  %v3405_v9 = vadd.f32 %v4718_v35, %v7275_v18  ;;  %v4782_v20 = vadd.f32 %v4781_v57, %v4780_v45 }
 0x232   : > { %v4783_v27 = vpop.f32.mrf.mxu1  ;;  %v4720_v2 = vpop.f32.mrf.mxu0 }
 0x233   : > { %v7323_v43 = vadd.f32 %v4782_v20, %v3405_v9  ;;  %v4721_v26 = vadd.f32 %v4720_v2, %v4719_v55 }
 0x234   : > { %v4784_v50 = vpop.f32.mrf.mxu1  ;;  %v4722_v53 = vpop.f32.mrf.mxu0 }
 0x235   : > { %7696 = vst [vmem:[#allocation16_spill] sm:$0xff] %v7323_v43  ;;  %v3410_v10 = vadd.f32 %v4721_v26, %v7278_v47  ;;  %v4785_v12 = vadd.f32 %v4784_v50, %v4783_v27 }
 0x236   : > { %v4786_v7 = vpop.f32.mrf.mxu1  ;;  %v4723_v28 = vpop.f32.mrf.mxu0 }
 0x237   : > { %v7326_v32 = vadd.f32 %v4785_v12, %v3410_v10  ;;  %v4724_v63 = vadd.f32 %v4723_v28, %v4722_v53 }
 0x238   : > { %v4787_v1 = vpop.f32.mrf.mxu1  ;;  %v4805_v8 = vpop.f32.mrf.mxu0 }
 0x239   : > { %7697 = vst [vmem:[#allocation7_spill] sm:$0xff] %v7326_v32  ;;  %v3413_v18 = vadd.f32 %v4724_v63, %v7281_v16  ;;  %v4788_v58 = vadd.f32 %v4787_v1, %v4786_v7 }
 0x23a   : > { %v7329_v54 = vpop.f32.mrf.mxu1  ;;  %v4806_v39 = vpop.f32.mrf.mxu0 }
 0x23b   : > { %v7331_v21 = vadd.f32 %v4788_v58, %v3413_v18 }
 0x23c   : > { %v4870_v42 = vpop.f32.mrf.mxu1  ;;  %v4808_v38 = vpop.f32.mrf.mxu0 }
 0x23d   : > { %7698 = vst [vmem:[#allocation10_spill] sm:$0xff] %v7331_v21 }
 0x23e   : > { %v7333_v56 = vpop.f32.mrf.mxu1  ;;  %v4809_v47 = vpop.f32.mrf.mxu0 }
 0x240   : > { %v7335_v17 = vpop.f32.mrf.mxu1  ;;  %v4811_v31 = vpop.f32.mrf.mxu0 }
 0x242   : > { %v7337_v36 = vpop.f32.mrf.mxu1  ;;  %v4812_v52 = vpop.f32.mrf.mxu0 }
 0x244   : > { %v7339_v13 = vpop.f32.mrf.mxu1  ;;  %v4814_v16 = vpop.f32.mrf.mxu0 }
 0x246   : > { %v7341_v60 = vpop.f32.mrf.mxu1  ;;  %v4815_v19 = vpop.f32.mrf.mxu0 }
 0x247   : > { %v4816_v49 = vadd.f32 %v4815_v19, %v4814_v16 }
 0x248   : > { %v4879_v37 = vpop.f32.mrf.mxu1  ;;  %v4817_v33 = vpop.f32.mrf.mxu0 }
 0x24a   : > { %v7343_v41 = vpop.f32.mrf.mxu1  ;;  %v4818_v24 = vpop.f32.mrf.mxu0 }
 0x24c   : > { %v7345_v4 = vpop.f32.mrf.mxu1  ;;  %v4820_v25 = vpop.f32.mrf.mxu0 }
 0x24e   : > { %v7347_v23 = vpop.f32.mrf.mxu1  ;;  %v4821_v59 = vpop.f32.mrf.mxu0 }
 0x250   : > { %v7349_v22 = vpop.f32.mrf.mxu1  ;;  %v4823_v14 = vpop.f32.mrf.mxu0 }
 0x251   : > { %7699 = vst [vmem:[#allocation9_spill] sm:$0xff] %v7349_v22 }
 0x252   : > { %v7351_v61 = vpop.f32.mrf.mxu1  ;;  %v4824_v46 = vpop.f32.mrf.mxu0 }
 0x254   : > { %v7353_v34 = vpop.f32.mrf.mxu1  ;;  %v4826_v45 = vpop.f32.mrf.mxu0 }
 0x256   : > { %v7355_v11 = vpop.f32.mrf.mxu1  ;;  %v4827_v35 = vpop.f32.mrf.mxu0 }
 0x257   : > { %7700 = vst [vmem:[#allocation20_spill] sm:$0xff] %v7355_v11  ;;  %v4807_v11 = vadd.f32 %v4806_v39, %v4805_v8  ;;  %v4825_v39 = vadd.f32 %v4824_v46, %v4823_v14 }
 0x258   : > { %v7357_v57 = vpop.f32.mrf.mxu1  ;;  %v4829_v55 = vpop.f32.mrf.mxu0 }
 0x259   : > { %7701 = vst [vmem:[#allocation21_spill] sm:$0xff] %v7357_v57 }
 0x25a   : > { %v7359_v9 = vpop.f32.mrf.mxu1  ;;  %v4830_v20 = vpop.f32.mrf.mxu0 }
 0x25b   : > { %7702 = vst [vmem:[#allocation19_spill] sm:$0xff] %v7359_v9  ;;  %v4819_v9 = vadd.f32 %v4818_v24, %v4817_v33  ;;  %v4831_v19 = vadd.f32 %v4830_v20, %v4829_v55 }
 0x25c   : > { %v7361_v27 = vpop.f32.mrf.mxu1  ;;  %v4832_v2 = vpop.f32.mrf.mxu0 }
 0x25d   : > { %7703 = vst [vmem:[#allocation13_spill] sm:$0xff] %v7361_v27  ;;  %v3564_v16 = vadd.f32 %v4819_v9, %v7296_v3 }
 0x25e   : > { %v7363_v26 = vpop.f32.mrf.mxu1  ;;  %v4833_v50 = vpop.f32.mrf.mxu0 }
 0x25f   : > { %7704 = vst [vmem:[#allocation33_spill] sm:$0xff] %v7363_v26  ;;  %v4810_v26 = vadd.f32 %v4809_v47, %v4808_v38  ;;  %v3559_v47 = vadd.f32 %v4816_v49, %v7293_v62  ;;  %v4883_v62 = vadd.f32 %v7345_v4, %v7343_v41  ;;  %v3572_v49 = vadd.f32 %v4825_v39, %v7302_v44  ;;  %v7710_v4 = vld [vmem:[#allocation12_spill] sm:$0xff] }
 0x260   : > { %v7365_v53 = vpop.f32.mrf.mxu1  ;;  %v4835_v10 = vpop.f32.mrf.mxu0 }
 0x261   : > { %7705 = vst [vmem:[#allocation28_spill] sm:$0xff] %v7365_v53  ;;  %v4813_v53 = vadd.f32 %v4812_v52, %v4811_v31  ;;  %v3551_v8 = vadd.f32 %v4810_v26, %v7287_v0  ;;  %v4880_v0 = vadd.f32 %v4879_v37, %v7341_v60  ;;  %v4889_v37 = vadd.f32 %v7353_v34, %v7351_v61  ;;  %v7713_v26 = vld [vmem:[#allocation6_spill] sm:$0xff] }
 0x262   : > { %v4899_v12 = vpop.f32.mrf.mxu1  ;;  %v4836_v7 = vpop.f32.mrf.mxu0  ;;  %v7404_v41 = vadd.f32 %v4883_v62, %v3564_v16  ;;  %v7711_v61 = vld [vmem:[#allocation19_spill] sm:$0xff] }
 0x263   : > { %v3556_v38 = vadd.f32 %v4813_v53, %v7290_v30  ;;  %v3656_v60 = vadd.f32 %v4880_v0, %v3559_v47  ;;  %v7714_v53 = vld [vmem:[#allocation11_spill] sm:$0xff] }
 0x264   : > { %v4900_v28 = vpop.f32.mrf.mxu1  ;;  %v4838_v63 = vpop.f32.mrf.mxu0  ;;  %v7712_v34 = vld [vmem:[#allocation13_spill] sm:$0xff]  ;;  %v7718_v47 = vld [vmem:[#allocation7_spill] sm:$0xff] }
 0x265   : > { %v7719_v0 = vld [vmem:[#allocation15_spill] sm:$0xff] }
 0x266   : > { %v7367_v1 = vpop.f32.mrf.mxu1  ;;  %v4839_v18 = vpop.f32.mrf.mxu0 }
 0x267   : > { %7706 = vst [vmem:[#allocation29_spill] sm:$0xff] %v7367_v1  ;;  %v3548_v1 = vadd.f32 %v4807_v11, %v7284_v15  ;;  %v4874_v15 = vadd.f32 %v7335_v17, %v7333_v56  ;;  %v4840_v24 = vadd.f32 %v4839_v18, %v4838_v63  ;;  %v4834_v17 = vadd.f32 %v4833_v50, %v4832_v2 }
 0x268   : > { %v4903_v58 = vpop.f32.mrf.mxu1  ;;  %v4841_v43 = vpop.f32.mrf.mxu0  ;;  %v3669_v2 = vadd.f32 %v4889_v37, %v3572_v49  ;;  %v7717_v39 = vld [vmem:[#allocation28_spill] sm:$0xff]  ;;  %v7721_v37 = vld [vmem:[#allocation21_spill] sm:$0xff] }
 0x269   : > { %v3648_v56 = vadd.f32 %v4874_v15, %v3551_v8  ;;  %v7716_v8 = vld [vmem:[#allocation33_spill] sm:$0xff] }
 0x26a   : > { %v7369_v21 = vpop.f32.mrf.mxu1  ;;  %v4842_v57 = vpop.f32.mrf.mxu0 }
 0x26b   : > { %7707 = vst [vmem:[#allocation17_spill] sm:$0xff] %v7369_v21  ;;  %v4871_v21 = vadd.f32 %v4870_v42, %v7329_v54  ;;  %v4877_v54 = vadd.f32 %v7339_v13, %v7337_v36  ;;  %v4822_v42 = vadd.f32 %v4821_v59, %v4820_v25  ;;  %v3580_v25 = vadd.f32 %v4831_v19, %v7308_v40 }
 0x26c   : > { %v7371_v6 = vpop.f32.mrf.mxu1  ;;  %v7373_v32 = vpop.f32.mrf.mxu0  ;;  %v4901_v59 = vadd.f32 %v4900_v28, %v4899_v12  ;;  %v4895_v40 = vadd.f32 %v7712_v34, %v7711_v61 }
 0x26d   : > { %7708 = vst [vmem:[#allocation23_spill] sm:$0xff] %v7371_v6  ;;  %v4837_v6 = vadd.f32 %v4836_v7, %v4835_v10  ;;  %v3645_v33 = vadd.f32 %v4871_v21, %v3548_v1  ;;  %v4828_v21 = vadd.f32 %v4827_v35, %v4826_v45  ;;  %v3653_v13 = vadd.f32 %v4877_v54, %v3556_v38 }
 0x26e   : > { %v7375_v29 = vpop.f32.mrf.mxu1  ;;  %v7377_v27 = vpop.f32.mrf.mxu0  ;;  %v7407_v44 = vadd.f32 %v4822_v42, %v7299_v48  ;;  %v3591_v45 = vadd.f32 %v4840_v24, %v7710_v4  ;;  %v3583_v48 = vadd.f32 %v4834_v17, %v7714_v53  ;;  %v7715_v10 = vld [vmem:[#allocation29_spill] sm:$0xff]  ;;  %v4843_v7 = vadd.f32 %v4842_v57, %v4841_v43 }
 0x26f   : > { %v3588_v3 = vadd.f32 %v4837_v6, %v7314_v5  ;;  %v7709_v5 = vld [vmem:[#allocation9_spill] sm:$0xff]  ;;  %v3575_v50 = vadd.f32 %v4828_v21, %v7713_v26  ;;  %v4904_v12 = vadd.f32 %v4903_v58, %v7715_v10  ;;  %v3677_v18 = vadd.f32 %v4895_v40, %v3580_v25 }
 0x270   : > { %v7380_v51 = vpop.f32.mrf.mxu1  ;;  %v4847_v22 = vpop.f32.mrf.mxu0  ;;  %v7411_v6 = vadd.f32 %v7709_v5, %v7347_v23  ;;  %v4898_v38 = vadd.f32 %v7717_v39, %v7716_v8  ;;  %v3596_v42 = vadd.f32 %v4843_v7, %v7719_v0  ;;  %v4846_v24 = vadd.f32 %v7377_v27, %v7373_v32  ;;  %v7724_v27 = vld [vmem:[#allocation10_spill] sm:$0xff] }
 0x271   : > { %v3685_v20 = vadd.f32 %v4901_v59, %v3588_v3  ;;  %v3688_v54 = vadd.f32 %v4904_v12, %v3591_v45 }
 0x272   : > { %v4911_v31 = vpop.f32.mrf.mxu1  ;;  %v4848_v52 = vpop.f32.mrf.mxu0  ;;  %v3680_v3 = vadd.f32 %v4898_v38, %v3583_v48  ;;  %v7722_v59 = vld [vmem:[#allocation17_spill] sm:$0xff] }
 0x273   : > { %v4849_v11 = vadd.f32 %v4848_v52, %v4847_v22 }
 0x274   : > { %v4912_v14 = vpop.f32.mrf.mxu1  ;;  %v4850_v30 = vpop.f32.mrf.mxu0  ;;  %v7723_v5 = vld [vmem:[#allocation23_spill] sm:$0xff] }
 0x275   : > { %v3604_v52 = vadd.f32 %v4849_v11, %v7718_v47  ;;  %v4913_v62 = vadd.f32 %v4912_v14, %v4911_v31  ;;  %v4907_v32 = vadd.f32 %v7723_v5, %v7722_v59 }
 0x276   : > { %v7397_v46 = vpop.f32.mrf.mxu1  ;;  %v4851_v36 = vpop.f32.mrf.mxu0 }
 0x277   : > { %v4852_v15 = vadd.f32 %v4851_v36, %v4850_v30  ;;  %v3701_v45 = vadd.f32 %v4913_v62, %v3604_v52  ;;  %v3693_v53 = vadd.f32 %v4907_v32, %v3596_v42 }
 0x278   : > { %v4915_v35 = vpop.f32.mrf.mxu1  ;;  %v4951_v55 = vpop.f32.mrf.mxu0 }
 0x279   : > { %v3750_v9 = vadd.f32 %v4951_v55, %v3653_v13  ;;  %v3607_v31 = vadd.f32 %v4852_v15, %v7724_v27 }
 0x27a   : > { %v4959_v23 = vpop.f32.mrf.mxu1  ;;  %v3741_v28 = vpop.f32.mrf.mxu0 }
 0x27b   : > { %v3806_v63 = vmax.f32 %v3750_v9, 0.0  ;;  %v3782_v1 = vadd.f32 %v4959_v23, %v3685_v20  ;;  %v3742_v22 = vadd.f32 %v3741_v28, %v3645_v33  ;;  %v4916_v9 = vadd.f32 %v4915_v35, %v7397_v46 }
 0x27c   : > { %v3773_v16 = vpop.f32.mrf.mxu1  ;;  %v4952_v19 = vpop.f32.mrf.mxu0 }
 0x27d   : > { %3822 = vst [vmem:[%s7422_s6 + $0x10] sm:$0xff] %v3806_v63  ;;  %v3814_v43 = vmax.f32 %v3782_v1, 0.0  ;;  %v3804_v57 = vmax.f32 %v3742_v22, 0.0  ;;  %v3774_v58 = vadd.f32 %v3773_v16, %v3677_v18  ;;  %v3753_v33 = vadd.f32 %v4952_v19, %v3656_v60  ;;  %v7720_v60 = vld [vmem:[#allocation20_spill] sm:$0xff] }
 0x27e   : > { %v4960_v30 = vpop.f32.mrf.mxu1  ;;  %v3744_v49 = vpop.f32.mrf.mxu0  ;;  %v4892_v25 = vadd.f32 %v7721_v37, %v7720_v60  ;;  %v3704_v35 = vadd.f32 %v4916_v9, %v3607_v31  ;;  %v3664_v63 = vadd.f32 %v7411_v6, %v7407_v44 }
 0x27f   : > { %3830 = vst [vmem:[%s7422_s6 + $0x50] sm:$0xff] %v3814_v43  ;;  %3820 = vst [vmem:[%s7422_s6] sm:$0xff] %v3804_v57  ;;  %v3812_v21 = vmax.f32 %v3774_v58, 0.0  ;;  %v3807_v17 = vmax.f32 %v3753_v33, 0.0  ;;  %v3785_v36 = vadd.f32 %v4960_v30, %v3688_v54  ;;  %v3745_v13 = vadd.f32 %v3744_v49, %v3648_v56  ;;  %v7725_v56 = vld [vmem:[#allocation16_spill] sm:$0xff] }
 0x280   : > { %v3776_v14 = vpop.f32.mrf.mxu1  ;;  %v4955_v4 = vpop.f32.mrf.mxu0  ;;  %v3599_v40 = vadd.f32 %v4846_v24, %v7725_v56  ;;  %v3672_v48 = vadd.f32 %v4892_v25, %v3575_v50 }
 0x281   : > { %3828 = vst [vmem:[%s7422_s6 + $0x40] sm:$0xff] %v3812_v21  ;;  %3823 = vst [vmem:[%s7422_s6 + $0x18] sm:$0xff] %v3807_v17  ;;  %v3815_v11 = vmax.f32 %v3785_v36, 0.0  ;;  %v3805_v55 = vmax.f32 %v3745_v13, 0.0  ;;  %v3777_v61 = vadd.f32 %v3776_v14, %v3680_v3  ;;  %v3766_v34 = vadd.f32 %v4955_v4, %v3669_v2 }
 0x282   : > { %v4963_v20 = vpop.f32.mrf.mxu1  ;;  %v3757_v26 = vpop.f32.mrf.mxu0  ;;  %v4910_v2 = vadd.f32 %v7380_v51, %v7375_v29 }
 0x283   : > { %3831 = vst [vmem:[%s7422_s6 + $0x58] sm:$0xff] %v3815_v11  ;;  %3821 = vst [vmem:[%s7422_s6 + $0x8] sm:$0xff] %v3805_v55  ;;  %v3813_v10 = vmax.f32 %v3777_v61, 0.0  ;;  %v3810_v12 = vmax.f32 %v3766_v34, 0.0  ;;  %v3798_v7 = vadd.f32 %v4963_v20, %v3701_v45  ;;  %v3758_v23 = vadd.f32 %v3757_v26, %v7404_v41 }
 0x284   : > { %v3789_v28 = vpop.f32.mrf.mxu1  ;;  %v4956_v46 = vpop.f32.mrf.mxu0  ;;  %v3696_v29 = vadd.f32 %v4910_v2, %v3599_v40 }
 0x285   : > { %3829 = vst [vmem:[%s7422_s6 + $0x48] sm:$0xff] %v3813_v10  ;;  %3826 = vst [vmem:[%s7422_s6 + $0x30] sm:$0xff] %v3810_v12  ;;  %v3818_v50 = vmax.f32 %v3798_v7, 0.0  ;;  %v3808_v1 = vmax.f32 %v3758_v23, 0.0  ;;  %v3790_v41 = vadd.f32 %v3789_v28, %v3693_v53  ;;  %v3769_v22 = vadd.f32 %v4956_v46, %v3672_v48 }
 0x286   : > { %v4964_v18 = vpop.f32.mrf.mxu1  ;;  %v3760_v8 = vpop.f32.mrf.mxu0 }
 0x287   : > { %3834 = vst [vmem:[%s7422_s6 + $0x70] sm:$0xff] %v3818_v50  ;;  %3824 = vst [vmem:[%s7422_s6 + $0x20] sm:$0xff] %v3808_v1  ;;  %v3816_v51 = vmax.f32 %v3790_v41, 0.0  ;;  %v3811_v39 = vmax.f32 %v3769_v22, 0.0  ;;  %v3801_v44 = vadd.f32 %v4964_v18, %v3704_v35  ;;  %v3761_v6 = vadd.f32 %v3760_v8, %v3664_v63 }
 0x288   : > { %v3792_v38 = vpop.f32.mrf.mxu1 }
 0x289   : > { %3832 = vst [vmem:[%s7422_s6 + $0x60] sm:$0xff] %v3816_v51  ;;  %3827 = vst [vmem:[%s7422_s6 + $0x38] sm:$0xff] %v3811_v39  ;;  %v3819_v47 = vmax.f32 %v3801_v44, 0.0  ;;  %v3809_v52 = vmax.f32 %v3761_v6, 0.0  ;;  %v3793_v15 = vadd.f32 %v3792_v38, %v3696_v29 }
 0x28b   : > { %3835 = vst [vmem:[%s7422_s6 + $0x78] sm:$0xff] %v3819_v47  ;;  %3825 = vst [vmem:[%s7422_s6 + $0x28] sm:$0xff] %v3809_v52  ;;  %v3817_v16 = vmax.f32 %v3793_v15, 0.0 }
 0x28d   : > { %3833 = vst [vmem:[%s7422_s6 + $0x68] sm:$0xff] %v3817_v16 }
 0x28e   : > { %5282 = shalt.err (!%p5279_p6)
}
 0x28f   : > { %s5283_s28 = scalar_lea.hbm %s7458_s21, 2048  ;;  %s5287_s7 = scalar_lea.hbm %s7521_s3, 8192 }
 0x290   : > { %p5284_p7 = scmp.ne.s32.totalorder %s7458_s21, %s5283_s28  ;;  %p5288_p11 = scmp.lt.s32.totalorder %s7458_s21, %s7521_s3 }
 0x291   : > { %p5289_p12 = scmp.lt.s32.totalorder %s5287_s7, %s5283_s28 }
 0x292   : > { %p5285_p9 = pnand %p5284_p7, %p5437_p3 }
 0x293   : > { %p5290_p13 = por %p5289_p12, %p5288_p11 }
 0x294   : > { %p5286_p10 = pneg %p5285_p9 }
 0x296   : > { %p5291_p0 = pnand %p5290_p13, %p5286_p10 }
 0x298   : > { %5294 = shalt.err (!%p5291_p0)
}
 0x299   : > { %s5364_s16 = smov 128   ;;  %s5365_s11 = smov 8  }
 0x29a   : > { %4982 = dma.vmem_to_hbm [thread:$0]  (%p5437_p3), %s7460_s10, 2048, %s7458_s21, %s7467_s27, %s5364_s16, %s5364_s16, %s5365_s11  }
 0x29b PF: > { %p4988_p1 = scmp.ge.s32.totalorder %s5361_s19, 2  ;;  %s3868_s20 = sand.u32 1, %s5333_s12  }
 0x29c   : > { %s3869_s9 = scalar_lea.sflag [#allocation3], %s3868_s20 }
 0x29d   : > { %p4985_p2 = pnand %p4988_p1, %p5446_p8 }
 0x29f   : > { %p4986_p4 = pneg %p4985_p2 }
 0x2a1   : > { %5328 = dma.done.wait (%p4986_p4), %s3869_s9, 2048  }
 0x2a2   : > { %5330 = vsyncadd (%p4986_p4), %s3869_s9, 4294965248  ;;  %s16_s19 = sadd.s32 1, %s5361_s19   ;;  %s7726_s12 = smov %s5337_s13 }
 0x2a3   : > { %p13_p5 = scmp.ge.s32.totalorder %s16_s19, 6   ;;  %s7727_s13 = smov %s5341_s14 }
 0x2a4   : > { %s7728_s14 = smov %s5455_s30  ;;  %s7729_s15 = smov %s5353_s17 }
 0x2a5   : > { %s7730_s16 = smov %s5357_s18  ;;  %s7731_s17 = smov %s7734_s22 }
 0x2a6   : > { %s7732_s18 = smov %s7738_s23  ;;  %15 = sbr.rel (!%p13_p5) target bundleno = 5 (0x5), region = 68 }
 0x2ab   :  { %3874 = vsyncpa [#allocation3], 1 }
 0x2ac   :  { %3876 = vsyncpa [#allocation3 + $0x1], 1 }

</bundles_post_ra>
